<compile_context>
chip_gen: v7x
topology: tpu7x:2x2x1
jax: 0.10.0
libtpu: 0.0.40
codegen_flags: <defaults>
</compile_context>

<pallas_src>
import functools

import jax
import jax.numpy as jnp
from jax import lax
from jax.experimental import pallas as pl
from jax.experimental.pallas import tpu as pltpu

_MIB = 1024 * 1024


# ----------------------------------------------------------------------------
# helpers
# ----------------------------------------------------------------------------
def _round_up(x, m):
    return (x + m - 1) // m * m


@functools.lru_cache(maxsize=None)
def _vmem_limit_bytes():
    """Scoped VMEM request: ~3/4 of physical, clamped to [32, 96] MiB.

    v5e/v6e (128 MiB) -> 96 MiB, v7x (64 MiB) -> 48 MiB, unknown -> 32 MiB.
    """
    try:
        cap = getattr(pltpu.get_tpu_info(), "vmem_capacity_bytes", None)
    except Exception:  # pragma: no cover - conservative fallback
        cap = None
    if cap is None:
        return 32 * _MIB
    return int(max(32 * _MIB, min(96 * _MIB, (cap * 3) // 4)))


def _pick_rows(h, w, *, target=256, min_tiles=1):
    """Output rows per tile: largest divisor of h with rows*w <= ~256 (keeps the
    live f32 accumulator well under the vreg file) and a sublane-friendly
    flattened M (rows*w % 8 == 0), preferring >= min_tiles tiles (so both
    TensorCores get work on v7x when batch == 1)."""
    # TODO(synk): for awkward (e.g. prime) h this can degenerate to 1-row tiles;
    # pad H or use a masked ragged last tile if such shapes ever matter.
    cand = [t for t in range(1, h + 1)
            if h % t == 0 and (t == h or (t * w) % 8 == 0)
            and t * w <= max(target, w)]
    if not cand:
        return h
    best = max(cand)
    if h // best < min_tiles:
        smaller = [t for t in cand if h // t >= min_tiles]
        if smaller:
            best = max(smaller)
    return best


def _to_s2d_3x3(w4):
    """Exact rewrite: Conv(4x4,s2,p1) on x  ==  Conv(3x3,s1,p1) on s2d(x).

    Packed input channel = (py*2 + px)*cin + c."""
    _, _, cin, cout = w4.shape
    wp = jnp.zeros((3, 3, 2, 2, cin, cout), w4.dtype)
    for ky in range(4):
        dy, py = divmod(ky - 1, 2)
        for kx in range(4):
            dx, px = divmod(kx - 1, 2)
            wp = wp.at[dy + 1, dx + 1, py, px].set(w4[ky, kx])
    return wp.reshape(3, 3, 4 * cin, cout)


# ----------------------------------------------------------------------------
# Kernel 1: 3x3 stride-1 conv (+bias +ReLU) on a pre-padded s2d input.
# ----------------------------------------------------------------------------
def _conv1_kernel(x_ref, w_ref, b_ref, o_ref, *, th, w):
    """x_ref: (H+2, W+2, K) padded per-image input (VMEM resident across tiles)
    w_ref: (9, K, Cout) bf16;  b_ref: (1, Cout) f32
    o_ref: (th*W, Cout) flattened, lane/sublane-dense output tile."""
    k = x_ref.shape[-1]
    cout = w_ref.shape[-1]
    r0 = pl.program_id(1) * th
    if th % 8 == 0:
        r0 = pl.multiple_of(r0, 8)

    # Hoist the 3 dx-shifted slabs (the only taps crossing the sublane tile)
    # and flatten them once; the dy taps below are aligned row-slices.
    slabs = []
    for dx in range(3):
        s = x_ref[pl.ds(r0, th + 2), pl.ds(dx, w), :]
        slabs.append(s.reshape((th + 2) * w, k))

    acc = jnp.zeros((th * w, cout), jnp.float32)
    for dy in range(3):
        lo = dy * w
        for dx in range(3):
            acc = acc + jnp.dot(slabs[dx][lo:lo + th * w, :],
                                w_ref[dy * 3 + dx],
                                preferred_element_type=jnp.float32)
    acc = jnp.maximum(acc + b_ref[...], 0.0)
    o_ref[...] = acc.astype(o_ref.dtype)


def conv_down1(xpad, w, b):
    """xpad: (B, H+2, W+2, K) bf16 (s2d input, 1-px halo already included)."""
    bsz, hp, wp, k = xpad.shape
    h, wdim = hp - 2, wp - 2
    cout = w.shape[-1]
    th = _pick_rows(h, wdim, min_tiles=2 if bsz == 1 else 1)
    kernel = functools.partial(_conv1_kernel, th=th, w=wdim)
    return pl.pallas_call(
        kernel,
        out_shape=jax.ShapeDtypeStruct((bsz, h * wdim, cout), jnp.bfloat16),
        grid=(bsz, h // th),
        in_specs=[
            pl.BlockSpec((None, hp, wp, k), lambda n, t: (n, 0, 0, 0)),
            pl.BlockSpec((9, k, cout), lambda n, t: (0, 0, 0)),
            pl.BlockSpec((1, cout), lambda n, t: (0, 0)),
        ],
        out_specs=pl.BlockSpec((None, th * wdim, cout), lambda n, t: (n, t, 0)),
        compiler_params=pltpu.CompilerParams(
            dimension_semantics=("parallel", "parallel"),
            vmem_limit_bytes=_vmem_limit_bytes()),
    )(xpad, w, b)


# ----------------------------------------------------------------------------
# Kernel 2: fused Conv2 + ReLU + Conv3 + ResidualStack (+ final ReLU).
# ----------------------------------------------------------------------------
def _conv_rows(src, wtap, r0, rows, w, cout, *, pre_relu):
    """f32 accumulator for output rows [r0, r0+rows) of a 3x3/s1/p1 conv whose
    zero-padded input lives in VMEM scratch `src` (h+2, w+2, cin).

    The 3 dx-shifted slabs are hoisted, ReLU'd individually (never a full
    padded slab), and K-stacked so each dot has K = 3*cin (fills the 256-deep
    MXU on v6e/v7x); wtap(dy) must return the matching (3*cin, cout) weights.
    """
    cin = src.shape[-1]
    slabs = []
    for dx in range(3):
        s = src[r0:r0 + rows + 2, dx:dx + w, :]
        if pre_relu:
            s = jnp.maximum(s, 0)
        slabs.append(s.reshape((rows + 2) * w, cin))
    big = jnp.concatenate(slabs, axis=-1)            # ((rows+2)*w, 3*cin)
    acc = jnp.zeros((rows * w, cout), jnp.float32)
    for dy in range(3):
        lo = dy * w
        acc = acc + jnp.dot(big[lo:lo + rows * w, :], wtap(dy),
                            preferred_element_type=jnp.float32)
    return acc


def _tail_kernel(x_ref, w2_ref, b2_ref, w3_ref, b3_ref, rw3_ref, rw1_ref, o_ref,
                 xin_pad, act_a, act_b, *, h, w, chunk, n_res):
    """One image per grid step.  All activations stay in VMEM scratch.

    x_ref : (H, W, K2) s2d input of conv2       (K2 = 4 * C1pad)
    w2_ref: (3, 3*K2, C2)  b2_ref: (1, C2) f32
    w3_ref: (3, 3*C2, C2)  b3_ref: (1, C2) f32
    rw3_ref: (R, 3, 3*C2, Cr)   rw1_ref: (R, Cr, C2)
    o_ref : (H*W, C2) flattened lane/sublane-dense output
    xin_pad: (H+2, W+2, K2) bf16   act_a/act_b: (H+2, W+2, C2) bf16
    """
    c2 = w2_ref.shape[-1]
    cr = rw3_ref.shape[-1]

    # Stage the conv2 input into a zero-padded VMEM slab: the 1-pixel halo is
    # handled here instead of with a host-side jnp.pad (no extra HBM pass).
    xin_pad[...] = jnp.zeros_like(xin_pad)
    xin_pad[1:h + 1, 1:w + 1, :] = x_ref[...]
    act_a[...] = jnp.zeros_like(act_a)   # borders must stay 0 for later convs
    act_b[...] = jnp.zeros_like(act_b)

    # ---- Conv2 (4x4,s2,p1 rewritten as 3x3 on s2d input) + bias + ReLU -----
    for r0 in range(0, h, chunk):
        acc = _conv_rows(xin_pad, lambda dy: w2_ref[dy], r0, chunk, w, c2,
                         pre_relu=False)
        acc = jnp.maximum(acc + b2_ref[...], 0.0)
        act_a[1 + r0:1 + r0 + chunk, 1:1 + w, :] = (
            acc.reshape(chunk, w, c2).astype(act_a.dtype))

    # ---- Conv3 (3x3,s1,p1) + bias -------------------------------------------
    for r0 in range(0, h, chunk):
        acc = _conv_rows(act_a, lambda dy: w3_ref[dy], r0, chunk, w, c2,
                         pre_relu=False)
        acc = acc + b3_ref[...]
        act_b[1 + r0:1 + r0 + chunk, 1:1 + w, :] = (
            acc.reshape(chunk, w, c2).astype(act_b.dtype))

    # ---- Residual stack: x = x + Conv1x1(ReLU(Conv3x3(ReLU(x)))) -----------
    # TODO(synk): ResidualStack structure (bias-free convs, final stack ReLU)
    # is assumed; adjust if the reference repo's ResidualStack differs.
    src, dst = act_b, act_a
    for r in range(n_res):
        last = r == n_res - 1
        for r0 in range(0, h, chunk):
            acc = _conv_rows(src, lambda dy, r=r: rw3_ref[r, dy], r0, chunk, w,
                             cr, pre_relu=True)
            hmid = jnp.maximum(acc, 0.0).astype(jnp.bfloat16)  # stays on-chip
            out = jnp.dot(hmid, rw1_ref[r], preferred_element_type=jnp.float32)
            res = src[1 + r0:1 + r0 + chunk, 1:1 + w, :].reshape(chunk * w, c2)
            out = out + res.astype(jnp.float32)
            if last:
                out = jnp.maximum(out, 0.0)          # final ReLU of the stack
                o_ref[r0 * w:(r0 + chunk) * w, :] = out.astype(o_ref.dtype)
            else:
                dst[1 + r0:1 + r0 + chunk, 1:1 + w, :] = (
                    out.reshape(chunk, w, c2).astype(dst.dtype))
        src, dst = dst, src


def encode_tail(x, w2, b2, w3, b3, rw3, rw1):
    """x: (B, H, W, K2) bf16 -> (B, H*W, C2) bf16."""
    bsz, h, w, k2 = x.shape
    c2 = w2.shape[-1]
    n_res = rw3.shape[0]
    chunk = _pick_rows(h, w)
    kernel = functools.partial(_tail_kernel, h=h, w=w, chunk=chunk, n_res=n_res)
    return pl.pallas_call(
        kernel,
        out_shape=jax.ShapeDtypeStruct((bsz, h * w, c2), jnp.bfloat16),
        grid=(bsz,),
        in_specs=[
            pl.BlockSpec((None, h, w, k2), lambda n: (n, 0, 0, 0)),
            pl.BlockSpec(w2.shape, lambda n: (0, 0, 0)),
            pl.BlockSpec(b2.shape, lambda n: (0, 0)),
            pl.BlockSpec(w3.shape, lambda n: (0, 0, 0)),
            pl.BlockSpec(b3.shape, lambda n: (0, 0)),
            pl.BlockSpec(rw3.shape, lambda n: (0, 0, 0, 0)),
            pl.BlockSpec(rw1.shape, lambda n: (0, 0, 0)),
        ],
        out_specs=pl.BlockSpec((None, h * w, c2), lambda n: (n, 0, 0)),
        scratch_shapes=[
            pltpu.VMEM((h + 2, w + 2, k2), jnp.bfloat16),
            pltpu.VMEM((h + 2, w + 2, c2), jnp.bfloat16),
            pltpu.VMEM((h + 2, w + 2, c2), jnp.bfloat16),
        ],
        compiler_params=pltpu.CompilerParams(
            dimension_semantics=("parallel",),
            vmem_limit_bytes=_vmem_limit_bytes()),
    )(x, w2, b2, w3, b3, rw3, rw1)


# ----------------------------------------------------------------------------
# Encoder forward
# ----------------------------------------------------------------------------
def encoder_forward(x_nchw, params, num_channels):
    b, cin, hin, win = x_nchw.shape
    assert hin % 4 == 0 and win % 4 == 0, "spatial dims must be divisible by 4"
    h2, w2, h4, w4 = hin // 2, win // 2, hin // 4, win // 4

    # Layer-1 input: fused NCHW -> space-to-depth(2)-NHWC (+1-px halo), one pass.
    x = x_nchw.reshape(b, cin, h2, 2, w2, 2)
    x = jnp.transpose(x, (0, 2, 4, 3, 5, 1)).reshape(b, h2, w2, 4 * cin)
    x = jnp.pad(x, ((0, 0), (1, 1), (1, 1), (0, 0))).astype(jnp.bfloat16)

    # Conv1(4x4,s2,p1) + ReLU  (as 3x3/s1/p1 on the s2d input).
    a1 = conv_down1(x, params["w1"], params["b1"])          # (B, H2*W2, C1pad)
    c1 = params["w1"].shape[-1]

    # space-to-depth(2) for Conv2 (reshape/transpose, single pass).
    a1 = a1.reshape(b, h4, 2, w4, 2, c1)
    a1 = jnp.transpose(a1, (0, 1, 3, 2, 4, 5)).reshape(b, h4, w4, 4 * c1)

    # Fused Conv2+ReLU -> Conv3 -> ResidualStack (+ final ReLU), one call.
    y = encode_tail(a1, params["w2"], params["b2"], params["w3"], params["b3"],
                    params["rw3"], params["rw1"])           # (B, H4*W4, C2pad)

    y = y[..., :num_channels].astype(jnp.float32)
    y = y.reshape(b, h4, w4, num_channels)
    return jnp.transpose(y, (0, 3, 1, 2))                   # NHWC -> NCHW


# ----------------------------------------------------------------------------
# Deterministic synthetic parameters (shapes follow the PyTorch __init__).
# Channel dims are zero-padded to multiples of 128 so all output stores are
# lane-dense; padded channels stay exactly zero end-to-end and are sliced off.
# ----------------------------------------------------------------------------
def init_params(key, in_channels, num_channels, num_residual_blocks,
                num_residual_channels):
    assert num_residual_blocks >= 1
    half = num_channels // 2
    c1 = _round_up(half, 128)
    c2 = _round_up(num_channels, 128)
    cr = _round_up(num_residual_channels, 128)

    def conv_w(k, kh, kw, ci, co):
        fan_in = kh * kw * ci
        return jax.random.normal(k, (kh, kw, ci, co), jnp.float32) / jnp.sqrt(fan_in)

    ks = jax.random.split(key, 6 + 2 * num_residual_blocks)

    raw = {
        "w1": conv_w(ks[0], 4, 4, in_channels, half),
        "b1": 0.01 * jax.random.normal(ks[1], (half,), jnp.float32),
        "w2": conv_w(ks[2], 4, 4, half, num_channels),
        "b2": 0.01 * jax.random.normal(ks[3], (num_channels,), jnp.float32),
        "w3": conv_w(ks[4], 3, 3, num_channels, num_channels),
        "b3": 0.01 * jax.random.normal(ks[5], (num_channels,), jnp.float32),
    }
    for r in range(num_residual_blocks):
        raw[f"res{r}_w3"] = conv_w(ks[6 + 2 * r], 3, 3, num_channels,
                                   num_residual_channels)
        raw[f"res{r}_w1"] = conv_w(ks[7 + 2 * r], 1, 1, num_residual_channels,
                                   num_channels)

    # Layer 1: per-tap (9, K, C) format.
    w1 = _to_s2d_3x3(raw["w1"])                              # (3,3,4*cin, half)
    w1 = jnp.pad(w1, ((0, 0), (0, 0), (0, 0), (0, c1 - half)))
    # Layer 2/3 + resblocks: K-stacked (3, 3*K, C) format (dx folded into K).
    w2 = jnp.pad(raw["w2"], ((0, 0), (0, 0), (0, c1 - half),
                             (0, c2 - num_channels)))
    w2 = _to_s2d_3x3(w2)                                     # (3,3,4*c1, c2)
    w3 = jnp.pad(raw["w3"], ((0, 0), (0, 0), (0, c2 - num_channels),
                             (0, c2 - num_channels)))

    params = {
        "w1": w1.reshape(9, 4 * in_channels, c1).astype(jnp.bfloat16),
        "b1": jnp.pad(raw["b1"], (0, c1 - half)).reshape(1, c1),
        "w2": w2.reshape(3, 3 * 4 * c1, c2).astype(jnp.bfloat16),
        "b2": jnp.pad(raw["b2"], (0, c2 - num_channels)).reshape(1, c2),
        "w3": w3.reshape(3, 3 * c2, c2).astype(jnp.bfloat16),
        "b3": jnp.pad(raw["b3"], (0, c2 - num_channels)).reshape(1, c2),
    }
    rw3, rw1 = [], []
    for r in range(num_residual_blocks):
        a = jnp.pad(raw[f"res{r}_w3"],
                    ((0, 0), (0, 0), (0, c2 - num_channels),
                     (0, cr - num_residual_channels)))
        rw3.append(a.reshape(3, 3 * c2, cr))
        b_ = jnp.pad(raw[f"res{r}_w1"],
                     ((0, 0), (0, 0), (0, cr - num_residual_channels),
                      (0, c2 - num_channels)))
        rw1.append(b_.reshape(cr, c2))
    params["rw3"] = jnp.stack(rw3).astype(jnp.bfloat16)      # (R, 3, 3*c2, cr)
    params["rw1"] = jnp.stack(rw1).astype(jnp.bfloat16)      # (R, cr, c2)
    return params, raw


# ----------------------------------------------------------------------------
# Pure-JAX f32 reference (same assumed ResidualStack) for a sanity check.
# ----------------------------------------------------------------------------
def reference_forward(x, raw, num_residual_blocks):
    dn = ("NCHW", "HWIO", "NCHW")

    def conv(v, w, b, stride, pad):
        y = lax.conv_general_dilated(v, w, (stride, stride),
                                     [(pad, pad), (pad, pad)],
                                     dimension_numbers=dn)
        if b is not None:
            y = y + b.reshape(1, -1, 1, 1)
        return y

    v = jax.nn.relu(conv(x, raw["w1"], raw["b1"], 2, 1))
    v = jax.nn.relu(conv(v, raw["w2"], raw["b2"], 2, 1))
    v = conv(v, raw["w3"], raw["b3"], 1, 1)
    for r in range(num_residual_blocks):
        h = conv(jax.nn.relu(v), raw[f"res{r}_w3"], None, 1, 1)
        h = conv(jax.nn.relu(h), raw[f"res{r}_w1"], None, 1, 0)
        v = v + h
    return jax.nn.relu(v)


if __name__ == "__main__":
    in_channels = 4
    num_channels = 32
    num_residual_blocks = 2
    num_residual_channels = 16
    batch, spatial = 2, 16

    key = jax.random.PRNGKey(0)
    kx, kp = jax.random.split(key)
    x = jax.random.normal(kx, (batch, in_channels, spatial, spatial), jnp.float32)
    params, raw = init_params(kp, in_channels, num_channels,
                              num_residual_blocks, num_residual_channels)

    fwd = jax.jit(lambda inp: encoder_forward(inp, params, num_channels))
    out = fwd(x)
    jax.block_until_ready(out)

    # Two stride-2 convs: 16 -> 8 -> 4 spatial; channels -> num_channels.
    assert out.shape == (batch, num_channels, spatial // 4, spatial // 4), out.shape
    assert out.dtype == jnp.float32

    # Sanity check against an f32 XLA reference (kernel path is bf16).
    ref = reference_forward(x, raw, num_residual_blocks)
    err = float(jnp.max(jnp.abs(out - ref)) / (jnp.max(jnp.abs(ref)) + 1e-6))
    assert err < 0.06, f"numerical mismatch vs f32 reference: rel-max-err={err:.4f}"

    print("KERNEL_OK")
</pallas_src>

<mosaic_0001>
module attributes {stable_mosaic.version = 11 : i64} {
  func.func @_conv1_kernel(%arg0: i32, %arg1: i32, %arg2: memref<1x10x10x16xbf16, #tpu.memory_space<vmem>>, %arg3: memref<9x16x128xbf16, #tpu.memory_space<vmem>>, %arg4: memref<1x128xf32, #tpu.memory_space<vmem>>, %arg5: memref<1x64x128xbf16, #tpu.memory_space<vmem>>) attributes {dimension_semantics = [#tpu.dimension_semantics<parallel>, #tpu.dimension_semantics<parallel>], iteration_bounds = array<i64: 2, 1>, scalar_prefetch = 0 : i64, scratch_operands = 0 : i64, tpu.core_type = #tpu.core_type<tc>, window_params = [{transform_indices = @transform_0, window_bounds = array<i64: 1, 10, 10, 16>}, {pipeline_mode = #tpu.pipeline_mode<synchronous>, transform_indices = @transform_1, window_bounds = array<i64: 9, 16, 128>}, {pipeline_mode = #tpu.pipeline_mode<synchronous>, transform_indices = @transform_2, window_bounds = array<i64: 1, 128>}, {transform_indices = @transform_3, window_bounds = array<i64: 1, 64, 128>}]} {
    %c8_i32 = arith.constant 8 : i32
    %0 = arith.muli %arg1, %c8_i32 : i32
    %1 = tpu.assume_multiple %0, 8 : i32
    %c0 = arith.constant 0 : index
    %2 = arith.index_cast %1 : i32 to index
    %c0_0 = arith.constant 0 : index
    %c0_1 = arith.constant 0 : index
    %3 = vector.load %arg2[%c0, %2, %c0_0, %c0_1] : memref<1x10x10x16xbf16, #tpu.memory_space<vmem>>, vector<1x10x8x16xbf16>
    %4 = vector.shape_cast %3 : vector<1x10x8x16xbf16> to vector<10x8x16xbf16>
    %5 = vector.shape_cast %4 : vector<10x8x16xbf16> to vector<80x16xbf16>
    %c0_2 = arith.constant 0 : index
    %6 = arith.index_cast %1 : i32 to index
    %c1 = arith.constant 1 : index
    %c0_3 = arith.constant 0 : index
    %7 = vector.load %arg2[%c0_2, %6, %c1, %c0_3] : memref<1x10x10x16xbf16, #tpu.memory_space<vmem>>, vector<1x10x8x16xbf16>
    %8 = vector.shape_cast %7 : vector<1x10x8x16xbf16> to vector<10x8x16xbf16>
    %9 = vector.shape_cast %8 : vector<10x8x16xbf16> to vector<80x16xbf16>
    %c0_4 = arith.constant 0 : index
    %10 = arith.index_cast %1 : i32 to index
    %c2 = arith.constant 2 : index
    %c0_5 = arith.constant 0 : index
    %11 = vector.load %arg2[%c0_4, %10, %c2, %c0_5] : memref<1x10x10x16xbf16, #tpu.memory_space<vmem>>, vector<1x10x8x16xbf16>
    %12 = vector.shape_cast %11 : vector<1x10x8x16xbf16> to vector<10x8x16xbf16>
    %13 = vector.shape_cast %12 : vector<10x8x16xbf16> to vector<80x16xbf16>
    %cst = arith.constant 0.000000e+00 : f32
    %14 = vector.broadcast %cst : f32 to vector<64x128xf32>
    %15 = vector.extract_strided_slice %5 {offsets = [0, 0], sizes = [64, 16], strides = [1, 1]} : vector<80x16xbf16> to vector<64x16xbf16>
    %c0_6 = arith.constant 0 : index
    %c0_7 = arith.constant 0 : index
    %c0_8 = arith.constant 0 : index
    %16 = vector.load %arg3[%c0_6, %c0_7, %c0_8] : memref<9x16x128xbf16, #tpu.memory_space<vmem>>, vector<1x16x128xbf16>
    %17 = vector.shape_cast %16 : vector<1x16x128xbf16> to vector<16x128xbf16>
    %cst_9 = arith.constant dense<0.000000e+00> : vector<64x128xf32>
    %18 = tpu.matmul %15, %17, %cst_9 {dimension_numbers = #tpu.dot_dimension_numbers<[1], [0], [0], [1], [0, 0, 1, 1], [], []>} : vector<64x16xbf16>, vector<16x128xbf16>, vector<64x128xf32> -> vector<64x128xf32>
    %19 = arith.addf %14, %18 : vector<64x128xf32>
    %20 = vector.extract_strided_slice %9 {offsets = [0, 0], sizes = [64, 16], strides = [1, 1]} : vector<80x16xbf16> to vector<64x16xbf16>
    %c1_10 = arith.constant 1 : index
    %c0_11 = arith.constant 0 : index
    %c0_12 = arith.constant 0 : index
    %21 = vector.load %arg3[%c1_10, %c0_11, %c0_12] : memref<9x16x128xbf16, #tpu.memory_space<vmem>>, vector<1x16x128xbf16>
    %22 = vector.shape_cast %21 : vector<1x16x128xbf16> to vector<16x128xbf16>
    %cst_13 = arith.constant dense<0.000000e+00> : vector<64x128xf32>
    %23 = tpu.matmul %20, %22, %cst_13 {dimension_numbers = #tpu.dot_dimension_numbers<[1], [0], [0], [1], [0, 0, 1, 1], [], []>} : vector<64x16xbf16>, vector<16x128xbf16>, vector<64x128xf32> -> vector<64x128xf32>
    %24 = arith.addf %19, %23 : vector<64x128xf32>
    %25 = vector.extract_strided_slice %13 {offsets = [0, 0], sizes = [64, 16], strides = [1, 1]} : vector<80x16xbf16> to vector<64x16xbf16>
    %c2_14 = arith.constant 2 : index
    %c0_15 = arith.constant 0 : index
    %c0_16 = arith.constant 0 : index
    %26 = vector.load %arg3[%c2_14, %c0_15, %c0_16] : memref<9x16x128xbf16, #tpu.memory_space<vmem>>, vector<1x16x128xbf16>
    %27 = vector.shape_cast %26 : vector<1x16x128xbf16> to vector<16x128xbf16>
    %cst_17 = arith.constant dense<0.000000e+00> : vector<64x128xf32>
    %28 = tpu.matmul %25, %27, %cst_17 {dimension_numbers = #tpu.dot_dimension_numbers<[1], [0], [0], [1], [0, 0, 1, 1], [], []>} : vector<64x16xbf16>, vector<16x128xbf16>, vector<64x128xf32> -> vector<64x128xf32>
    %29 = arith.addf %24, %28 : vector<64x128xf32>
    %30 = vector.extract_strided_slice %5 {offsets = [8, 0], sizes = [64, 16], strides = [1, 1]} : vector<80x16xbf16> to vector<64x16xbf16>
    %c3 = arith.constant 3 : index
    %c0_18 = arith.constant 0 : index
    %c0_19 = arith.constant 0 : index
    %31 = vector.load %arg3[%c3, %c0_18, %c0_19] : memref<9x16x128xbf16, #tpu.memory_space<vmem>>, vector<1x16x128xbf16>
    %32 = vector.shape_cast %31 : vector<1x16x128xbf16> to vector<16x128xbf16>
    %cst_20 = arith.constant dense<0.000000e+00> : vector<64x128xf32>
    %33 = tpu.matmul %30, %32, %cst_20 {dimension_numbers = #tpu.dot_dimension_numbers<[1], [0], [0], [1], [0, 0, 1, 1], [], []>} : vector<64x16xbf16>, vector<16x128xbf16>, vector<64x128xf32> -> vector<64x128xf32>
    %34 = arith.addf %29, %33 : vector<64x128xf32>
    %35 = vector.extract_strided_slice %9 {offsets = [8, 0], sizes = [64, 16], strides = [1, 1]} : vector<80x16xbf16> to vector<64x16xbf16>
    %c4 = arith.constant 4 : index
    %c0_21 = arith.constant 0 : index
    %c0_22 = arith.constant 0 : index
    %36 = vector.load %arg3[%c4, %c0_21, %c0_22] : memref<9x16x128xbf16, #tpu.memory_space<vmem>>, vector<1x16x128xbf16>
    %37 = vector.shape_cast %36 : vector<1x16x128xbf16> to vector<16x128xbf16>
    %cst_23 = arith.constant dense<0.000000e+00> : vector<64x128xf32>
    %38 = tpu.matmul %35, %37, %cst_23 {dimension_numbers = #tpu.dot_dimension_numbers<[1], [0], [0], [1], [0, 0, 1, 1], [], []>} : vector<64x16xbf16>, vector<16x128xbf16>, vector<64x128xf32> -> vector<64x128xf32>
    %39 = arith.addf %34, %38 : vector<64x128xf32>
    %40 = vector.extract_strided_slice %13 {offsets = [8, 0], sizes = [64, 16], strides = [1, 1]} : vector<80x16xbf16> to vector<64x16xbf16>
    %c5 = arith.constant 5 : index
    %c0_24 = arith.constant 0 : index
    %c0_25 = arith.constant 0 : index
    %41 = vector.load %arg3[%c5, %c0_24, %c0_25] : memref<9x16x128xbf16, #tpu.memory_space<vmem>>, vector<1x16x128xbf16>
    %42 = vector.shape_cast %41 : vector<1x16x128xbf16> to vector<16x128xbf16>
    %cst_26 = arith.constant dense<0.000000e+00> : vector<64x128xf32>
    %43 = tpu.matmul %40, %42, %cst_26 {dimension_numbers = #tpu.dot_dimension_numbers<[1], [0], [0], [1], [0, 0, 1, 1], [], []>} : vector<64x16xbf16>, vector<16x128xbf16>, vector<64x128xf32> -> vector<64x128xf32>
    %44 = arith.addf %39, %43 : vector<64x128xf32>
    %45 = vector.extract_strided_slice %5 {offsets = [16, 0], sizes = [64, 16], strides = [1, 1]} : vector<80x16xbf16> to vector<64x16xbf16>
    %c6 = arith.constant 6 : index
    %c0_27 = arith.constant 0 : index
    %c0_28 = arith.constant 0 : index
    %46 = vector.load %arg3[%c6, %c0_27, %c0_28] : memref<9x16x128xbf16, #tpu.memory_space<vmem>>, vector<1x16x128xbf16>
    %47 = vector.shape_cast %46 : vector<1x16x128xbf16> to vector<16x128xbf16>
    %cst_29 = arith.constant dense<0.000000e+00> : vector<64x128xf32>
    %48 = tpu.matmul %45, %47, %cst_29 {dimension_numbers = #tpu.dot_dimension_numbers<[1], [0], [0], [1], [0, 0, 1, 1], [], []>} : vector<64x16xbf16>, vector<16x128xbf16>, vector<64x128xf32> -> vector<64x128xf32>
    %49 = arith.addf %44, %48 : vector<64x128xf32>
    %50 = vector.extract_strided_slice %9 {offsets = [16, 0], sizes = [64, 16], strides = [1, 1]} : vector<80x16xbf16> to vector<64x16xbf16>
    %c7 = arith.constant 7 : index
    %c0_30 = arith.constant 0 : index
    %c0_31 = arith.constant 0 : index
    %51 = vector.load %arg3[%c7, %c0_30, %c0_31] : memref<9x16x128xbf16, #tpu.memory_space<vmem>>, vector<1x16x128xbf16>
    %52 = vector.shape_cast %51 : vector<1x16x128xbf16> to vector<16x128xbf16>
    %cst_32 = arith.constant dense<0.000000e+00> : vector<64x128xf32>
    %53 = tpu.matmul %50, %52, %cst_32 {dimension_numbers = #tpu.dot_dimension_numbers<[1], [0], [0], [1], [0, 0, 1, 1], [], []>} : vector<64x16xbf16>, vector<16x128xbf16>, vector<64x128xf32> -> vector<64x128xf32>
    %54 = arith.addf %49, %53 : vector<64x128xf32>
    %55 = vector.extract_strided_slice %13 {offsets = [16, 0], sizes = [64, 16], strides = [1, 1]} : vector<80x16xbf16> to vector<64x16xbf16>
    %c8 = arith.constant 8 : index
    %c0_33 = arith.constant 0 : index
    %c0_34 = arith.constant 0 : index
    %56 = vector.load %arg3[%c8, %c0_33, %c0_34] : memref<9x16x128xbf16, #tpu.memory_space<vmem>>, vector<1x16x128xbf16>
    %57 = vector.shape_cast %56 : vector<1x16x128xbf16> to vector<16x128xbf16>
    %cst_35 = arith.constant dense<0.000000e+00> : vector<64x128xf32>
    %58 = tpu.matmul %55, %57, %cst_35 {dimension_numbers = #tpu.dot_dimension_numbers<[1], [0], [0], [1], [0, 0, 1, 1], [], []>} : vector<64x16xbf16>, vector<16x128xbf16>, vector<64x128xf32> -> vector<64x128xf32>
    %59 = arith.addf %54, %58 : vector<64x128xf32>
    %c0_36 = arith.constant 0 : index
    %c0_37 = arith.constant 0 : index
    %60 = vector.load %arg4[%c0_36, %c0_37] : memref<1x128xf32, #tpu.memory_space<vmem>>, vector<1x128xf32>
    %61 = vector.broadcast %60 : vector<1x128xf32> to vector<64x128xf32>
    %62 = arith.addf %59, %61 : vector<64x128xf32>
    %cst_38 = arith.constant 0.000000e+00 : f32
    %63 = vector.broadcast %cst_38 : f32 to vector<64x128xf32>
    %64 = arith.maximumf %62, %63 : vector<64x128xf32>
    %65 = arith.truncf %64 : vector<64x128xf32> to vector<64x128xbf16>
    %c0_39 = arith.constant 0 : index
    %c0_40 = arith.constant 0 : index
    %c0_41 = arith.constant 0 : index
    %66 = vector.load %arg5[%c0_39, %c0_40, %c0_41] : memref<1x64x128xbf16, #tpu.memory_space<vmem>>, vector<1x64x128xbf16>
    %67 = vector.shape_cast %66 : vector<1x64x128xbf16> to vector<64x128xbf16>
    %68 = vector.shape_cast %65 : vector<64x128xbf16> to vector<1x64x128xbf16>
    tpu.vector_store %arg5[%c0_39, %c0_40, %c0_41], %68 {strides = array<i32>} : memref<1x64x128xbf16, #tpu.memory_space<vmem>>, vector<1x64x128xbf16>,
    return
  }
  func.func @transform_0(%arg0: i32, %arg1: i32) -> (i32, i32, i32, i32) {
    %c0_i32 = arith.constant 0 : i32
    %c0_i32_0 = arith.constant 0 : i32
    %c0_i32_1 = arith.constant 0 : i32
    %c0_i32_2 = arith.constant 0 : i32
    return %arg0, %c0_i32, %c0_i32_0, %c0_i32_1 : i32, i32, i32, i32
  }
  func.func @transform_1(%arg0: i32, %arg1: i32) -> (i32, i32, i32) {
    %c0_i32 = arith.constant 0 : i32
    %c0_i32_0 = arith.constant 0 : i32
    %c0_i32_1 = arith.constant 0 : i32
    %c0_i32_2 = arith.constant 0 : i32
    return %c0_i32, %c0_i32_0, %c0_i32_1 : i32, i32, i32
  }
  func.func @transform_2(%arg0: i32, %arg1: i32) -> (i32, i32) {
    %c0_i32 = arith.constant 0 : i32
    %c0_i32_0 = arith.constant 0 : i32
    %c0_i32_1 = arith.constant 0 : i32
    return %c0_i32, %c0_i32_0 : i32, i32
  }
  func.func @transform_3(%arg0: i32, %arg1: i32) -> (i32, i32, i32) {
    %c0_i32 = arith.constant 0 : i32
    %c0_i32_0 = arith.constant 0 : i32
    return %arg0, %arg1, %c0_i32 : i32, i32, i32
  }
}

module attributes {stable_mosaic.version = 11 : i64} {
  func.func @_tail_kernel(%arg0: i32, %arg1: memref<1x4x4x512xbf16, #tpu.memory_space<vmem>>, %arg2: memref<3x1536x128xbf16, #tpu.memory_space<vmem>>, %arg3: memref<1x128xf32, #tpu.memory_space<vmem>>, %arg4: memref<3x384x128xbf16, #tpu.memory_space<vmem>>, %arg5: memref<1x128xf32, #tpu.memory_space<vmem>>, %arg6: memref<2x3x384x128xbf16, #tpu.memory_space<vmem>>, %arg7: memref<2x128x128xbf16, #tpu.memory_space<vmem>>, %arg8: memref<1x16x128xbf16, #tpu.memory_space<vmem>>, %arg9: memref<6x6x512xbf16, #tpu.memory_space<vmem>>, %arg10: memref<6x6x128xbf16, #tpu.memory_space<vmem>>, %arg11: memref<6x6x128xbf16, #tpu.memory_space<vmem>>) attributes {dimension_semantics = [#tpu.dimension_semantics<parallel>], iteration_bounds = array<i64: 2>, scalar_prefetch = 0 : i64, scratch_operands = 3 : i64, tpu.core_type = #tpu.core_type<tc>, window_params = [{transform_indices = @transform_0, window_bounds = array<i64: 1, 4, 4, 512>}, {pipeline_mode = #tpu.pipeline_mode<synchronous>, transform_indices = @transform_1, window_bounds = array<i64: 3, 1536, 128>}, {pipeline_mode = #tpu.pipeline_mode<synchronous>, transform_indices = @transform_2, window_bounds = array<i64: 1, 128>}, {pipeline_mode = #tpu.pipeline_mode<synchronous>, transform_indices = @transform_3, window_bounds = array<i64: 3, 384, 128>}, {pipeline_mode = #tpu.pipeline_mode<synchronous>, transform_indices = @transform_4, window_bounds = array<i64: 1, 128>}, {pipeline_mode = #tpu.pipeline_mode<synchronous>, transform_indices = @transform_5, window_bounds = array<i64: 2, 3, 384, 128>}, {pipeline_mode = #tpu.pipeline_mode<synchronous>, transform_indices = @transform_6, window_bounds = array<i64: 2, 128, 128>}, {transform_indices = @transform_7, window_bounds = array<i64: 1, 16, 128>}]} {
    %cst = arith.constant 0.000000e+00 : bf16
    %0 = vector.broadcast %cst : bf16 to vector<6x6x512xbf16>
    %c0 = arith.constant 0 : index
    %c0_0 = arith.constant 0 : index
    %c0_1 = arith.constant 0 : index
    %1 = vector.load %arg9[%c0, %c0_0, %c0_1] : memref<6x6x512xbf16, #tpu.memory_space<vmem>>, vector<6x6x512xbf16>
    tpu.vector_store %arg9[%c0, %c0_0, %c0_1], %0 {strides = array<i32>} : memref<6x6x512xbf16, #tpu.memory_space<vmem>>, vector<6x6x512xbf16>,
    %c0_2 = arith.constant 0 : index
    %c0_3 = arith.constant 0 : index
    %c0_4 = arith.constant 0 : index
    %c0_5 = arith.constant 0 : index
    %2 = vector.load %arg1[%c0_2, %c0_3, %c0_4, %c0_5] : memref<1x4x4x512xbf16, #tpu.memory_space<vmem>>, vector<1x4x4x512xbf16>
    %3 = vector.shape_cast %2 : vector<1x4x4x512xbf16> to vector<4x4x512xbf16>
    %c1 = arith.constant 1 : index
    %c1_6 = arith.constant 1 : index
    %c0_7 = arith.constant 0 : index
    %4 = vector.load %arg9[%c1, %c1_6, %c0_7] : memref<6x6x512xbf16, #tpu.memory_space<vmem>>, vector<4x4x512xbf16>
    tpu.vector_store %arg9[%c1, %c1_6, %c0_7], %3 {strides = array<i32>} : memref<6x6x512xbf16, #tpu.memory_space<vmem>>, vector<4x4x512xbf16>,
    %cst_8 = arith.constant 0.000000e+00 : bf16
    %5 = vector.broadcast %cst_8 : bf16 to vector<6x6x128xbf16>
    %c0_9 = arith.constant 0 : index
    %c0_10 = arith.constant 0 : index
    %c0_11 = arith.constant 0 : index
    %6 = vector.load %arg10[%c0_9, %c0_10, %c0_11] : memref<6x6x128xbf16, #tpu.memory_space<vmem>>, vector<6x6x128xbf16>
    tpu.vector_store %arg10[%c0_9, %c0_10, %c0_11], %5 {strides = array<i32>} : memref<6x6x128xbf16, #tpu.memory_space<vmem>>, vector<6x6x128xbf16>,
    %cst_12 = arith.constant 0.000000e+00 : bf16
    %7 = vector.broadcast %cst_12 : bf16 to vector<6x6x128xbf16>
    %c0_13 = arith.constant 0 : index
    %c0_14 = arith.constant 0 : index
    %c0_15 = arith.constant 0 : index
    %8 = vector.load %arg11[%c0_13, %c0_14, %c0_15] : memref<6x6x128xbf16, #tpu.memory_space<vmem>>, vector<6x6x128xbf16>
    tpu.vector_store %arg11[%c0_13, %c0_14, %c0_15], %7 {strides = array<i32>} : memref<6x6x128xbf16, #tpu.memory_space<vmem>>, vector<6x6x128xbf16>,
    %c0_16 = arith.constant 0 : index
    %c0_17 = arith.constant 0 : index
    %c0_18 = arith.constant 0 : index
    %9 = vector.load %arg9[%c0_16, %c0_17, %c0_18] : memref<6x6x512xbf16, #tpu.memory_space<vmem>>, vector<6x4x512xbf16>
    %10 = vector.shape_cast %9 : vector<6x4x512xbf16> to vector<24x512xbf16>
    %c0_19 = arith.constant 0 : index
    %c1_20 = arith.constant 1 : index
    %c0_21 = arith.constant 0 : index
    %11 = vector.load %arg9[%c0_19, %c1_20, %c0_21] : memref<6x6x512xbf16, #tpu.memory_space<vmem>>, vector<6x4x512xbf16>
    %12 = vector.shape_cast %11 : vector<6x4x512xbf16> to vector<24x512xbf16>
    %c0_22 = arith.constant 0 : index
    %c2 = arith.constant 2 : index
    %c0_23 = arith.constant 0 : index
    %13 = vector.load %arg9[%c0_22, %c2, %c0_23] : memref<6x6x512xbf16, #tpu.memory_space<vmem>>, vector<6x4x512xbf16>
    %14 = vector.shape_cast %13 : vector<6x4x512xbf16> to vector<24x512xbf16>
    %15 = tpu.concatenate %10, %12, %14 in 1 : vector<24x512xbf16>, vector<24x512xbf16>, vector<24x512xbf16> -> vector<24x1536xbf16>
    %cst_24 = arith.constant 0.000000e+00 : f32
    %16 = vector.broadcast %cst_24 : f32 to vector<16x128xf32>
    %17 = vector.extract_strided_slice %15 {offsets = [0, 0], sizes = [16, 1536], strides = [1, 1]} : vector<24x1536xbf16> to vector<16x1536xbf16>
    %c0_25 = arith.constant 0 : index
    %c0_26 = arith.constant 0 : index
    %c0_27 = arith.constant 0 : index
    %18 = vector.load %arg2[%c0_25, %c0_26, %c0_27] : memref<3x1536x128xbf16, #tpu.memory_space<vmem>>, vector<1x1536x128xbf16>
    %19 = vector.shape_cast %18 : vector<1x1536x128xbf16> to vector<1536x128xbf16>
    %cst_28 = arith.constant dense<0.000000e+00> : vector<16x128xf32>
    %20 = tpu.matmul %17, %19, %cst_28 {dimension_numbers = #tpu.dot_dimension_numbers<[1], [0], [0], [1], [0, 0, 1, 1], [], []>} : vector<16x1536xbf16>, vector<1536x128xbf16>, vector<16x128xf32> -> vector<16x128xf32>
    %21 = arith.addf %16, %20 : vector<16x128xf32>
    %22 = vector.extract_strided_slice %15 {offsets = [4, 0], sizes = [16, 1536], strides = [1, 1]} : vector<24x1536xbf16> to vector<16x1536xbf16>
    %c1_29 = arith.constant 1 : index
    %c0_30 = arith.constant 0 : index
    %c0_31 = arith.constant 0 : index
    %23 = vector.load %arg2[%c1_29, %c0_30, %c0_31] : memref<3x1536x128xbf16, #tpu.memory_space<vmem>>, vector<1x1536x128xbf16>
    %24 = vector.shape_cast %23 : vector<1x1536x128xbf16> to vector<1536x128xbf16>
    %cst_32 = arith.constant dense<0.000000e+00> : vector<16x128xf32>
    %25 = tpu.matmul %22, %24, %cst_32 {dimension_numbers = #tpu.dot_dimension_numbers<[1], [0], [0], [1], [0, 0, 1, 1], [], []>} : vector<16x1536xbf16>, vector<1536x128xbf16>, vector<16x128xf32> -> vector<16x128xf32>
    %26 = arith.addf %21, %25 : vector<16x128xf32>
    %27 = vector.extract_strided_slice %15 {offsets = [8, 0], sizes = [16, 1536], strides = [1, 1]} : vector<24x1536xbf16> to vector<16x1536xbf16>
    %c2_33 = arith.constant 2 : index
    %c0_34 = arith.constant 0 : index
    %c0_35 = arith.constant 0 : index
    %28 = vector.load %arg2[%c2_33, %c0_34, %c0_35] : memref<3x1536x128xbf16, #tpu.memory_space<vmem>>, vector<1x1536x128xbf16>
    %29 = vector.shape_cast %28 : vector<1x1536x128xbf16> to vector<1536x128xbf16>
    %cst_36 = arith.constant dense<0.000000e+00> : vector<16x128xf32>
    %30 = tpu.matmul %27, %29, %cst_36 {dimension_numbers = #tpu.dot_dimension_numbers<[1], [0], [0], [1], [0, 0, 1, 1], [], []>} : vector<16x1536xbf16>, vector<1536x128xbf16>, vector<16x128xf32> -> vector<16x128xf32>
    %31 = arith.addf %26, %30 : vector<16x128xf32>
    %c0_37 = arith.constant 0 : index
    %c0_38 = arith.constant 0 : index
    %32 = vector.load %arg3[%c0_37, %c0_38] : memref<1x128xf32, #tpu.memory_space<vmem>>, vector<1x128xf32>
    %33 = vector.broadcast %32 : vector<1x128xf32> to vector<16x128xf32>
    %34 = arith.addf %31, %33 : vector<16x128xf32>
    %cst_39 = arith.constant 0.000000e+00 : f32
    %35 = vector.broadcast %cst_39 : f32 to vector<16x128xf32>
    %36 = arith.maximumf %34, %35 : vector<16x128xf32>
    %37 = vector.shape_cast %36 : vector<16x128xf32> to vector<4x4x128xf32>
    %38 = arith.truncf %37 : vector<4x4x128xf32> to vector<4x4x128xbf16>
    %c1_40 = arith.constant 1 : index
    %c1_41 = arith.constant 1 : index
    %c0_42 = arith.constant 0 : index
    %39 = vector.load %arg10[%c1_40, %c1_41, %c0_42] : memref<6x6x128xbf16, #tpu.memory_space<vmem>>, vector<4x4x128xbf16>
    tpu.vector_store %arg10[%c1_40, %c1_41, %c0_42], %38 {strides = array<i32>} : memref<6x6x128xbf16, #tpu.memory_space<vmem>>, vector<4x4x128xbf16>,
    %c0_43 = arith.constant 0 : index
    %c0_44 = arith.constant 0 : index
    %c0_45 = arith.constant 0 : index
    %40 = vector.load %arg10[%c0_43, %c0_44, %c0_45] : memref<6x6x128xbf16, #tpu.memory_space<vmem>>, vector<6x4x128xbf16>
    %41 = vector.shape_cast %40 : vector<6x4x128xbf16> to vector<24x128xbf16>
    %c0_46 = arith.constant 0 : index
    %c1_47 = arith.constant 1 : index
    %c0_48 = arith.constant 0 : index
    %42 = vector.load %arg10[%c0_46, %c1_47, %c0_48] : memref<6x6x128xbf16, #tpu.memory_space<vmem>>, vector<6x4x128xbf16>
    %43 = vector.shape_cast %42 : vector<6x4x128xbf16> to vector<24x128xbf16>
    %c0_49 = arith.constant 0 : index
    %c2_50 = arith.constant 2 : index
    %c0_51 = arith.constant 0 : index
    %44 = vector.load %arg10[%c0_49, %c2_50, %c0_51] : memref<6x6x128xbf16, #tpu.memory_space<vmem>>, vector<6x4x128xbf16>
    %45 = vector.shape_cast %44 : vector<6x4x128xbf16> to vector<24x128xbf16>
    %46 = tpu.concatenate %41, %43, %45 in 1 : vector<24x128xbf16>, vector<24x128xbf16>, vector<24x128xbf16> -> vector<24x384xbf16>
    %cst_52 = arith.constant 0.000000e+00 : f32
    %47 = vector.broadcast %cst_52 : f32 to vector<16x128xf32>
    %48 = vector.extract_strided_slice %46 {offsets = [0, 0], sizes = [16, 384], strides = [1, 1]} : vector<24x384xbf16> to vector<16x384xbf16>
    %c0_53 = arith.constant 0 : index
    %c0_54 = arith.constant 0 : index
    %c0_55 = arith.constant 0 : index
    %49 = vector.load %arg4[%c0_53, %c0_54, %c0_55] : memref<3x384x128xbf16, #tpu.memory_space<vmem>>, vector<1x384x128xbf16>
    %50 = vector.shape_cast %49 : vector<1x384x128xbf16> to vector<384x128xbf16>
    %cst_56 = arith.constant dense<0.000000e+00> : vector<16x128xf32>
    %51 = tpu.matmul %48, %50, %cst_56 {dimension_numbers = #tpu.dot_dimension_numbers<[1], [0], [0], [1], [0, 0, 1, 1], [], []>} : vector<16x384xbf16>, vector<384x128xbf16>, vector<16x128xf32> -> vector<16x128xf32>
    %52 = arith.addf %47, %51 : vector<16x128xf32>
    %53 = vector.extract_strided_slice %46 {offsets = [4, 0], sizes = [16, 384], strides = [1, 1]} : vector<24x384xbf16> to vector<16x384xbf16>
    %c1_57 = arith.constant 1 : index
    %c0_58 = arith.constant 0 : index
    %c0_59 = arith.constant 0 : index
    %54 = vector.load %arg4[%c1_57, %c0_58, %c0_59] : memref<3x384x128xbf16, #tpu.memory_space<vmem>>, vector<1x384x128xbf16>
    %55 = vector.shape_cast %54 : vector<1x384x128xbf16> to vector<384x128xbf16>
    %cst_60 = arith.constant dense<0.000000e+00> : vector<16x128xf32>
    %56 = tpu.matmul %53, %55, %cst_60 {dimension_numbers = #tpu.dot_dimension_numbers<[1], [0], [0], [1], [0, 0, 1, 1], [], []>} : vector<16x384xbf16>, vector<384x128xbf16>, vector<16x128xf32> -> vector<16x128xf32>
    %57 = arith.addf %52, %56 : vector<16x128xf32>
    %58 = vector.extract_strided_slice %46 {offsets = [8, 0], sizes = [16, 384], strides = [1, 1]} : vector<24x384xbf16> to vector<16x384xbf16>
    %c2_61 = arith.constant 2 : index
    %c0_62 = arith.constant 0 : index
    %c0_63 = arith.constant 0 : index
    %59 = vector.load %arg4[%c2_61, %c0_62, %c0_63] : memref<3x384x128xbf16, #tpu.memory_space<vmem>>, vector<1x384x128xbf16>
    %60 = vector.shape_cast %59 : vector<1x384x128xbf16> to vector<384x128xbf16>
    %cst_64 = arith.constant dense<0.000000e+00> : vector<16x128xf32>
    %61 = tpu.matmul %58, %60, %cst_64 {dimension_numbers = #tpu.dot_dimension_numbers<[1], [0], [0], [1], [0, 0, 1, 1], [], []>} : vector<16x384xbf16>, vector<384x128xbf16>, vector<16x128xf32> -> vector<16x128xf32>
    %62 = arith.addf %57, %61 : vector<16x128xf32>
    %c0_65 = arith.constant 0 : index
    %c0_66 = arith.constant 0 : index
    %63 = vector.load %arg5[%c0_65, %c0_66] : memref<1x128xf32, #tpu.memory_space<vmem>>, vector<1x128xf32>
    %64 = vector.broadcast %63 : vector<1x128xf32> to vector<16x128xf32>
    %65 = arith.addf %62, %64 : vector<16x128xf32>
    %66 = vector.shape_cast %65 : vector<16x128xf32> to vector<4x4x128xf32>
    %67 = arith.truncf %66 : vector<4x4x128xf32> to vector<4x4x128xbf16>
    %c1_67 = arith.constant 1 : index
    %c1_68 = arith.constant 1 : index
    %c0_69 = arith.constant 0 : index
    %68 = vector.load %arg11[%c1_67, %c1_68, %c0_69] : memref<6x6x128xbf16, #tpu.memory_space<vmem>>, vector<4x4x128xbf16>
    tpu.vector_store %arg11[%c1_67, %c1_68, %c0_69], %67 {strides = array<i32>} : memref<6x6x128xbf16, #tpu.memory_space<vmem>>, vector<4x4x128xbf16>,
    %c0_70 = arith.constant 0 : index
    %c0_71 = arith.constant 0 : index
    %c0_72 = arith.constant 0 : index
    %69 = vector.load %arg11[%c0_70, %c0_71, %c0_72] : memref<6x6x128xbf16, #tpu.memory_space<vmem>>, vector<6x4x128xbf16>
    %cst_73 = arith.constant 0.000000e+00 : bf16
    %70 = vector.broadcast %cst_73 : bf16 to vector<6x4x128xbf16>
    %71 = arith.maximumf %69, %70 : vector<6x4x128xbf16>
    %72 = vector.shape_cast %71 : vector<6x4x128xbf16> to vector<24x128xbf16>
    %c0_74 = arith.constant 0 : index
    %c1_75 = arith.constant 1 : index
    %c0_76 = arith.constant 0 : index
    %73 = vector.load %arg11[%c0_74, %c1_75, %c0_76] : memref<6x6x128xbf16, #tpu.memory_space<vmem>>, vector<6x4x128xbf16>
    %cst_77 = arith.constant 0.000000e+00 : bf16
    %74 = vector.broadcast %cst_77 : bf16 to vector<6x4x128xbf16>
    %75 = arith.maximumf %73, %74 : vector<6x4x128xbf16>
    %76 = vector.shape_cast %75 : vector<6x4x128xbf16> to vector<24x128xbf16>
    %c0_78 = arith.constant 0 : index
    %c2_79 = arith.constant 2 : index
    %c0_80 = arith.constant 0 : index
    %77 = vector.load %arg11[%c0_78, %c2_79, %c0_80] : memref<6x6x128xbf16, #tpu.memory_space<vmem>>, vector<6x4x128xbf16>
    %cst_81 = arith.constant 0.000000e+00 : bf16
    %78 = vector.broadcast %cst_81 : bf16 to vector<6x4x128xbf16>
    %79 = arith.maximumf %77, %78 : vector<6x4x128xbf16>
    %80 = vector.shape_cast %79 : vector<6x4x128xbf16> to vector<24x128xbf16>
    %81 = tpu.concatenate %72, %76, %80 in 1 : vector<24x128xbf16>, vector<24x128xbf16>, vector<24x128xbf16> -> vector<24x384xbf16>
    %cst_82 = arith.constant 0.000000e+00 : f32
    %82 = vector.broadcast %cst_82 : f32 to vector<16x128xf32>
    %83 = vector.extract_strided_slice %81 {offsets = [0, 0], sizes = [16, 384], strides = [1, 1]} : vector<24x384xbf16> to vector<16x384xbf16>
    %c0_83 = arith.constant 0 : index
    %c0_84 = arith.constant 0 : index
    %c0_85 = arith.constant 0 : index
    %c0_86 = arith.constant 0 : index
    %84 = vector.load %arg6[%c0_83, %c0_84, %c0_85, %c0_86] : memref<2x3x384x128xbf16, #tpu.memory_space<vmem>>, vector<1x1x384x128xbf16>
    %85 = vector.shape_cast %84 : vector<1x1x384x128xbf16> to vector<384x128xbf16>
    %cst_87 = arith.constant dense<0.000000e+00> : vector<16x128xf32>
    %86 = tpu.matmul %83, %85, %cst_87 {dimension_numbers = #tpu.dot_dimension_numbers<[1], [0], [0], [1], [0, 0, 1, 1], [], []>} : vector<16x384xbf16>, vector<384x128xbf16>, vector<16x128xf32> -> vector<16x128xf32>
    %87 = arith.addf %82, %86 : vector<16x128xf32>
    %88 = vector.extract_strided_slice %81 {offsets = [4, 0], sizes = [16, 384], strides = [1, 1]} : vector<24x384xbf16> to vector<16x384xbf16>
    %c0_88 = arith.constant 0 : index
    %c1_89 = arith.constant 1 : index
    %c0_90 = arith.constant 0 : index
    %c0_91 = arith.constant 0 : index
    %89 = vector.load %arg6[%c0_88, %c1_89, %c0_90, %c0_91] : memref<2x3x384x128xbf16, #tpu.memory_space<vmem>>, vector<1x1x384x128xbf16>
    %90 = vector.shape_cast %89 : vector<1x1x384x128xbf16> to vector<384x128xbf16>
    %cst_92 = arith.constant dense<0.000000e+00> : vector<16x128xf32>
    %91 = tpu.matmul %88, %90, %cst_92 {dimension_numbers = #tpu.dot_dimension_numbers<[1], [0], [0], [1], [0, 0, 1, 1], [], []>} : vector<16x384xbf16>, vector<384x128xbf16>, vector<16x128xf32> -> vector<16x128xf32>
    %92 = arith.addf %87, %91 : vector<16x128xf32>
    %93 = vector.extract_strided_slice %81 {offsets = [8, 0], sizes = [16, 384], strides = [1, 1]} : vector<24x384xbf16> to vector<16x384xbf16>
    %c0_93 = arith.constant 0 : index
    %c2_94 = arith.constant 2 : index
    %c0_95 = arith.constant 0 : index
    %c0_96 = arith.constant 0 : index
    %94 = vector.load %arg6[%c0_93, %c2_94, %c0_95, %c0_96] : memref<2x3x384x128xbf16, #tpu.memory_space<vmem>>, vector<1x1x384x128xbf16>
    %95 = vector.shape_cast %94 : vector<1x1x384x128xbf16> to vector<384x128xbf16>
    %cst_97 = arith.constant dense<0.000000e+00> : vector<16x128xf32>
    %96 = tpu.matmul %93, %95, %cst_97 {dimension_numbers = #tpu.dot_dimension_numbers<[1], [0], [0], [1], [0, 0, 1, 1], [], []>} : vector<16x384xbf16>, vector<384x128xbf16>, vector<16x128xf32> -> vector<16x128xf32>
    %97 = arith.addf %92, %96 : vector<16x128xf32>
    %cst_98 = arith.constant 0.000000e+00 : f32
    %98 = vector.broadcast %cst_98 : f32 to vector<16x128xf32>
    %99 = arith.maximumf %97, %98 : vector<16x128xf32>
    %100 = arith.truncf %99 : vector<16x128xf32> to vector<16x128xbf16>
    %c0_99 = arith.constant 0 : index
    %c0_100 = arith.constant 0 : index
    %c0_101 = arith.constant 0 : index
    %101 = vector.load %arg7[%c0_99, %c0_100, %c0_101] : memref<2x128x128xbf16, #tpu.memory_space<vmem>>, vector<1x128x128xbf16>
    %102 = vector.shape_cast %101 : vector<1x128x128xbf16> to vector<128x128xbf16>
    %cst_102 = arith.constant dense<0.000000e+00> : vector<16x128xf32>
    %103 = tpu.matmul %100, %102, %cst_102 {dimension_numbers = #tpu.dot_dimension_numbers<[1], [0], [0], [1], [0, 0, 1, 1], [], []>} : vector<16x128xbf16>, vector<128x128xbf16>, vector<16x128xf32> -> vector<16x128xf32>
    %c1_103 = arith.constant 1 : index
    %c1_104 = arith.constant 1 : index
    %c0_105 = arith.constant 0 : index
    %104 = vector.load %arg11[%c1_103, %c1_104, %c0_105] : memref<6x6x128xbf16, #tpu.memory_space<vmem>>, vector<4x4x128xbf16>
    %105 = vector.shape_cast %104 : vector<4x4x128xbf16> to vector<16x128xbf16>
    %106 = arith.extf %105 : vector<16x128xbf16> to vector<16x128xf32>
    %107 = arith.addf %103, %106 : vector<16x128xf32>
    %108 = vector.shape_cast %107 : vector<16x128xf32> to vector<4x4x128xf32>
    %109 = arith.truncf %108 : vector<4x4x128xf32> to vector<4x4x128xbf16>
    %c1_106 = arith.constant 1 : index
    %c1_107 = arith.constant 1 : index
    %c0_108 = arith.constant 0 : index
    %110 = vector.load %arg10[%c1_106, %c1_107, %c0_108] : memref<6x6x128xbf16, #tpu.memory_space<vmem>>, vector<4x4x128xbf16>
    tpu.vector_store %arg10[%c1_106, %c1_107, %c0_108], %109 {strides = array<i32>} : memref<6x6x128xbf16, #tpu.memory_space<vmem>>, vector<4x4x128xbf16>,
    %c0_109 = arith.constant 0 : index
    %c0_110 = arith.constant 0 : index
    %c0_111 = arith.constant 0 : index
    %111 = vector.load %arg10[%c0_109, %c0_110, %c0_111] : memref<6x6x128xbf16, #tpu.memory_space<vmem>>, vector<6x4x128xbf16>
    %cst_112 = arith.constant 0.000000e+00 : bf16
    %112 = vector.broadcast %cst_112 : bf16 to vector<6x4x128xbf16>
    %113 = arith.maximumf %111, %112 : vector<6x4x128xbf16>
    %114 = vector.shape_cast %113 : vector<6x4x128xbf16> to vector<24x128xbf16>
    %c0_113 = arith.constant 0 : index
    %c1_114 = arith.constant 1 : index
    %c0_115 = arith.constant 0 : index
    %115 = vector.load %arg10[%c0_113, %c1_114, %c0_115] : memref<6x6x128xbf16, #tpu.memory_space<vmem>>, vector<6x4x128xbf16>
    %cst_116 = arith.constant 0.000000e+00 : bf16
    %116 = vector.broadcast %cst_116 : bf16 to vector<6x4x128xbf16>
    %117 = arith.maximumf %115, %116 : vector<6x4x128xbf16>
    %118 = vector.shape_cast %117 : vector<6x4x128xbf16> to vector<24x128xbf16>
    %c0_117 = arith.constant 0 : index
    %c2_118 = arith.constant 2 : index
    %c0_119 = arith.constant 0 : index
    %119 = vector.load %arg10[%c0_117, %c2_118, %c0_119] : memref<6x6x128xbf16, #tpu.memory_space<vmem>>, vector<6x4x128xbf16>
    %cst_120 = arith.constant 0.000000e+00 : bf16
    %120 = vector.broadcast %cst_120 : bf16 to vector<6x4x128xbf16>
    %121 = arith.maximumf %119, %120 : vector<6x4x128xbf16>
    %122 = vector.shape_cast %121 : vector<6x4x128xbf16> to vector<24x128xbf16>
    %123 = tpu.concatenate %114, %118, %122 in 1 : vector<24x128xbf16>, vector<24x128xbf16>, vector<24x128xbf16> -> vector<24x384xbf16>
    %cst_121 = arith.constant 0.000000e+00 : f32
    %124 = vector.broadcast %cst_121 : f32 to vector<16x128xf32>
    %125 = vector.extract_strided_slice %123 {offsets = [0, 0], sizes = [16, 384], strides = [1, 1]} : vector<24x384xbf16> to vector<16x384xbf16>
    %c1_122 = arith.constant 1 : index
    %c0_123 = arith.constant 0 : index
    %c0_124 = arith.constant 0 : index
    %c0_125 = arith.constant 0 : index
    %126 = vector.load %arg6[%c1_122, %c0_123, %c0_124, %c0_125] : memref<2x3x384x128xbf16, #tpu.memory_space<vmem>>, vector<1x1x384x128xbf16>
    %127 = vector.shape_cast %126 : vector<1x1x384x128xbf16> to vector<384x128xbf16>
    %cst_126 = arith.constant dense<0.000000e+00> : vector<16x128xf32>
    %128 = tpu.matmul %125, %127, %cst_126 {dimension_numbers = #tpu.dot_dimension_numbers<[1], [0], [0], [1], [0, 0, 1, 1], [], []>} : vector<16x384xbf16>, vector<384x128xbf16>, vector<16x128xf32> -> vector<16x128xf32>
    %129 = arith.addf %124, %128 : vector<16x128xf32>
    %130 = vector.extract_strided_slice %123 {offsets = [4, 0], sizes = [16, 384], strides = [1, 1]} : vector<24x384xbf16> to vector<16x384xbf16>
    %c1_127 = arith.constant 1 : index
    %c1_128 = arith.constant 1 : index
    %c0_129 = arith.constant 0 : index
    %c0_130 = arith.constant 0 : index
    %131 = vector.load %arg6[%c1_127, %c1_128, %c0_129, %c0_130] : memref<2x3x384x128xbf16, #tpu.memory_space<vmem>>, vector<1x1x384x128xbf16>
    %132 = vector.shape_cast %131 : vector<1x1x384x128xbf16> to vector<384x128xbf16>
    %cst_131 = arith.constant dense<0.000000e+00> : vector<16x128xf32>
    %133 = tpu.matmul %130, %132, %cst_131 {dimension_numbers = #tpu.dot_dimension_numbers<[1], [0], [0], [1], [0, 0, 1, 1], [], []>} : vector<16x384xbf16>, vector<384x128xbf16>, vector<16x128xf32> -> vector<16x128xf32>
    %134 = arith.addf %129, %133 : vector<16x128xf32>
    %135 = vector.extract_strided_slice %123 {offsets = [8, 0], sizes = [16, 384], strides = [1, 1]} : vector<24x384xbf16> to vector<16x384xbf16>
    %c1_132 = arith.constant 1 : index
    %c2_133 = arith.constant 2 : index
    %c0_134 = arith.constant 0 : index
    %c0_135 = arith.constant 0 : index
    %136 = vector.load %arg6[%c1_132, %c2_133, %c0_134, %c0_135] : memref<2x3x384x128xbf16, #tpu.memory_space<vmem>>, vector<1x1x384x128xbf16>
    %137 = vector.shape_cast %136 : vector<1x1x384x128xbf16> to vector<384x128xbf16>
    %cst_136 = arith.constant dense<0.000000e+00> : vector<16x128xf32>
    %138 = tpu.matmul %135, %137, %cst_136 {dimension_numbers = #tpu.dot_dimension_numbers<[1], [0], [0], [1], [0, 0, 1, 1], [], []>} : vector<16x384xbf16>, vector<384x128xbf16>, vector<16x128xf32> -> vector<16x128xf32>
    %139 = arith.addf %134, %138 : vector<16x128xf32>
    %cst_137 = arith.constant 0.000000e+00 : f32
    %140 = vector.broadcast %cst_137 : f32 to vector<16x128xf32>
    %141 = arith.maximumf %139, %140 : vector<16x128xf32>
    %142 = arith.truncf %141 : vector<16x128xf32> to vector<16x128xbf16>
    %c1_138 = arith.constant 1 : index
    %c0_139 = arith.constant 0 : index
    %c0_140 = arith.constant 0 : index
    %143 = vector.load %arg7[%c1_138, %c0_139, %c0_140] : memref<2x128x128xbf16, #tpu.memory_space<vmem>>, vector<1x128x128xbf16>
    %144 = vector.shape_cast %143 : vector<1x128x128xbf16> to vector<128x128xbf16>
    %cst_141 = arith.constant dense<0.000000e+00> : vector<16x128xf32>
    %145 = tpu.matmul %142, %144, %cst_141 {dimension_numbers = #tpu.dot_dimension_numbers<[1], [0], [0], [1], [0, 0, 1, 1], [], []>} : vector<16x128xbf16>, vector<128x128xbf16>, vector<16x128xf32> -> vector<16x128xf32>
    %c1_142 = arith.constant 1 : index
    %c1_143 = arith.constant 1 : index
    %c0_144 = arith.constant 0 : index
    %146 = vector.load %arg10[%c1_142, %c1_143, %c0_144] : memref<6x6x128xbf16, #tpu.memory_space<vmem>>, vector<4x4x128xbf16>
    %147 = vector.shape_cast %146 : vector<4x4x128xbf16> to vector<16x128xbf16>
    %148 = arith.extf %147 : vector<16x128xbf16> to vector<16x128xf32>
    %149 = arith.addf %145, %148 : vector<16x128xf32>
    %cst_145 = arith.constant 0.000000e+00 : f32
    %150 = vector.broadcast %cst_145 : f32 to vector<16x128xf32>
    %151 = arith.maximumf %149, %150 : vector<16x128xf32>
    %152 = arith.truncf %151 : vector<16x128xf32> to vector<16x128xbf16>
    %c0_146 = arith.constant 0 : index
    %c0_147 = arith.constant 0 : index
    %c0_148 = arith.constant 0 : index
    %153 = vector.load %arg8[%c0_146, %c0_147, %c0_148] : memref<1x16x128xbf16, #tpu.memory_space<vmem>>, vector<1x16x128xbf16>
    %154 = vector.shape_cast %153 : vector<1x16x128xbf16> to vector<16x128xbf16>
    %155 = vector.shape_cast %152 : vector<16x128xbf16> to vector<1x16x128xbf16>
    tpu.vector_store %arg8[%c0_146, %c0_147, %c0_148], %155 {strides = array<i32>} : memref<1x16x128xbf16, #tpu.memory_space<vmem>>, vector<1x16x128xbf16>,
    return
  }
  func.func @transform_0(%arg0: i32) -> (i32, i32, i32, i32) {
    %c0_i32 = arith.constant 0 : i32
    %c0_i32_0 = arith.constant 0 : i32
    %c0_i32_1 = arith.constant 0 : i32
    %c0_i32_2 = arith.constant 0 : i32
    return %arg0, %c0_i32, %c0_i32_0, %c0_i32_1 : i32, i32, i32, i32
  }
  func.func @transform_1(%arg0: i32) -> (i32, i32, i32) {
    %c0_i32 = arith.constant 0 : i32
    %c0_i32_0 = arith.constant 0 : i32
    %c0_i32_1 = arith.constant 0 : i32
    %c0_i32_2 = arith.constant 0 : i32
    return %c0_i32, %c0_i32_0, %c0_i32_1 : i32, i32, i32
  }
  func.func @transform_2(%arg0: i32) -> (i32, i32) {
    %c0_i32 = arith.constant 0 : i32
    %c0_i32_0 = arith.constant 0 : i32
    %c0_i32_1 = arith.constant 0 : i32
    return %c0_i32, %c0_i32_0 : i32, i32
  }
  func.func @transform_3(%arg0: i32) -> (i32, i32, i32) {
    %c0_i32 = arith.constant 0 : i32
    %c0_i32_0 = arith.constant 0 : i32
    %c0_i32_1 = arith.constant 0 : i32
    %c0_i32_2 = arith.constant 0 : i32
    return %c0_i32, %c0_i32_0, %c0_i32_1 : i32, i32, i32
  }
  func.func @transform_4(%arg0: i32) -> (i32, i32) {
    %c0_i32 = arith.constant 0 : i32
    %c0_i32_0 = arith.constant 0 : i32
    %c0_i32_1 = arith.constant 0 : i32
    return %c0_i32, %c0_i32_0 : i32, i32
  }
  func.func @transform_5(%arg0: i32) -> (i32, i32, i32, i32) {
    %c0_i32 = arith.constant 0 : i32
    %c0_i32_0 = arith.constant 0 : i32
    %c0_i32_1 = arith.constant 0 : i32
    %c0_i32_2 = arith.constant 0 : i32
    %c0_i32_3 = arith.constant 0 : i32
    return %c0_i32, %c0_i32_0, %c0_i32_1, %c0_i32_2 : i32, i32, i32, i32
  }
  func.func @transform_6(%arg0: i32) -> (i32, i32, i32) {
    %c0_i32 = arith.constant 0 : i32
    %c0_i32_0 = arith.constant 0 : i32
    %c0_i32_1 = arith.constant 0 : i32
    %c0_i32_2 = arith.constant 0 : i32
    return %c0_i32, %c0_i32_0, %c0_i32_1 : i32, i32, i32
  }
  func.func @transform_7(%arg0: i32) -> (i32, i32, i32) {
    %c0_i32 = arith.constant 0 : i32
    %c0_i32_0 = arith.constant 0 : i32
    %c0_i32_1 = arith.constant 0 : i32
    return %arg0, %c0_i32, %c0_i32_0 : i32, i32, i32
  }
}

</mosaic_0001>

<bundles_post_ra>
// kernel: _lambda_.2
= control target key start
LH: loop header
LB: loop body
LE: loop exit
PB: predicated region body
PF: predicated region fallthrough
CT: control target
= control target key end

     0   :  { %8 = vsyncpa [#allocation3], 0  ;;  %s2403_s0 = inlined_call_operand.vmem [shape: bf16[2,10,10,16], index: 0, kind: input, shape index: {}]   ;;  %s2404_s1 = inlined_call_operand.hbm [shape: bf16[9,16,128], index: 1, kind: input, shape index: {}]   ;;  %s2405_s2 = inlined_call_operand.hbm [shape: f32[1,128], index: 2, kind: input, shape index: {}]   ;;  %s2406_s3 = inlined_call_operand.vmem [shape: bf16[2,64,128], index: 3, kind: output, shape index: {}]  }
   0x1   :  { %9 = vsyncpa [#allocation5], 0  ;;  %s2017_s12 = smov 0   ;;  %s2019_s13 = smov 0  }
   0x2   :  { %s2021_s14 = smov 0  }
   0x3 LB: > { %s1501_s15 = sadd.s32 4294967295, %s1991_s14   ;;  %s27_s16 = sadd.s32 1, %s1987_s13  ;;  %s1991_s14 = sphi %s2021_s14, %s15_s14   ;;  %s1987_s13 = sphi %s2019_s13, %s2420_s13   ;;  %s1983_s12 = sphi %s2017_s12, %s2419_s12  }
   0x4   : > { %p29_p0 = scmp.ge.s32.totalorder %s27_s16, 2  ;;  %p1503_p1 = scmp.ge.s32.totalorder %s1991_s14, 1 }
   0x5   : > { %p128_p2 = scmp.lt.s32.totalorder %s1991_s14, 3  ;;  %p2042_p4 = scmp.eq.s32.totalorder %s1501_s15, 0 }
   0x6   : > { %s2422_s16 = smov (%p29_p0, %s27_s16), 0  ;;  %s1993_s19 = smov [#allocation2]  }
   0x7   : > { %p2038_p3 = pnand %p1503_p1, %p128_p2  ;;  %s140_s20 = sshll.u32 %s1993_s19, 4  ;;  %s141_s20 = int_to_ptr.vmem [resolvable:$true] %s140_s20 }
   0x8   : > { %s2411_s18 = scalar_select %p2042_p4, 1, 0 }
   0x9   : > { %s2410_s17 = scalar_select %p2038_p3, 1, 0 }
   0xa   : > { %p1848_p5 = pneg %p2038_p3  ;;  %s1994_s22 = smov [#allocation4]  }
   0xb   : > { %s154_s23 = sshll.u32 %s1994_s22, 4  ;;  %s1905_s26 = scalar_lea.hbm %s2404_s1, 1152  ;;  %s2054_s23 = int_to_ptr.vmem [resolvable:$true] %s154_s23 }
   0xc   : > { %p2050_p6 = pnand %p2042_p4, %p1848_p5  ;;  %p1906_p7 = scmp.ne.s32.totalorder %s2404_s1, %s1905_s26 }
   0xd   : > { %p1912_p11 = scmp.lt.u32.totalorder %s1905_s26, %s2404_s1 }
   0xe   : > { %p1907_p8 = pneg %p2050_p6 }
  0x10   : > { %p1908_p9 = pnand %p1907_p8, %p1906_p7 }
  0x12   : > { %p1909_p10 = pneg %p1908_p9 }
  0x14   : > { %p1914_p12 = pnand %p1912_p11, %p1909_p10 }
  0x16   : > { %1917 = shalt.err (!%p1914_p12)
}
  0x17   : > { %s1918_s4 = scalar_lea.vmem %s141_s20, 1152  ;;  %p1926_p2 = scmp.lt.s32.totalorder %s141_s20, %s141_s20 }
  0x18   : > { %p1919_p13 = scmp.ne.s32.totalorder %s141_s20, %s1918_s4  ;;  %p1927_p5 = scmp.lt.s32.totalorder %s1918_s4, %s1918_s4 }
  0x1a   : > { %p1921_p0 = pnand %p1919_p13, %p1907_p8  ;;  %p1928_p4 = por %p1927_p5, %p1926_p2 }
  0x1c   : > { %p1922_p1 = pneg %p1921_p0 }
  0x1e   : > { %p1929_p3 = pnand %p1928_p4, %p1922_p1 }
  0x20   : > { %1932 = shalt.err (!%p1929_p3)
}
  0x21   : > { %s1995_s5 = smov 64   ;;  %s1996_s6 = smov 4  }
  0x22   : > { %1851 = dma.hbm_to_vmem [thread:$0]  (!%p2050_p6), %s2404_s1, 1152, %s141_s20, [#allocation3], %s1995_s5, %s1995_s5, %s1996_s6  }
  0x23   : > { %s1933_s11 = scalar_lea.hbm %s2405_s2, 16 }
  0x24   : > { %p1934_p7 = scmp.ne.s32.totalorder %s2405_s2, %s1933_s11  ;;  %p1940_p9 = scmp.lt.u32.totalorder %s1933_s11, %s2405_s2 }
  0x26   : > { %p1936_p3 = pnand %p1934_p7, %p1907_p8 }
  0x28   : > { %p1937_p4 = pneg %p1936_p3 }
  0x2a   : > { %p1942_p10 = pnand %p1940_p9, %p1937_p4 }
  0x2c   : > { %1945 = shalt.err (!%p1942_p10)
}
  0x2d   : > { %s1946_s20 = scalar_lea.vmem %s2054_s23, 16  ;;  %s1953_s25 = scalar_lea.vmem %s2054_s23, 32 }
  0x2e   : > { %p1947_p11 = scmp.ne.s32.totalorder %s2054_s23, %s1946_s20  ;;  %p1954_p0 = scmp.lt.s32.totalorder %s2054_s23, %s2054_s23 }
  0x2f   : > { %p1955_p1 = scmp.lt.s32.totalorder %s1953_s25, %s1946_s20 }
  0x30   : > { %p1949_p12 = pnand %p1947_p11, %p1907_p8 }
  0x31   : > { %p1956_p2 = por %p1955_p1, %p1954_p0 }
  0x32   : > { %p1950_p13 = pneg %p1949_p12 }
  0x34   : > { %p1957_p5 = pnand %p1956_p2, %p1950_p13 }
  0x36   : > { %1960 = shalt.err (!%p1957_p5)
}
  0x37   : > { %1854 = dma.hbm_to_vmem [thread:$0]  (!%p2050_p6), %s2405_s2, 16, %s2054_s23, [#allocation5]  }
  0x38   : > { %p2413_p7 = scmp.ne.s32.totalorder %s2410_s17, 0 }
  0x39   : > { %p2414_p8 = scmp.ne.s32.totalorder (!%p2413_p7), %s2411_s18, 0 }
  0x3a   : > { %175 = sbr.rel (%p2413_p7) target bundleno = 387 (0x183), region = 32 }
  0x41   : > { %1974 = dma.done.wait (%p2414_p8), [#allocation3], 1152  }
  0x42   : > { %1976 = vsyncadd (%p2414_p8), [#allocation3], 4294966144 }
  0x43   : > { %1978 = dma.done.wait (%p2414_p8), [#allocation5], 16  }
  0x44   : > { %1980 = vsyncadd (%p2414_p8), [#allocation5], 4294967280  ;;  %p207_p3 = scmp.lt.s32.totalorder %s1983_s12, 1  ;;  %vm247_vm0 = vsmask.f32 3328  ;;  %v1887_v0 = vld [vmem:[#allocation2 + $0x8] sm:$0xff]  }
  0x45   : > { %vm248_vm1 = vsmask.f32 7440  ;;  %v2124_v1 = vld [vmem:[#allocation2 + $0x20] sm:$0xff]   ;;  %1683 = vmatprep.subr.bf16.mxu1 %v1887_v0  ;;  %vm486_vm2 = vcmask 130048   ;;  %v2152_v21 = vld [vmem:[#allocation2 + $0x28] sm:$0xff]   ;;  %vm420_vm4 = vcmask 1042432  }
  0x46   : > { %s2424_s12 = smov (!%p207_p3, %s1983_s12), 1  ;;  %1723 = vmatprep.subr.bf16.mxu0 %v2124_v1  ;;  %1684 = vmatpush3.bf16.msra.mxu1 %v1887_v0  ;;  %v2147_v19 = vld [vmem:[#allocation2] sm:$0xff]   ;;  %vm2165_vm3 = vmor %vm247_vm0, %vm248_vm1  ;;  %vm421_vm5 = vcmask 1046532  }
  0x47   : > { %s1839_s17 = smul.u32 80, %s2424_s12  ;;  %1724 = vmatpush3.bf16.msra.mxu0 %v2124_v1  ;;  %1693 = vmatprep.subr.bf16.mxu1 %v2147_v19  ;;  %vm2236_vm6 = vmor %vm420_vm4, %vm421_vm5  ;;  %s1606_s18 = sshll.u32 %s2424_s12, 5 }
  0x48   : > { %1733 = vmatprep.subr.bf16.mxu0 %v2152_v21  ;;  %s220_s4 = scalar_lea.vmem %s2406_s3, %s1606_s18 }
  0x49   : > { %s2122_s28 = scalar_lea.vmem %s2403_s0, %s1839_s17 }
  0x4a   : > { %v2127_v2 = vld [vmem:[%s2122_s28] sm:$0xf]  ;;  %v2130_v3 = vld [vmem:[%s2122_s28 + $0x8] sm:$0xf]  ;;  %v2133_v4 = vld [vmem:[%s2122_s28 + $0x4] sm:$0x1] }
  0x4b   : > { %v2137_v5 = vld [vmem:[%s2122_s28 + $0xc] sm:$0x1]  ;;  %v251_v6 = vshrl.u32 %v2127_v2, 16  ;;  %v254_v7 = vshll.u32 %v2127_v2, 16  ;;  %v260_v8 = vshll.u32 %v2133_v4, 16  ;;  %v265_v9 = vshrl.u32 %v2130_v3, 16 }
  0x4c   : > { %v268_v10 = vshll.u32 %v2130_v3, 16  ;;  %v274_v11 = vshll.u32 %v2137_v5, 16  ;;  %v429_v12 = vrot.slane %v2137_v5, 5  ;;  %v2150_v20 = vld [vmem:[%s2122_s28 + $0x10] sm:$0xf] }
  0x4d   : > { %v253_v13 = vrot.slane %v251_v6, 4  ;;  %v256_v14 = vrot.slane %v254_v7, 5  ;;  %v262_v15 = vrot.slane %v260_v8, 5  ;;  %v267_v16 = vrot.slane %v265_v9, 4  ;;  %v2155_v23 = vld [vmem:[%s2122_s28 + $0x18] sm:$0xf] }
  0x4e   : > { %v270_v17 = vrot.slane %v268_v10, 5  ;;  %v276_v18 = vrot.slane %v274_v11, 5  ;;  %v2158_v24 = vld [vmem:[%s2122_s28 + $0x20] sm:$0xf]  ;;  %v2161_v25 = vld [vmem:[%s2122_s28 + $0x14] sm:$0x1] }
  0x4f   : > { %v257_v22 = vor.u32 %v256_v14, %v253_v13  ;;  %v2171_v28 = vld [vmem:[%s2122_s28 + $0x1c] sm:$0x1]  ;;  %v2174_v29 = vld [vmem:[%s2122_s28 + $0x24] sm:$0x1]  ;;  %v279_v30 = vshrl.u32 %v2150_v20, 16  ;;  %v282_v31 = vshll.u32 %v2150_v20, 16 }
  0x50   : > { %v271_v27 = vor.u32 %v270_v17, %v267_v16  ;;  %v288_v33 = vshll.u32 %v2161_v25, 16  ;;  %v293_v34 = vshrl.u32 %v2155_v23, 16  ;;  %v296_v35 = vshll.u32 %v2155_v23, 16  ;;  %v2191_v52 = vld [vmem:[%s2122_s28 + $0x28] sm:$0xf] }
  0x51   : > { %v258_v32 = vrot.slane %v257_v22, 4  ;;  %v281_v37 = vrot.slane %v279_v30, 4  ;;  %v284_v38 = vrot.slane %v282_v31, 5  ;;  %v302_v39 = vshll.u32 %v2171_v28, 16  ;;  %v2194_v53 = vld [vmem:[%s2122_s28 + $0x2c] sm:$0x1] }
  0x52   : > { %v272_v36 = vrot.slane %v271_v27, 4  ;;  %v290_v41 = vrot.slane %v288_v33, 5  ;;  %v295_v42 = vrot.slane %v293_v34, 4  ;;  %v298_v43 = vrot.slane %v296_v35, 5  ;;  %v2199_v58 = vld [vmem:[%s2122_s28 + $0x30] sm:$0xf] }
  0x53   : > { %v263_v40 = vsel %vm2165_vm3, %v258_v32, %v262_v15  ;;  %v285_v45 = vor.u32 %v284_v38, %v281_v37  ;;  %v304_v46 = vrot.slane %v302_v39, 5  ;;  %v307_v47 = vshrl.u32 %v2158_v24, 16  ;;  %v2204_v63 = vld [vmem:[%s2122_s28 + $0x38] sm:$0xf]  ;;  %v2212_v9 = vld [vmem:[%s2122_s28 + $0x34] sm:$0x1] }
  0x54   : > { %v277_v44 = vsel %vm2165_vm3, %v272_v36, %v276_v18  ;;  %v299_v49 = vor.u32 %v298_v43, %v295_v42  ;;  %v310_v50 = vshll.u32 %v2158_v24, 16  ;;  %v316_v51 = vshll.u32 %v2174_v29, 16  ;;  %v2217_v14 = vld [vmem:[%s2122_s28 + $0x3c] sm:$0x1]  ;;  %v391_v16 = vld [vmem:[%s2122_s28 + $0x8] sm:$0xe] }
  0x55   : > { %v1523_v48 = vcombine.low %v263_v40, %v277_v44  ;;  %v286_v54 = vrot.slane %v285_v45, 4  ;;  %v309_v55 = vrot.slane %v307_v47, 4  ;;  %v433_v56 = vrot.slane %v2161_v25, 5  ;;  %v392_v30 = vld [vmem:[%s2122_s28 + $0x10] sm:$0xe] }
  0x56   : > { %v437_v57 = vrot.slane %v2171_v28, 5  ;;  %v300_v59 = vrot.slane %v299_v49, 4  ;;  %v312_v60 = vrot.slane %v310_v50, 5  ;;  %v318_v61 = vrot.slane %v316_v51, 5  ;;  %v2224_v31 = vld [vmem:[#allocation2 + $0x10] sm:$0xff]  }
  0x57   : > { %1685 = vmatprep.mubr.msk.bf16.mxu1 %vm486_vm2, %v1523_v48  ;;  %v441_v62 = vrot.slane %v2174_v29, 5  ;;  %v291_v0 = vsel %vm2165_vm3, %v286_v54, %v290_v41  ;;  %v321_v6 = vshrl.u32 %v2191_v52, 16  ;;  %v324_v7 = vshll.u32 %v2191_v52, 16  ;;  %v393_v43 = vld [vmem:[%s2122_s28 + $0x18] sm:$0xe]  ;;  %v1891_v50 = vld [vmem:[#allocation2 + $0x30] sm:$0xff]  }
  0x58   : > { %v330_v8 = vshll.u32 %v2194_v53, 16  ;;  %v305_v10 = vsel %vm2165_vm3, %v300_v59, %v304_v46  ;;  %v313_v11 = vor.u32 %v312_v60, %v309_v55  ;;  %v1559_v13 = vcombine.low %v277_v44, %v291_v0  ;;  %v394_v49 = vld [vmem:[%s2122_s28 + $0x20] sm:$0xe]  ;;  %v395_v59 = vld [vmem:[%s2122_s28 + $0x28] sm:$0xe] }
  0x59   : > { %v335_v15 = vshrl.u32 %v2199_v58, 16  ;;  %v2221_v17 = vcombine.low %v291_v0, %v305_v10  ;;  %v323_v18 = vrot.slane %v321_v6, 4  ;;  %v326_v22 = vrot.slane %v324_v7, 5  ;;  %v396_v7 = vld [vmem:[%s2122_s28 + $0x30] sm:$0xe] }
  0x5a   : > { %v332_v27 = vrot.slane %v330_v8, 5  ;;  %v314_v32 = vrot.slane %v313_v11, 4  ;;  %1725 = vmatprep.mubr.msk.bf16.mxu0 %vm486_vm2, %v1559_v13  ;;  %v338_v34 = vshll.u32 %v2199_v58, 16  ;;  %v344_v35 = vshll.u32 %v2212_v9, 16  ;;  %v398_v28 = vld [vmem:[%s2122_s28 + $0x40] sm:$0xe] }
  0x5b   : > { %v337_v33 = vrot.slane %v335_v15, 4  ;;  %1686 = vmatmul.mubr.msk.bf16.vlgmr.msra.gmra.mrb[0].mxu1 %vm486_vm2, %v2221_v17  ;;  %v327_v36 = vor.u32 %v326_v22, %v323_v18  ;;  %v349_v37 = vshrl.u32 %v2204_v63, 16  ;;  %v352_v38 = vshll.u32 %v2204_v63, 16  ;;  %v235_v40 = vld [vmem:[%s2122_s28 + $0x40] sm:$0xf] }
  0x5c   : > { %v358_v39 = vshll.u32 %v2217_v14, 16  ;;  %v319_v41 = vsel %vm2165_vm3, %v314_v32, %v318_v61  ;;  %1694 = vmatpush3.bf16.msra.mxu1 %v2147_v19  ;;  %v340_v42 = vrot.slane %v338_v34, 5  ;;  %v1514_v44 = vrot.slane %v391_v16, 9 }
  0x5d   : > { %v1560_v45 = vcombine.low %v305_v10, %v319_v41  ;;  %v328_v46 = vrot.slane %v327_v36, 4  ;;  %v351_v47 = vrot.slane %v349_v37, 4  ;;  %v354_v48 = vrot.slane %v352_v38, 5  ;;  %1703 = vmatprep.subr.bf16.mxu1 %v2224_v31  ;;  %v1897_v37 = vld [vmem:[#allocation2 + $0x38] sm:$0xff]   ;;  %v390_v38 = vld [vmem:[%s2122_s28] sm:$0xe] }
  0x5e   : > { %v341_v51 = vor.u32 %v340_v42, %v337_v33  ;;  %v346_v54 = vrot.slane %v344_v35, 5  ;;  %v2250_v55 = vsel %vm2236_vm6, %v1514_v44, %v429_v12  ;;  %v1515_v19 = vrot.slane %v392_v30, 9  ;;  %v2303_v33 = vld [vmem:[%s2122_s28 + $0x44] sm:$0x1] }
  0x5f   : > { %1726 = vmatmul.mubr.msk.bf16.vlgmr.msra.gmra.mrb[0].mxu0 %vm486_vm2, %v1560_v45  ;;  %v2256_v60 = vsel %vm2165_vm3, %v328_v46, %v332_v27  ;;  %v355_v61 = vor.u32 %v354_v48, %v351_v47  ;;  %v360_v0 = vrot.slane %v358_v39, 5  ;;  %v1516_v6 = vrot.slane %v393_v43, 9  ;;  %v399_v39 = vld [vmem:[%s2122_s28 + $0x48] sm:$0xe]  ;;  %v1898_v46 = vld [vmem:[#allocation2 + $0x18] sm:$0xff]  }
  0x60   : > { %1734 = vmatpush3.bf16.msra.mxu0 %v2152_v21  ;;  %v2261_v5 = vcombine.low %v319_v41, %v2256_v60  ;;  %v342_v8 = vrot.slane %v341_v51, 4  ;;  %v434_v12 = vsel %vm2236_vm6, %v1515_v19, %v433_v56  ;;  %v1517_v10 = vrot.slane %v394_v49, 9  ;;  %v246_v47 = vld [vmem:[%s2122_s28 + $0x4c] sm:$0x1]  ;;  %v1900_v19 = vld [vmem:[#allocation2 + $0x40] sm:$0xff]  }
  0x61   : > { %v356_v11 = vrot.slane %v355_v61, 4  ;;  %v1568_v13 = vcombine.low %v2250_v55, %v434_v12  ;;  %1743 = vmatprep.subr.bf16.mxu0 %v1891_v50  ;;  %v1518_v15 = vrot.slane %v395_v59, 9  ;;  %v445_v25 = vrot.slane %v2194_v53, 5  ;;  %v236_v61 = vld [vmem:[%s2122_s28 + $0x48] sm:$0xf] }
  0x62   : > { %1689 = vmatprep.mubr.msk.bf16.mxu1 %vm486_vm2, %v2261_v5  ;;  %v2272_v21 = vsel %vm2165_vm3, %v342_v8, %v346_v54  ;;  %v1532_v16 = vcombine.low %v2127_v2, %v2130_v3  ;;  %v1519_v18 = vrot.slane %v396_v7, 9  ;;  %v449_v22 = vrot.slane %v2212_v9, 5  ;;  %v397_v2 = vld [vmem:[%s2122_s28 + $0x38] sm:$0xe] }
  0x63   : > { %v2277_v56 = vsel %vm2165_vm3, %v356_v11, %v360_v0  ;;  %1735 = vmatprep.mubr.msk.bf16.mxu0 %vm486_vm2, %v1568_v13  ;;  %v438_v53 = vsel %vm2236_vm6, %v1516_v6, %v437_v57  ;;  %v442_v30 = vsel %vm2236_vm6, %v1517_v10, %v441_v62  ;;  %v446_v9 = vsel %vm2236_vm6, %v1518_v15, %v445_v25 }
  0x64   : > { %v2285_v27 = vcombine.low %v2272_v21, %v2277_v56  ;;  %v2300_v32 = vsel %vm2236_vm6, %v1519_v18, %v449_v22  ;;  %v1569_v29 = vcombine.low %v438_v53, %v442_v30  ;;  %v1520_v57 = vrot.slane %v397_v2, 9 }
  0x65   : > { %v1570_v62 = vcombine.low %v446_v9, %v2300_v32  ;;  %v453_v34 = vrot.slane %v2217_v14, 5  ;;  %v1521_v35 = vrot.slane %v398_v28, 9  ;;  %v457_v36 = vrot.slane %v2303_v33, 5 }
  0x66   : > { %1690 = vmatmul.mubr.msk.bf16.gmra.mrb[4].mxu1 %vm486_vm2, %v2285_v27  ;;  %v1533_v41 = vcombine.low %v2150_v20, %v2155_v23  ;;  %v425_v42 = vrot.slane %v2133_v4, 5  ;;  %v1534_v43 = vcombine.low %v2158_v24, %v2191_v52  ;;  %v1513_v45 = vrot.slane %v390_v38, 9 }
  0x67   : > { %1695 = vmatprep.mubr.msk.bf16.mxu1 %vm486_vm2, %v1532_v16  ;;  %v454_v14 = vsel %vm2236_vm6, %v1520_v57, %v453_v34  ;;  %v2325_v44 = vsel %vm2236_vm6, %v1521_v35, %v457_v36  ;;  %v1522_v48 = vrot.slane %v399_v39, 9  ;;  %v461_v4 = vrot.slane %v246_v47, 5 }
  0x68   : > { %v1571_v49 = vcombine.low %v454_v14, %v2325_v44  ;;  %v426_v51 = vsel %vm2236_vm6, %v1513_v45, %v425_v42  ;;  %v1535_v54 = vcombine.low %v2199_v58, %v2204_v63  ;;  %v1542_v59 = vcombine.low %v434_v12, %v438_v53 }
  0x69   : > { %v1543_v0 = vcombine.low %v442_v30, %v446_v9  ;;  %v363_v6 = vshrl.u32 %v235_v40, 16  ;;  %v366_v7 = vshll.u32 %v235_v40, 16  ;;  %v377_v8 = vshrl.u32 %v236_v61, 16 }
  0x6a   : > { %v1577_v10 = vcombine.low %v235_v40, %v236_v61  ;;  %v1544_v25 = vcombine.low %v2300_v32, %v454_v14  ;;  %v1550_v16 = vcombine.low %v2130_v3, %v2150_v20  ;;  %v372_v22 = vshll.u32 %v2303_v33, 16 }
  0x6b   : > { %1736 = vmatmul.mubr.msk.bf16.vlgmr.msra.gmra.mrb[0].mxu0 %vm486_vm2, %v1569_v29  ;;  %v379_v12 = vrot.slane %v377_v8, 4  ;;  %v365_v13 = vrot.slane %v363_v6, 4  ;;  %v368_v15 = vrot.slane %v366_v7, 5  ;;  %v386_v30 = vshll.u32 %v246_v47, 16 }
  0x6c   : > { %1744 = vmatpush3.bf16.msra.mxu0 %v1891_v50  ;;  %1739 = vmatprep.mubr.msk.bf16.mxu0 %vm486_vm2, %v1570_v62  ;;  %v2334_v50 = vsel %vm2236_vm6, %v1522_v48, %v461_v4  ;;  %v374_v9 = vrot.slane %v372_v22, 5  ;;  %v1551_v29 = vcombine.low %v2155_v23, %v2158_v24  ;;  %v1552_v3 = vcombine.low %v2191_v52, %v2199_v58 }
  0x6d   : > { %1753 = vmatprep.subr.bf16.mxu0 %v1897_v37  ;;  %v369_v18 = vor.u32 %v368_v15, %v365_v13  ;;  %v388_v28 = vrot.slane %v386_v30, 5  ;;  %v1553_v24 = vcombine.low %v2204_v63, %v235_v40  ;;  %v1561_v52 = vcombine.low %v2256_v60, %v2272_v21 }
  0x6e   : > { %1696 = vmatmul.mubr.msk.bf16.vlgmr.msra.gmra.mrb[0].mxu1 %vm486_vm2, %v1533_v41  ;;  %v1589_v26 = vcombine.low %v2325_v44, %v2334_v50 }
  0x6f   : > { %1704 = vmatpush3.bf16.msra.mxu1 %v2224_v31  ;;  %1699 = vmatprep.mubr.msk.bf16.mxu1 %vm486_vm2, %v1534_v43  ;;  %v1541_v31 = vcombine.low %v426_v51, %v2250_v55  ;;  %v380_v55 = vshll.u32 %v236_v61, 16  ;;  %v370_v2 = vrot.slane %v369_v18, 4 }
  0x70   : > { %1713 = vmatprep.subr.bf16.mxu1 %v1898_v46 }
  0x71   : > { %v382_v11 = vrot.slane %v380_v55, 5  ;;  %v375_v20 = vsel %vm2165_vm3, %v370_v2, %v374_v9 }
  0x73   : > { %1740 = vmatmul.mubr.msk.bf16.gmra.mrb[4].mxu0 %vm486_vm2, %v1571_v49  ;;  %v383_v53 = vor.u32 %v382_v11, %v379_v12 }
  0x74   : > { %1745 = vmatprep.mubr.msk.bf16.mxu0 %vm486_vm2, %v1533_v41 }
  0x75   : > { %v384_v32 = vrot.slane %v383_v53, 4 }
  0x76   : > { %1700 = vmatmul.mubr.msk.bf16.gmra.mrb[4].mxu1 %vm486_vm2, %v1535_v54 }
  0x77   : > { %1705 = vmatprep.mubr.msk.bf16.mxu1 %vm486_vm2, %v1541_v31 }
  0x7b   : > { %1746 = vmatmul.mubr.msk.bf16.vlgmr.msra.gmra.mrb[0].mxu0 %vm486_vm2, %v1534_v43 }
  0x7c   : > { %1754 = vmatpush3.bf16.msra.mxu0 %v1897_v37  ;;  %1749 = vmatprep.mubr.msk.bf16.mxu0 %vm486_vm2, %v1535_v54 }
  0x7d   : > { %1763 = vmatprep.subr.bf16.mxu0 %v1900_v19 }
  0x7e   : > { %1706 = vmatmul.mubr.msk.bf16.vlgmr.msra.gmra.mrb[0].mxu1 %vm486_vm2, %v1542_v59 }
  0x7f   : > { %1714 = vmatpush3.bf16.msra.mxu1 %v1898_v46  ;;  %1709 = vmatprep.mubr.msk.bf16.mxu1 %vm486_vm2, %v1543_v0 }
  0x80   : > { %1773 = vmatprep.subr.bf16.mxu1 %v2124_v1 }
  0x83   : > { %1750 = vmatmul.mubr.msk.bf16.gmra.mrb[4].mxu0 %vm486_vm2, %v1577_v10 }
  0x84   : > { %1755 = vmatprep.mubr.msk.bf16.mxu0 %vm486_vm2, %v2221_v17  ;;  %v389_v17 = vsel %vm2165_vm3, %v384_v32, %v388_v28 }
  0x85   : > { %v1583_v23 = vcombine.low %v375_v20, %v389_v17 }
  0x86   : > { %1710 = vmatmul.mubr.msk.bf16.gmra.mrb[4].mxu1 %vm486_vm2, %v1544_v25 }
  0x87   : > { %1715 = vmatprep.mubr.msk.bf16.mxu1 %vm486_vm2, %v1550_v16 }
  0x8b   : > { %1756 = vmatmul.mubr.msk.bf16.vlgmr.msra.gmra.mrb[0].mxu0 %vm486_vm2, %v2261_v5 }
  0x8c   : > { %1764 = vmatpush3.bf16.msra.mxu0 %v1900_v19  ;;  %1759 = vmatprep.mubr.msk.bf16.mxu0 %vm486_vm2, %v2285_v27  ;;  %v1595_v27 = vld [vmem:[#allocation4] ss:$0 sm:$0xff] }
  0x8e   : > { %1716 = vmatmul.mubr.msk.bf16.vlgmr.msra.gmra.mrb[0].mxu1 %vm486_vm2, %v1551_v29 }
  0x8f   : > { %1774 = vmatpush3.bf16.msra.mxu1 %v2124_v1  ;;  %1719 = vmatprep.mubr.msk.bf16.mxu1 %vm486_vm2, %v1552_v3  ;;  %v1562_v1 = vcombine.low %v2277_v56, %v375_v20 }
  0x93   : > { %1760 = vmatmul.mubr.msk.bf16.gmra.mrb[4].mxu0 %vm486_vm2, %v1583_v23 }
  0x94   : > { %1765 = vmatprep.mubr.msk.bf16.mxu0 %vm486_vm2, %v1542_v59 }
  0x96   : > { %1720 = vmatmul.mubr.msk.bf16.gmra.mrb[4].mxu1 %vm486_vm2, %v1553_v24 }
  0x97   : > { %1729 = vmatprep.mubr.msk.bf16.mxu1 %vm486_vm2, %v1561_v52 }
  0x9b   : > { %1766 = vmatmul.mubr.msk.bf16.vlgmr.msra.gmra.mrb[0].mxu0 %vm486_vm2, %v1543_v0 }
  0x9c   : > { %1769 = vmatprep.mubr.msk.bf16.mxu0 %vm486_vm2, %v1544_v25 }
  0xa2   : > { %1730 = vmatmul.mubr.msk.bf16.vlgmr.msra.gmra.mrb[4].mxu1 %vm486_vm2, %v1562_v1 }
  0xa3   : > { %1770 = vmatmul.mubr.msk.bf16.gmra.mrb[4].mxu0 %vm486_vm2, %v1589_v26 }
 0x161   : > { %v1717_v58 = vpop.f32.mrb[0].mxu1 }
 0x162   : > { %v834_v63 = vpop.f32.mrb[1].mxu1 }
 0x163   : > { %v1718_v60 = vpop.f32.mrb[2].mxu1 }
 0x164   : > { %v837_v5 = vpop.f32.mrb[3].mxu1 }
 0x16e   : > { %v1767_v21 = vpop.f32.mrb[0].mxu0 }
 0x16f   : > { %v1775_v33 = vadd.f32 %v1767_v21, %v1717_v58  ;;  %v1294_v57 = vpop.f32.mrb[1].mxu0 }
 0x170   : > { %v1776_v62 = vadd.f32 %v1294_v57, %v834_v63  ;;  %v1768_v34 = vpop.f32.mrb[2].mxu0 }
 0x171   : > { %v1342_v35 = vadd.f32 %v1775_v33, %v1595_v27  ;;  %v1777_v56 = vadd.f32 %v1768_v34, %v1718_v60  ;;  %v1297_v36 = vpop.f32.mrb[3].mxu0 }
 0x172   : > { %v1340_v37 = vadd.f32 %v1776_v62, %v1595_v27  ;;  %v1778_v38 = vadd.f32 %v1297_v36, %v837_v5 }
 0x173   : > { %v1343_v39 = vadd.f32 %v1777_v56, %v1595_v27  ;;  %v1350_v42 = vmax.f32 %v1342_v35, 0.0 }
 0x174   : > { %v1341_v41 = vadd.f32 %v1778_v38, %v1595_v27  ;;  %v1348_v44 = vmax.f32 %v1340_v37, 0.0 }
 0x175   : > { %v1351_v43 = vmax.f32 %v1343_v39, 0.0  ;;  %v1731_v14 = vpop.f32.mrb[4].mxu1 }
 0x176   : > { %v1349_v45 = vmax.f32 %v1341_v41, 0.0  ;;  %v1771_v46 = vpop.f32.mrb[4].mxu0  ;;  %v949_v47 = vpop.f32.mrb[5].mxu1 }
 0x177   : > { %v1623_v48 = vpack.c.bf16 %v1351_v43, %v1350_v42  ;;  %v1779_v4 = vadd.f32 %v1771_v46, %v1731_v14  ;;  %v1310_v49 = vpop.f32.mrb[5].mxu0  ;;  %v1732_v50 = vpop.f32.mrb[6].mxu1 }
 0x178   : > { %v1618_v51 = vpack.c.bf16 %v1349_v45, %v1348_v44  ;;  %v1780_v54 = vadd.f32 %v1310_v49, %v949_v47  ;;  %v1772_v31 = vpop.f32.mrb[6].mxu0  ;;  %v952_v19 = vpop.f32.mrb[7].mxu1 }
 0x179   : > { %1635 = vst [vmem:[%s220_s4 + $0x8] sm:$0xff] %v1623_v48   ;;  %v1346_v59 = vadd.f32 %v1779_v4, %v1595_v27  ;;  %v1781_v40 = vadd.f32 %v1772_v31, %v1732_v50  ;;  %v1313_v61 = vpop.f32.mrb[7].mxu0 }
 0x17a   : > { %1619 = vst [vmem:[%s220_s4] sm:$0xff] %v1618_v51   ;;  %v1344_v0 = vadd.f32 %v1780_v54, %v1595_v27  ;;  %v1782_v6 = vadd.f32 %v1313_v61, %v952_v19 }
 0x17b   : > { %v1347_v7 = vadd.f32 %v1781_v40, %v1595_v27  ;;  %v1354_v55 = vmax.f32 %v1346_v59, 0.0 }
 0x17c   : > { %v1345_v8 = vadd.f32 %v1782_v6, %v1595_v27  ;;  %v1352_v12 = vmax.f32 %v1344_v0, 0.0 }
 0x17d   : > { %v1355_v10 = vmax.f32 %v1347_v7, 0.0 }
 0x17e   : > { %v1353_v11 = vmax.f32 %v1345_v8, 0.0 }
 0x17f   : > { %v1633_v13 = vpack.c.bf16 %v1355_v10, %v1354_v55 }
 0x180   : > { %v1628_v15 = vpack.c.bf16 %v1353_v11, %v1352_v12 }
 0x181   : > { %1637 = vst [vmem:[%s220_s4 + $0x18] sm:$0xff] %v1633_v13  }
 0x182   : > { %1636 = vst [vmem:[%s220_s4 + $0x10] sm:$0xff] %v1628_v15  }
 0x183 PF: > { %s15_s14 = sadd.s32 1, %s1991_s14   ;;  %s2419_s12 = smov %s1987_s13 }
 0x184   : > { %p12_p6 = scmp.ge.s32.totalorder %s15_s14, 4   ;;  %s2420_s13 = smov %s2422_s16 }
 0x186   :  { %14 = sbr.rel (!%p12_p6) target bundleno = 3 (0x3), region = 80 }
 0x18d   :  { %1426 = vsyncpa [#allocation3], 1 }
 0x18e   :  { %1428 = vsyncpa [#allocation3 + $0x1], 1 }
 0x18f   :  { %1429 = vsyncpa [#allocation5], 1 }

// kernel: _lambda_.3
= control target key start
LH: loop header
LB: loop body
LE: loop exit
PB: predicated region body
PF: predicated region fallthrough
CT: control target
= control target key end

     0   :  { %12 = vsyncpa [#allocation6], 0  ;;  %s12910_s0 = inlined_call_operand.vmem [shape: bf16[2,4,4,512], index: 0, kind: input, shape index: {}]   ;;  %s12911_s1 = inlined_call_operand.hbm [shape: bf16[3,1536,128], index: 1, kind: input, shape index: {}]   ;;  %s12912_s2 = inlined_call_operand.hbm [shape: f32[1,128], index: 2, kind: input, shape index: {}]   ;;  %s12913_s3 = inlined_call_operand.vmem [shape: bf16[3,384,128], index: 3, kind: input, shape index: {}]   ;;  %s12914_s4 = inlined_call_operand.hbm [shape: f32[1,128], index: 4, kind: input, shape index: {}]   ;;  %s12915_s5 = inlined_call_operand.vmem [shape: bf16[2,3,384,128], index: 5, kind: input, shape index: {}]   ;;  %s12916_s6 = inlined_call_operand.hbm [shape: bf16[2,128,128], index: 6, kind: input, shape index: {}]   ;;  %s12917_s7 = inlined_call_operand.vmem [shape: bf16[2,16,128], index: 7, kind: output, shape index: {}]  }
   0x1   :  { %13 = vsyncpa [#allocation8], 0 }
   0x2   :  { %14 = vsyncpa [#allocation11], 0  ;;  %s11333_s24 = smov 0  }
   0x3 LB: > { %s11283_s25 = smov [#allocation7]   ;;  %s11339_s27 = sadd.s32 4294967295, %s11281_s24   ;;  %s11281_s24 = sphi %s11333_s24, %s20_s24  }
   0x4   : > { %s229_s26 = sshll.u32 %s11283_s25, 4  ;;  %p8629_p0 = scmp.ge.s32.totalorder %s11281_s24, 1  ;;  %s11344_s26 = int_to_ptr.vmem [resolvable:$true] %s229_s26 }
   0x5   : > { %p203_p1 = scmp.lt.s32.totalorder %s11281_s24, 3  ;;  %p12918_p2 = scmp.eq.s32.totalorder %s11339_s27, 0 }
   0x6   : > { %s11284_s29 = smov [#allocation5]   ;;  %s11285_s9 = smov [#allocation9]  }
   0x7   : > { %p11346_p3 = pnand %p8629_p0, %p203_p1  ;;  %s215_s30 = sshll.u32 %s11284_s29, 4  ;;  %s11352_s30 = int_to_ptr.vmem [resolvable:$true] %s215_s30 }
   0x8   : > { %s243_s10 = sshll.u32 %s11285_s9, 4  ;;  %s11286_s11 = smov [#allocation10]   ;;  %s11360_s10 = int_to_ptr.vmem [resolvable:$true] %s243_s10 }
   0x9   : > { %s12920_s28 = scalar_select %p11346_p3, 1, 0 }
   0xa   : > { %p10582_p4 = pneg %p11346_p3  ;;  %s11362_s12 = sshll.u32 %s11286_s11, 4  ;;  %s257_s12 = int_to_ptr.vmem [resolvable:$true] %s11362_s12 }
   0xb   : > { %s11151_s15 = scalar_lea.hbm %s12912_s2, 16 }
   0xc   : > { %p11356_p5 = pnand %p12918_p2, %p10582_p4  ;;  %p11152_p6 = scmp.ne.s32.totalorder %s12912_s2, %s11151_s15 }
   0xd   : > { %p11158_p10 = scmp.lt.u32.totalorder %s11151_s15, %s12912_s2 }
   0xe   : > { %p11372_p7 = pneg %p11356_p5 }
  0x10   : > { %p11154_p8 = pnand %p11372_p7, %p11152_p6 }
  0x12   : > { %p11155_p9 = pneg %p11154_p8 }
  0x14   : > { %p11160_p11 = pnand %p11158_p10, %p11155_p9 }
  0x16   : > { %11163 = shalt.err (!%p11160_p11)
}
  0x17   : > { %s11164_s21 = scalar_lea.vmem %s11344_s26, 16  ;;  %s11171_s22 = scalar_lea.vmem %s11344_s26, 32 }
  0x18   : > { %p11165_p12 = scmp.ne.s32.totalorder %s11344_s26, %s11164_s21  ;;  %p11172_p1 = scmp.lt.s32.totalorder %s11344_s26, %s11344_s26 }
  0x19   : > { %p11173_p4 = scmp.lt.s32.totalorder %s11171_s22, %s11164_s21 }
  0x1a   : > { %p11167_p13 = pnand %p11165_p12, %p11372_p7 }
  0x1b   : > { %p11174_p6 = por %p11173_p4, %p11172_p1 }
  0x1c   : > { %p11168_p0 = pneg %p11167_p13 }
  0x1e   : > { %p11175_p8 = pnand %p11174_p6, %p11168_p0 }
  0x20   : > { %11178 = shalt.err (!%p11175_p8)
}
  0x21   : > { %10588 = dma.hbm_to_vmem [thread:$0]  (!%p11356_p5), %s12912_s2, 16, %s11344_s26, [#allocation8]  }
  0x22   : > { %s11179_s11 = scalar_lea.hbm %s12911_s1, 36864 }
  0x23   : > { %p11180_p9 = scmp.ne.s32.totalorder %s12911_s1, %s11179_s11  ;;  %p11186_p12 = scmp.lt.u32.totalorder %s11179_s11, %s12911_s1 }
  0x25   : > { %p11182_p10 = pnand %p11180_p9, %p11372_p7 }
  0x27   : > { %p11183_p11 = pneg %p11182_p10 }
  0x29   : > { %p11188_p13 = pnand %p11186_p12, %p11183_p11 }
  0x2b   : > { %11191 = shalt.err (!%p11188_p13)
}
  0x2c   : > { %s11192_s26 = scalar_lea.vmem %s11352_s30, 36864  ;;  %p11200_p6 = scmp.lt.s32.totalorder %s11352_s30, %s11352_s30 }
  0x2d   : > { %p11193_p0 = scmp.ne.s32.totalorder %s11352_s30, %s11192_s26  ;;  %p11201_p8 = scmp.lt.s32.totalorder %s11192_s26, %s11192_s26 }
  0x2f   : > { %p11195_p1 = pnand %p11193_p0, %p11372_p7  ;;  %p11202_p9 = por %p11201_p8, %p11200_p6 }
  0x31   : > { %p11196_p4 = pneg %p11195_p1 }
  0x33   : > { %p11203_p10 = pnand %p11202_p9, %p11196_p4 }
  0x35   : > { %11206 = shalt.err (!%p11203_p10)
}
  0x36   : > { %s11287_s17 = smov 64   ;;  %s11288_s19 = smov 4  }
  0x37   : > { %10585 = dma.hbm_to_vmem [thread:$0]  (!%p11356_p5), %s12911_s1, 36864, %s11352_s30, [#allocation6], %s11287_s17, %s11287_s17, %s11288_s19  }
  0x38   : > { %s11207_s25 = scalar_lea.hbm %s12914_s4, 16 }
  0x39   : > { %p11208_p11 = scmp.ne.s32.totalorder %s12914_s4, %s11207_s25  ;;  %p11214_p0 = scmp.lt.u32.totalorder %s11207_s25, %s12914_s4 }
  0x3b   : > { %p11210_p12 = pnand %p11208_p11, %p11372_p7 }
  0x3d   : > { %p11211_p13 = pneg %p11210_p12 }
  0x3f   : > { %p11216_p1 = pnand %p11214_p0, %p11211_p13 }
  0x41   : > { %11219 = shalt.err (!%p11216_p1)
}
  0x42   : > { %s11220_s30 = scalar_lea.vmem %s11360_s10, 16  ;;  %s11227_s14 = scalar_lea.vmem %s11360_s10, 32 }
  0x43   : > { %p11221_p4 = scmp.ne.s32.totalorder %s11360_s10, %s11220_s30  ;;  %p11228_p9 = scmp.lt.s32.totalorder %s11360_s10, %s11360_s10 }
  0x44   : > { %p11229_p10 = scmp.lt.s32.totalorder %s11227_s14, %s11220_s30 }
  0x45   : > { %p11223_p6 = pnand %p11221_p4, %p11372_p7 }
  0x46   : > { %p11230_p11 = por %p11229_p10, %p11228_p9 }
  0x47   : > { %p11224_p8 = pneg %p11223_p6 }
  0x49   : > { %p11231_p12 = pnand %p11230_p11, %p11224_p8 }
  0x4b   : > { %11234 = shalt.err (!%p11231_p12)
}
  0x4c   : > { %10591 = dma.hbm_to_vmem [thread:$0]  (!%p11356_p5), %s12914_s4, 16, %s11360_s10, [#allocation8]  }
  0x4d   : > { %s11235_s21 = scalar_lea.hbm %s12916_s6, 2048 }
  0x4e   : > { %p11236_p13 = scmp.ne.s32.totalorder %s12916_s6, %s11235_s21  ;;  %p11242_p4 = scmp.lt.u32.totalorder %s11235_s21, %s12916_s6 }
  0x50   : > { %p11238_p0 = pnand %p11236_p13, %p11372_p7 }
  0x52   : > { %p11239_p1 = pneg %p11238_p0 }
  0x54   : > { %p11244_p6 = pnand %p11242_p4, %p11239_p1 }
  0x56   : > { %11247 = shalt.err (!%p11244_p6)
}
  0x57   : > { %s11248_s9 = scalar_lea.vmem %s257_s12, 2048  ;;  %p11256_p11 = scmp.lt.s32.totalorder %s257_s12, %s257_s12 }
  0x58   : > { %p11249_p8 = scmp.ne.s32.totalorder %s257_s12, %s11248_s9  ;;  %p11257_p12 = scmp.lt.s32.totalorder %s11248_s9, %s11248_s9 }
  0x5a   : > { %p11251_p9 = pnand %p11249_p8, %p11372_p7  ;;  %p11258_p2 = por %p11257_p12, %p11256_p11 }
  0x5c   : > { %p11252_p10 = pneg %p11251_p9 }
  0x5e   : > { %p11259_p3 = pnand %p11258_p2, %p11252_p10 }
  0x60   : > { %11262 = shalt.err (!%p11259_p3)
}
  0x61   : > { %10594 = dma.hbm_to_vmem [thread:$0]  (!%p11356_p5), %s12916_s6, 2048, %s257_s12, [#allocation11], %s11287_s17, %s11287_s17, %s11288_s19  }
  0x62   : > { %p12923_p13 = scmp.ne.s32.totalorder %s12920_s28, 0 }
  0x63   : > { %p12924_p7 = scmp.eq.s32.totalorder (!%p12923_p13), %s11339_s27, 0 }
  0x64   : > { %280 = sbr.rel (%p12923_p13) target bundleno = 2110 (0x83e), region = 48 }
  0x6b   : > { %11268 = dma.done.wait (%p12924_p7), [#allocation6], 36864   ;;  %p12925_p0 = pmov %p12924_p7 }
  0x6d   : > { %11270 = vsyncadd (%p12925_p0), [#allocation6], 4294930432  ;;  %p12926_p2 = pmov %p12925_p0 }
  0x6e   : > { %p12927_p3 = pmov %p12925_p0 }
  0x6f   : > { %11272 = dma.done.wait (%p12926_p2), [#allocation8], 32  }
  0x70   : > { %11274 = vsyncadd (%p12927_p3), [#allocation8], 4294967264  ;;  %p12928_p1 = pmov %p12925_p0 }
  0x71   : > { %p12929_p5 = pmov %p12925_p0 }
  0x72   : > { %11276 = dma.done.wait (%p12928_p1), [#allocation11], 2048  }
  0x73   : > { %11278 = vsyncadd (%p12929_p5), [#allocation11], 4294965248  ;;  %v11289_v0 = vmov 0   ;;  %v10621_v1 = vld [vmem:[#allocation5 + $0x340] sm:$0xff]   ;;  %v10625_v5 = vld [vmem:[#allocation5 + $0x348] sm:$0xff]   ;;  %p324_p4 = scmp.lt.s32.totalorder %s11339_s27, 1  ;;  %v359_v25 = vlaneseq }
  0x74   : > { %335 = vst [vmem:[#allocation2] sm:$0x77] %v11289_v0  ;;  %337 = vst [vmem:[#allocation2 + $0x10] sm:$0x77] %v11289_v0  ;;  %v10622_v2 = vld [vmem:[#allocation5 + $0x3c0] sm:$0xff]   ;;  %9625 = vmatprep.subr.bf16.mxu0 %v10621_v1  ;;  %v10626_v6 = vld [vmem:[#allocation5 + $0x3c8] sm:$0xff]  }
  0x75   : > { %339 = vst [vmem:[#allocation2 + $0x20] sm:$0x77] %v11289_v0  ;;  %341 = vst [vmem:[#allocation2 + $0x30] sm:$0x77] %v11289_v0  ;;  %v10623_v3 = vld [vmem:[#allocation5 + $0x300] sm:$0xff]   ;;  %9647 = vmatprep.subr.bf16.mxu1 %v10622_v2  ;;  %v10627_v7 = vld [vmem:[#allocation5 + $0x308] sm:$0xff]  }
  0x76   : > { %343 = vst [vmem:[#allocation2 + $0x40] sm:$0x77] %v11289_v0  ;;  %345 = vst [vmem:[#allocation2 + $0x50] sm:$0x77] %v11289_v0  ;;  %v10624_v4 = vld [vmem:[#allocation5 + $0x380] sm:$0xff]   ;;  %9626 = vmatpush3.bf16.msra.mxu0 %v10623_v3  ;;  %v10628_v8 = vld [vmem:[#allocation5 + $0x388] sm:$0xff]  }
  0x77   : > { %336 = vst [vmem:[#allocation2 + $0x8] sm:$0x77] %v11289_v0  ;;  %338 = vst [vmem:[#allocation2 + $0x18] sm:$0x77] %v11289_v0  ;;  %9648 = vmatpush3.bf16.msra.mxu1 %v10624_v4  ;;  %9627 = vmatprep.subr.bf16.mxu0 %v10625_v5  ;;  %v10629_v9 = vld [vmem:[#allocation5 + $0x350] sm:$0xff]   ;;  %v10633_v13 = vld [vmem:[#allocation5 + $0x358] sm:$0xff]  }
  0x78   : > { %340 = vst [vmem:[#allocation2 + $0x28] sm:$0x77] %v11289_v0  ;;  %342 = vst [vmem:[#allocation2 + $0x38] sm:$0x77] %v11289_v0  ;;  %9649 = vmatprep.subr.bf16.mxu1 %v10626_v6  ;;  %v10630_v10 = vld [vmem:[#allocation5 + $0x3d0] sm:$0xff]   ;;  %v10634_v14 = vld [vmem:[#allocation5 + $0x3d8] sm:$0xff]  }
  0x79   : > { %344 = vst [vmem:[#allocation2 + $0x48] sm:$0x77] %v11289_v0  ;;  %346 = vst [vmem:[#allocation2 + $0x58] sm:$0x77] %v11289_v0  ;;  %v10631_v11 = vld [vmem:[#allocation5 + $0x310] sm:$0xff]   ;;  %v10635_v15 = vld [vmem:[#allocation5 + $0x318] sm:$0xff]  }
  0x7a   : > { %511 = vst [vmem:[#allocation3] sm:$0x7] %v11289_v0  ;;  %512 = vst [vmem:[#allocation3 + $0x4] sm:$0x7] %v11289_v0  ;;  %9628 = vmatpush3.bf16.msra.mxu0 %v10627_v7  ;;  %v10632_v12 = vld [vmem:[#allocation5 + $0x390] sm:$0xff]   ;;  %v10636_v16 = vld [vmem:[#allocation5 + $0x398] sm:$0xff]  }
  0x7b   : > { %513 = vst [vmem:[#allocation3 + $0x8] sm:$0x7] %v11289_v0  ;;  %514 = vst [vmem:[#allocation3 + $0xc] sm:$0x7] %v11289_v0  ;;  %9650 = vmatpush3.bf16.msra.mxu1 %v10628_v8  ;;  %9629 = vmatprep.subr.bf16.mxu0 %v10629_v9  ;;  %v10637_v17 = vld [vmem:[#allocation5 + $0x360] sm:$0xff]   ;;  %v10641_v21 = vld [vmem:[#allocation5 + $0x368] sm:$0xff]  }
  0x7c   : > { %515 = vst [vmem:[#allocation3 + $0x10] sm:$0x7] %v11289_v0  ;;  %516 = vst [vmem:[#allocation3 + $0x14] sm:$0x7] %v11289_v0  ;;  %9651 = vmatprep.subr.bf16.mxu1 %v10630_v10  ;;  %v10638_v18 = vld [vmem:[#allocation5 + $0x3e0] sm:$0xff]   ;;  %v10642_v22 = vld [vmem:[#allocation5 + $0x3e8] sm:$0xff]  }
  0x7d   : > { %517 = vst [vmem:[#allocation4] sm:$0x7] %v11289_v0  ;;  %518 = vst [vmem:[#allocation4 + $0x4] sm:$0x7] %v11289_v0  ;;  %v10639_v19 = vld [vmem:[#allocation5 + $0x320] sm:$0xff]   ;;  %v10643_v26 = vld [vmem:[#allocation5 + $0x328] sm:$0xff]  }
  0x7e   : > { %519 = vst [vmem:[#allocation4 + $0x8] sm:$0x7] %v11289_v0  ;;  %520 = vst [vmem:[#allocation4 + $0xc] sm:$0x7] %v11289_v0  ;;  %9630 = vmatpush3.bf16.msra.mxu0 %v10631_v11  ;;  %v10640_v20 = vld [vmem:[#allocation5 + $0x3a0] sm:$0xff]   ;;  %s12947_s27 = smov (!%p324_p4, %s11339_s27), 1 }
  0x7f   : > { %521 = vst [vmem:[#allocation4 + $0x10] sm:$0x7] %v11289_v0  ;;  %522 = vst [vmem:[#allocation4 + $0x14] sm:$0x7] %v11289_v0  ;;  %9652 = vmatpush3.bf16.msra.mxu1 %v10632_v12  ;;  %9631 = vmatprep.subr.bf16.mxu0 %v10633_v13  ;;  %v11290_v23 = vmov 1983009808  }
  0x80   : > { %9653 = vmatprep.subr.bf16.mxu1 %v10634_v14  ;;  %v357_v24 = vunpack.c.l.s4 %v11290_v23  ;;  %v10644_v27 = vld [vmem:[#allocation5 + $0x3a8] sm:$0xff]   ;;  %vm481_vm0 = vsmask.f32 2306  ;;  %v10645_v28 = vld [vmem:[#allocation5 + $0x370] sm:$0xff]   ;;  %v360_v31 = vshrl.u32 %v359_v25, 7  ;;  %s9604_s28 = sshll.u32 %s12947_s27, 5 }
  0x81   : > { %v10646_v29 = vld [vmem:[#allocation5 + $0x3f0] sm:$0xff]   ;;  %v10649_v34 = vld [vmem:[#allocation5 + $0x378] sm:$0xff]   ;;  %s328_s18 = scalar_lea.vmem %s12910_s0, %s9604_s28  ;;  %vm480_vm1 = vcmask 1042432   ;;  %vm483_vm2 = vcmask 1046532   ;;  %vm484_vm3 = vsmask.f32 6418 }
  0x82   : > { %9632 = vmatpush3.bf16.msra.mxu0 %v10635_v15  ;;  %v358_v30 = vunpack.c.0.s8 %v357_v24  ;;  %v10647_v32 = vld [vmem:[#allocation5 + $0x330] sm:$0xff]   ;;  %v10650_v35 = vld [vmem:[#allocation5 + $0x3f8] sm:$0xff]   ;;  %v349_v41 = vld [vmem:[%s328_s18 + $0x10] sm:$0xff]  ;;  %vm1558_vm7 = vcmask 1045504   ;;  %vm757_vm8 = vsmask.f32 1280 }
  0x83   : > { %9654 = vmatpush3.bf16.msra.mxu1 %v10636_v16  ;;  %9633 = vmatprep.subr.bf16.mxu0 %v10637_v17  ;;  %v10648_v33 = vld [vmem:[#allocation5 + $0x3b0] sm:$0xff]   ;;  %v10651_v37 = vld [vmem:[#allocation5 + $0x338] sm:$0xff]   ;;  %v350_v42 = vld [vmem:[%s328_s18 + $0x18] sm:$0xff]  ;;  %v385_v50 = vcombine.high %v349_v41, %v349_v41  ;;  %vm758_vm9 = vsmask.f32 3336  ;;  %vm968_vm15 = vcmask 1040384  }
  0x84   : > { %9655 = vmatprep.subr.bf16.mxu1 %v10638_v18  ;;  %v11512_v36 = vsub.s32 %v358_v30, %v360_v31  ;;  %v10652_v38 = vld [vmem:[#allocation5 + $0x3b8] sm:$0xff]   ;;  %v347_v39 = vld [vmem:[%s328_s18] sm:$0xff]  ;;  %vm11519_vm4 = vmand %vm480_vm1, %vm481_vm0  ;;  %v400_v51 = vcombine.high %v350_v42, %v350_v42  ;;  %vm760_vm10 = vsmask.f32 5392  ;;  %vm762_vm11 = vsmask.f32 7448 }
  0x85   : > { %v348_v40 = vld [vmem:[%s328_s18 + $0x8] sm:$0xff]  ;;  %v355_v46 = vcombine.high %v347_v39, %v347_v39  ;;  %vm485_vm5 = vmand %vm483_vm2, %vm484_vm3  ;;  %v487_v62 = vld [vmem:[#allocation2 + $0x10] sm:$0x77]  ;;  %vm969_vm0 = vcmask 1042434   ;;  %vm971_vm2 = vcmask 1044484   ;;  %vm973_vm3 = vcmask 1046534  }
  0x86   : > { %9634 = vmatpush3.bf16.msra.mxu0 %v10639_v19  ;;  %v362_v43 = vrot.slane %v347_v39, %v11512_v36  ;;  %v377_v44 = vrot.slane %v348_v40, %v11512_v36  ;;  %v392_v45 = vrot.slane %v349_v41, %v11512_v36  ;;  %v407_v47 = vrot.slane %v350_v42, %v11512_v36  ;;  %vm11529_vm6 = vmor %vm485_vm5, %vm11519_vm4  ;;  %v493_v5 = vld [vmem:[#allocation2 + $0x20] sm:$0x77]  ;;  %v499_v6 = vld [vmem:[#allocation2 + $0x30] sm:$0x77]  ;;  %s9605_s25 = sshll.u32 %s12947_s27, 3 }
  0x87   : > { %9656 = vmatpush3.bf16.msra.mxu1 %v10640_v20  ;;  %9635 = vmatprep.subr.bf16.mxu0 %v10641_v21  ;;  %v370_v49 = vcombine.high %v348_v40, %v348_v40  ;;  %v369_v63 = vrot.slane %v355_v46, %v11512_v36  ;;  %v399_v7 = vrot.slane %v385_v50, %v11512_v36  ;;  %v505_v11 = vld [vmem:[#allocation2 + $0x40] sm:$0x77]  ;;  %v496_v23 = vld [vmem:[#allocation2 + $0x28] sm:$0x77]  ;;  %v10658_v30 = vld [vmem:[#allocation5 + $0x4c0] sm:$0xff]   ;;  %s333_s10 = scalar_lea.vmem %s12917_s7, %s9605_s25 }
  0x88   : > { %9657 = vmatprep.subr.bf16.mxu1 %v10642_v22  ;;  %v416_v52 = vshrl.u32 %v362_v43, 16  ;;  %v419_v53 = vshll.u32 %v362_v43, 16  ;;  %v430_v54 = vshrl.u32 %v377_v44, 16  ;;  %v433_v55 = vshll.u32 %v377_v44, 16  ;;  %v490_v22 = vld [vmem:[#allocation2 + $0x18] sm:$0x77]  ;;  %vm11591_vm12 = vmor %vm757_vm8, %vm758_vm9 }
  0x89   : > { %v444_v56 = vshrl.u32 %v392_v45, 16  ;;  %v447_v57 = vshll.u32 %v392_v45, 16  ;;  %v458_v58 = vshrl.u32 %v407_v47, 16  ;;  %v461_v59 = vshll.u32 %v407_v47, 16  ;;  %v508_v42 = vld [vmem:[#allocation2 + $0x48] sm:$0x77]  ;;  %vm11598_vm13 = vmor %vm11591_vm12, %vm760_vm10 }
  0x8a   : > { %9636 = vmatpush3.bf16.msra.mxu0 %v10643_v26  ;;  %v418_v60 = vrot.slane %v416_v52, 7  ;;  %v432_v61 = vrot.slane %v430_v54, 7  ;;  %v384_v1 = vrot.slane %v370_v49, %v11512_v36  ;;  %v414_v8 = vrot.slane %v400_v51, %v11512_v36  ;;  %v8654_v45 = vld.sshfl [vmem:[#allocation2 + $0x50] sm:$0xf pattern:$0x76325410]  ;;  %vm11605_vm14 = vmor %vm11598_vm13, %vm762_vm11 }
  0x8b   : > { %9658 = vmatpush3.bf16.msra.mxu1 %v10644_v27  ;;  %9637 = vmatprep.subr.bf16.mxu0 %v10645_v28  ;;  %v446_v2 = vrot.slane %v444_v56, 7  ;;  %v460_v3 = vrot.slane %v458_v58, 7  ;;  %v423_v12 = vshrl.u32 %v369_v63, 16  ;;  %v426_v13 = vshll.u32 %v369_v63, 16  ;;  %v502_v28 = vld [vmem:[#allocation2 + $0x38] sm:$0x77]  ;;  %vm11660_vm1 = vmor %vm968_vm15, %vm969_vm0 }
  0x8c   : > { %9659 = vmatprep.subr.bf16.mxu1 %v10646_v29  ;;  %v421_v9 = vor.u32 %v419_v53, %v418_v60  ;;  %v435_v10 = vor.u32 %v433_v55, %v432_v61  ;;  %v437_v16 = vshrl.u32 %v384_v1, 16  ;;  %v440_v17 = vshll.u32 %v384_v1, 16  ;;  %v10657_v29 = vld [vmem:[#allocation5 + $0x440] sm:$0xff]   ;;  %vm11666_vm5 = vmor %vm11660_vm1, %vm971_vm2 }
  0x8d   : > { %v449_v14 = vor.u32 %v447_v57, %v446_v2  ;;  %v463_v15 = vor.u32 %v461_v59, %v460_v3  ;;  %v425_v20 = vrot.slane %v423_v12, 7  ;;  %v451_v21 = vshrl.u32 %v399_v7, 16  ;;  %v8645_v49 = vld.sshfl [vmem:[#allocation2 + $0x8] sm:$0xf pattern:$0x76325410] }
  0x8e   : > { %9638 = vmatpush3.bf16.msra.mxu0 %v10647_v32  ;;  %v488_v18 = vsel %vm11529_vm6, %v421_v9, %v487_v62  ;;  %v494_v19 = vsel %vm11529_vm6, %v435_v10, %v493_v5  ;;  %v439_v26 = vrot.slane %v437_v16, 7  ;;  %v454_v27 = vshll.u32 %v399_v7, 16  ;;  %v8655_v58 = vld.sshfl [vmem:[#allocation2 + $0x58] sm:$0xf pattern:$0x76325410] }
  0x8f   : > { %9660 = vmatpush3.bf16.msra.mxu1 %v10648_v33  ;;  %9639 = vmatprep.subr.bf16.mxu0 %v10649_v34  ;;  %489 = vst [vmem:[#allocation2 + $0x10] sm:$0x77] %v488_v18  ;;  %495 = vst [vmem:[#allocation2 + $0x20] sm:$0x77] %v494_v19  ;;  %v500_v24 = vsel %vm11529_vm6, %v449_v14, %v499_v6  ;;  %v506_v25 = vsel %vm11529_vm6, %v463_v15, %v505_v11  ;;  %v453_v32 = vrot.slane %v451_v21, 7  ;;  %v10661_v19 = vld [vmem:[#allocation5 + $0x448] sm:$0xff]  }
  0x90   : > { %9661 = vmatprep.subr.bf16.mxu1 %v10650_v35  ;;  %501 = vst [vmem:[#allocation2 + $0x30] sm:$0x77] %v500_v24  ;;  %507 = vst [vmem:[#allocation2 + $0x40] sm:$0x77] %v506_v25  ;;  %v428_v31 = vor.u32 %v426_v13, %v425_v20  ;;  %v465_v33 = vshrl.u32 %v414_v8, 16  ;;  %v468_v34 = vshll.u32 %v414_v8, 16  ;;  %v442_v35 = vor.u32 %v440_v17, %v439_v26 }
  0x91   : > { %v10659_v17 = vld [vmem:[#allocation5 + $0x400] sm:$0xff]   ;;  %v10663_v26 = vld [vmem:[#allocation5 + $0x408] sm:$0xff]   ;;  %vm3444_vm8 = vcmask 1043456   ;;  %vm11292_vm9 = vmmov 0  }
  0x92   : > { %9640 = vmatpush3.bf16.msra.mxu0 %v10651_v37  ;;  %v8644_v37 = vld.sshfl [vmem:[#allocation2] sm:$0xf pattern:$0x76325410]  ;;  %v467_v39 = vrot.slane %v465_v33, 7  ;;  %v491_v40 = vsel %vm11529_vm6, %v428_v31, %v490_v22  ;;  %v497_v41 = vsel %vm11529_vm6, %v442_v35, %v496_v23  ;;  %v10660_v24 = vld [vmem:[#allocation5 + $0x480] sm:$0xff]  }
  0x93   : > { %9662 = vmatpush3.bf16.msra.mxu1 %v10652_v38  ;;  %9669 = vmatprep.subr.bf16.mxu0 %v10657_v29  ;;  %v456_v38 = vor.u32 %v454_v27, %v453_v32  ;;  %492 = vst [vmem:[#allocation2 + $0x18] sm:$0x77] %v491_v40  ;;  %498 = vst [vmem:[#allocation2 + $0x28] sm:$0x77] %v497_v41  ;;  %v10664_v31 = vld [vmem:[#allocation5 + $0x488] sm:$0xff]   ;;  %v10667_v32 = vld [vmem:[#allocation5 + $0x410] sm:$0xff]  }
  0x94   : > { %9691 = vmatprep.subr.bf16.mxu1 %v10658_v30  ;;  %v470_v43 = vor.u32 %v468_v34, %v467_v39  ;;  %v10662_v30 = vld [vmem:[#allocation5 + $0x4c8] sm:$0xff]   ;;  %v10669_v33 = vld [vmem:[#allocation5 + $0x458] sm:$0xff]   ;;  %v10666_v34 = vld [vmem:[#allocation5 + $0x4d0] sm:$0xff]  }
  0x95   : > { %v503_v44 = vsel %vm11529_vm6, %v456_v38, %v502_v28  ;;  %v10665_v28 = vld [vmem:[#allocation5 + $0x450] sm:$0xff]   ;;  %v10673_v38 = vld [vmem:[#allocation5 + $0x460] sm:$0xff]   ;;  %v10670_v39 = vld [vmem:[#allocation5 + $0x4d8] sm:$0xff]  }
  0x96   : > { %504 = vst [vmem:[#allocation2 + $0x38] sm:$0x77] %v503_v44  ;;  %v8646_v46 = vld.sshfl [vmem:[#allocation2 + $0x10] sm:$0xf pattern:$0x76325410]  ;;  %v509_v47 = vsel %vm11529_vm6, %v470_v43, %v508_v42  ;;  %vm11673_vm6 = vmor %vm11666_vm5, %vm973_vm3 }
  0x97   : > { %v8648_v50 = vld.sshfl [vmem:[#allocation2 + $0x20] sm:$0xf pattern:$0x76325410]  ;;  %v8686_v51 = vcombine.low %v8644_v37, %v8646_v46  ;;  %510 = vst [vmem:[#allocation2 + $0x48] sm:$0x77] %v509_v47 }
  0x98   : > { %v8650_v52 = vld.sshfl [vmem:[#allocation2 + $0x30] sm:$0xf pattern:$0x76325410]  ;;  %v10668_v35 = vld [vmem:[#allocation5 + $0x490] sm:$0xff]   ;;  %v10671_v37 = vld [vmem:[#allocation5 + $0x418] sm:$0xff]  }
  0x99   : > { %v8652_v53 = vld.sshfl [vmem:[#allocation2 + $0x40] sm:$0xf pattern:$0x76325410]  ;;  %v8688_v54 = vcombine.low %v8648_v50, %v8650_v52  ;;  %v1009_v55 = vrot.slane %v8686_v51, %v11512_v36  ;;  %v10672_v40 = vld [vmem:[#allocation5 + $0x498] sm:$0xff]   ;;  %v10675_v41 = vld [vmem:[#allocation5 + $0x420] sm:$0xff]  }
  0x9a   : > { %v8690_v56 = vcombine.low %v8652_v53, %v8654_v45  ;;  %v8647_v57 = vld.sshfl [vmem:[#allocation2 + $0x18] sm:$0xf pattern:$0x76325410]  ;;  %v10674_v43 = vld [vmem:[#allocation5 + $0x4e0] sm:$0xff]   ;;  %v10683_v51 = vld [vmem:[#allocation5 + $0x430] sm:$0xff]  }
  0x9b   : > { %v1023_v59 = vrot.slane %v8688_v54, %v11512_v36  ;;  %v8649_v60 = vld.sshfl [vmem:[#allocation2 + $0x28] sm:$0xf pattern:$0x76325410]  ;;  %v8687_v61 = vcombine.low %v8645_v49, %v8647_v57  ;;  %v10677_v42 = vld [vmem:[#allocation5 + $0x468] sm:$0xff]   ;;  %v10676_v44 = vld [vmem:[#allocation5 + $0x4a0] sm:$0xff]  }
  0x9c   : > { %v11554_v62 = vrot.slane %v8690_v56, %v11512_v36  ;;  %v10679_v45 = vld [vmem:[#allocation5 + $0x428] sm:$0xff]   ;;  %v8656_v46 = vld.sshfl [vmem:[#allocation2] sm:$0x5f pattern:$0x76325410] }
  0x9d   : > { %v8651_v63 = vld.sshfl [vmem:[#allocation2 + $0x38] sm:$0xf pattern:$0x76325410]  ;;  %v11556_v1 = vcombine.high %v1009_v55, %v1023_v59  ;;  %v1016_v3 = vrot.slane %v8687_v61, %v11512_v36  ;;  %v11559_v4 = vcombine.low %v1009_v55, %v1023_v59  ;;  %v10681_v49 = vld [vmem:[#allocation5 + $0x470] sm:$0xff]  }
  0x9e   : > { %v8689_v2 = vcombine.low %v8649_v60, %v8651_v63  ;;  %v11563_v5 = vcombine.high %v11554_v62, %v11554_v62  ;;  %v8653_v6 = vld.sshfl [vmem:[#allocation2 + $0x48] sm:$0xf pattern:$0x76325410]  ;;  %v1560_v7 = vrot.slane %v11554_v62, 2  ;;  %v10678_v47 = vld [vmem:[#allocation5 + $0x4e8] sm:$0xff]  }
  0x9f   : > { %v1562_v8 = vrot.slane %v11556_v1, 2  ;;  %v8691_v10 = vcombine.low %v8653_v6, %v8655_v58  ;;  %v1559_v11 = vrot.slane %v11559_v4, 2  ;;  %v8657_v50 = vld.sshfl [vmem:[#allocation2 + $0x8] sm:$0x5f pattern:$0x76325410] }
  0xa0   : > { %v1030_v9 = vrot.slane %v8689_v2, %v11512_v36  ;;  %v1563_v12 = vrot.slane %v11563_v5, 2  ;;  %v8658_v52 = vld.sshfl [vmem:[#allocation2 + $0x10] sm:$0x5f pattern:$0x76325410]  ;;  %v675_v53 = vcombine.low %v8656_v46, %v8657_v50  ;;  %v676_v54 = vcombine.high %v8656_v46, %v8657_v50  ;;  %v10680_v55 = vld [vmem:[#allocation5 + $0x4a8] sm:$0xff]  }
  0xa1   : > { %v11573_v14 = vrot.slane %v8691_v10, %v11512_v36  ;;  %v1561_v15 = vsel %vm1558_vm7, %v1559_v11, %v1560_v7  ;;  %v8659_v56 = vld.sshfl [vmem:[#allocation2 + $0x18] sm:$0x5f pattern:$0x76325410]  ;;  %v10682_v58 = vld [vmem:[#allocation5 + $0x4f0] sm:$0xff]   ;;  %v10685_v2 = vld [vmem:[#allocation5 + $0x478] sm:$0xff]  }
  0xa2   : > { %v11570_v13 = vcombine.high %v1016_v3, %v1030_v9  ;;  %v11576_v16 = vcombine.low %v1016_v3, %v1030_v9  ;;  %v1564_v18 = vsel %vm1558_vm7, %v1562_v8, %v1563_v12  ;;  %v8660_v59 = vld.sshfl [vmem:[#allocation2 + $0x20] sm:$0x5f pattern:$0x76325410]  ;;  %v691_v60 = vcombine.low %v8658_v52, %v8659_v56  ;;  %v10687_v8 = vld [vmem:[#allocation5 + $0x438] sm:$0xff]  }
  0xa3   : > { %2215 = vmatprep.mubr.bf16.mxu0 %v1564_v18  ;;  %v11581_v20 = vcombine.high %v11573_v14, %v11573_v14  ;;  %v1566_v23 = vrot.slane %v11573_v14, 2  ;;  %v765_v61 = vshrl.u32 %v675_v53, 16  ;;  %v768_v63 = vshll.u32 %v675_v53, 16 }
  0xa4   : > { %v1568_v21 = vrot.slane %v11570_v13, 2  ;;  %v1565_v22 = vrot.slane %v11576_v16, 2  ;;  %2216 = vmatmul.mubr.bf16.vlgmr.msra.gmra.mrb[0].mxu0 %v1561_v15  ;;  %v8661_v3 = vld.sshfl [vmem:[#allocation2 + $0x28] sm:$0x5f pattern:$0x76325410]  ;;  %v692_v6 = vcombine.high %v8658_v52, %v8659_v56 }
  0xa5   : > { %v1569_v25 = vrot.slane %v11581_v20, 2  ;;  %9670 = vmatpush3.bf16.msra.mxu0 %v10659_v17  ;;  %v774_v7 = vshll.u32 %v676_v54, 16  ;;  %v8662_v9 = vld.sshfl [vmem:[#allocation2 + $0x30] sm:$0x5f pattern:$0x76325410]  ;;  %v707_v18 = vcombine.low %v8660_v59, %v8661_v3 }
  0xa6   : > { %v1567_v27 = vsel %vm1558_vm7, %v1565_v22, %v1566_v23  ;;  %9671 = vmatprep.subr.bf16.mxu0 %v10661_v19  ;;  %v767_v11 = vrot.slane %v765_v61, 6  ;;  %v770_v12 = vrot.slane %v768_v63, 7  ;;  %v10684_v15 = vld [vmem:[#allocation5 + $0x4b0] sm:$0xff]   ;;  %v779_v19 = vshrl.u32 %v691_v60, 16  ;;  %v10686_v22 = vld [vmem:[#allocation5 + $0x4f8] sm:$0xff]  }
  0xa7   : > { %v1570_v29 = vsel %vm1558_vm7, %v1568_v21, %v1569_v25  ;;  %v8663_v17 = vld.sshfl [vmem:[#allocation2 + $0x38] sm:$0x5f pattern:$0x76325410]  ;;  %v10689_v21 = vld [vmem:[#allocation5 + $0x540] sm:$0xff]   ;;  %v776_v25 = vrot.slane %v774_v7, 7 }
  0xa8   : > { %2256 = vmatprep.mubr.bf16.mxu1 %v1570_v29  ;;  %v8664_v23 = vld.sshfl [vmem:[#allocation2 + $0x40] sm:$0x5f pattern:$0x76325410]  ;;  %v723_v29 = vcombine.low %v8662_v9, %v8663_v17 }
  0xa9   : > { %2257 = vmatmul.mubr.bf16.vlgmr.msra.gmra.mrb[0].mxu1 %v1567_v27  ;;  %9672 = vmatpush3.bf16.msra.mxu0 %v10663_v26  ;;  %v782_v26 = vshll.u32 %v691_v60, 16  ;;  %v8665_v27 = vld.sshfl [vmem:[#allocation2 + $0x48] sm:$0x5f pattern:$0x76325410] }
  0xaa   : > { %9692 = vmatpush3.bf16.msra.mxu1 %v10660_v24  ;;  %9673 = vmatprep.subr.bf16.mxu0 %v10665_v28  ;;  %v771_v24 = vor.u32 %v770_v12, %v767_v11  ;;  %v708_v28 = vcombine.high %v8660_v59, %v8661_v3  ;;  %v807_v53 = vshrl.u32 %v723_v29, 16 }
  0xab   : > { %9693 = vmatprep.subr.bf16.mxu1 %v10662_v30 }
  0xac   : > { %v802_v52 = vshll.u32 %v708_v28, 16  ;;  %v809_v60 = vrot.slane %v807_v53, 6 }
  0xad   : > { %9674 = vmatpush3.bf16.msra.mxu0 %v10667_v32  ;;  %v788_v32 = vshll.u32 %v692_v6, 16 }
  0xae   : > { %9694 = vmatpush3.bf16.msra.mxu1 %v10664_v31  ;;  %9675 = vmatprep.subr.bf16.mxu0 %v10669_v33  ;;  %v781_v31 = vrot.slane %v779_v19, 6  ;;  %v8666_v33 = vld.sshfl [vmem:[#allocation2 + $0x50] sm:$0x5f pattern:$0x76325410]  ;;  %v804_v59 = vrot.slane %v802_v52, 7 }
  0xaf   : > { %9695 = vmatprep.subr.bf16.mxu1 %v10666_v34  ;;  %v724_v34 = vcombine.high %v8662_v9, %v8663_v17 }
  0xb1   : > { %9676 = vmatpush3.bf16.msra.mxu0 %v10671_v37  ;;  %v772_v37 = vrot.slane %v771_v24, 2  ;;  %v816_v56 = vshll.u32 %v724_v34, 16 }
  0xb2   : > { %9696 = vmatpush3.bf16.msra.mxu1 %v10668_v35  ;;  %9677 = vmatprep.subr.bf16.mxu0 %v10673_v38  ;;  %v739_v35 = vcombine.low %v8664_v23, %v8665_v27  ;;  %v784_v38 = vrot.slane %v782_v26, 7 }
  0xb3   : > { %9697 = vmatprep.subr.bf16.mxu1 %v10670_v39  ;;  %v10688_v39 = vld [vmem:[#allocation5 + $0x4b8] sm:$0xff]   ;;  %v777_v46 = vsel %vm11605_vm14, %v772_v37, %v776_v25  ;;  %v818_v3 = vrot.slane %v816_v56, 7 }
  0xb4   : > { %v821_v57 = vshrl.u32 %v739_v35, 16  ;;  %v824_v61 = vshll.u32 %v739_v35, 16 }
  0xb5   : > { %9678 = vmatpush3.bf16.msra.mxu0 %v10675_v41  ;;  %v740_v41 = vcombine.high %v8664_v23, %v8665_v27 }
  0xb6   : > { %9698 = vmatpush3.bf16.msra.mxu1 %v10672_v40  ;;  %9679 = vmatprep.subr.bf16.mxu0 %v10677_v42  ;;  %v8667_v40 = vld.sshfl [vmem:[#allocation2 + $0x58] sm:$0x5f pattern:$0x76325410]  ;;  %v790_v42 = vrot.slane %v788_v32, 7  ;;  %v823_v6 = vrot.slane %v821_v57, 6 }
  0xb7   : > { %9699 = vmatprep.subr.bf16.mxu1 %v10674_v43  ;;  %v793_v43 = vshrl.u32 %v707_v18, 16  ;;  %v830_v9 = vshll.u32 %v740_v41, 16 }
  0xb9   : > { %9680 = vmatpush3.bf16.msra.mxu0 %v10679_v45  ;;  %v756_v45 = vcombine.high %v8666_v33, %v8667_v40  ;;  %v795_v50 = vrot.slane %v793_v43, 6  ;;  %v832_v23 = vrot.slane %v830_v9, 7  ;;  %v10694_v9 = vld [vmem:[#allocation5 + $0x5c8] sm:$0xff]  }
  0xba   : > { %9700 = vmatpush3.bf16.msra.mxu1 %v10676_v44  ;;  %9681 = vmatprep.subr.bf16.mxu0 %v10681_v49  ;;  %v755_v44 = vcombine.low %v8666_v33, %v8667_v40  ;;  %v10690_v49 = vld [vmem:[#allocation5 + $0x5c0] sm:$0xff]  }
  0xbb   : > { %9701 = vmatprep.subr.bf16.mxu1 %v10678_v47  ;;  %v785_v47 = vor.u32 %v784_v38, %v781_v31 }
  0xbc   : > { %v835_v10 = vshrl.u32 %v755_v44, 16  ;;  %v838_v12 = vshll.u32 %v755_v44, 16 }
  0xbd   : > { %9682 = vmatpush3.bf16.msra.mxu0 %v10683_v51  ;;  %v796_v51 = vshll.u32 %v707_v18, 16  ;;  %v786_v54 = vrot.slane %v785_v47, 2 }
  0xbe   : > { %9702 = vmatpush3.bf16.msra.mxu1 %v10680_v55  ;;  %9683 = vmatprep.subr.bf16.mxu0 %v10685_v2  ;;  %v810_v55 = vshll.u32 %v723_v29, 16  ;;  %v837_v19 = vrot.slane %v835_v10, 6  ;;  %v840_v24 = vrot.slane %v838_v12, 7  ;;  %v10696_v12 = vld [vmem:[#allocation5 + $0x588] sm:$0xff]  }
  0xbf   : > { %9703 = vmatprep.subr.bf16.mxu1 %v10682_v58  ;;  %v798_v58 = vrot.slane %v796_v51, 7  ;;  %v791_v63 = vsel %vm11605_vm14, %v786_v54, %v790_v42 }
  0xc0   : > { %v812_v2 = vrot.slane %v810_v55, 7  ;;  %v1058_v27 = vcombine.high %v777_v46, %v791_v63  ;;  %v841_v29 = vor.u32 %v840_v24, %v837_v19  ;;  %v10700_v19 = vld [vmem:[#allocation5 + $0x590] sm:$0xff]   ;;  %v10704_v24 = vld [vmem:[#allocation5 + $0x598] sm:$0xff]  }
  0xc1   : > { %9684 = vmatpush3.bf16.msra.mxu0 %v10687_v8  ;;  %v799_v7 = vor.u32 %v798_v58, %v795_v50  ;;  %v826_v8 = vrot.slane %v824_v61, 7 }
  0xc2   : > { %9704 = vmatpush3.bf16.msra.mxu1 %v10684_v15  ;;  %9713 = vmatprep.subr.bf16.mxu0 %v10689_v21  ;;  %v813_v11 = vor.u32 %v812_v2, %v809_v60  ;;  %v844_v15 = vshll.u32 %v756_v45, 16  ;;  %v1057_v21 = vcombine.low %v777_v46, %v791_v63  ;;  %v1074_v35 = vrot.slane %v1058_v27, %v11512_v36  ;;  %v10692_v63 = vld [vmem:[#allocation5 + $0x580] sm:$0xff]   ;;  %v10693_v2 = vld [vmem:[#allocation5 + $0x548] sm:$0xff]  }
  0xc3   : > { %9705 = vmatprep.subr.bf16.mxu1 %v10686_v22  ;;  %v800_v17 = vrot.slane %v799_v7, 2  ;;  %v827_v18 = vor.u32 %v826_v8, %v823_v6  ;;  %v842_v38 = vrot.slane %v841_v29, 2  ;;  %v10705_v27 = vld [vmem:[#allocation5 + $0x560] sm:$0xff]  }
  0xc4   : > { %v814_v22 = vrot.slane %v813_v11, 2  ;;  %v846_v31 = vrot.slane %v844_v15, 7  ;;  %v1067_v33 = vrot.slane %v1057_v21, %v11512_v36  ;;  %v10695_v11 = vld [vmem:[#allocation5 + $0x508] sm:$0xff]   ;;  %v10697_v15 = vld [vmem:[#allocation5 + $0x550] sm:$0xff]   ;;  %v10701_v21 = vld [vmem:[#allocation5 + $0x558] sm:$0xff]  }
  0xc5   : > { %v805_v25 = vsel %vm11605_vm14, %v800_v17, %v804_v59  ;;  %v828_v26 = vrot.slane %v827_v18, 2  ;;  %v10691_v59 = vld [vmem:[#allocation5 + $0x500] sm:$0xff]   ;;  %v10698_v17 = vld [vmem:[#allocation5 + $0x5d0] sm:$0xff]  }
  0xc6   : > { %9706 = vmatpush3.bf16.msra.mxu1 %v10688_v39  ;;  %v819_v28 = vsel %vm11605_vm14, %v814_v22, %v818_v3  ;;  %v847_v41 = vsel %vm11605_vm14, %v842_v38, %v846_v31  ;;  %v10699_v18 = vld [vmem:[#allocation5 + $0x510] sm:$0xff]   ;;  %v10702_v22 = vld [vmem:[#allocation5 + $0x5d8] sm:$0xff]   ;;  %v10707_v31 = vld [vmem:[#allocation5 + $0x520] sm:$0xff]  }
  0xc7   : > { %9735 = vmatprep.subr.bf16.mxu1 %v10690_v49  ;;  %v1059_v32 = vcombine.low %v805_v25, %v819_v28  ;;  %v1060_v34 = vcombine.high %v805_v25, %v819_v28  ;;  %v833_v37 = vsel %vm11605_vm14, %v828_v26, %v832_v23  ;;  %v10703_v23 = vld [vmem:[#allocation5 + $0x518] sm:$0xff]   ;;  %v8668_v25 = vld.sshfl [vmem:[#allocation2] sm:$0x5a pattern:$0x76325410]  ;;  %v10706_v28 = vld [vmem:[#allocation5 + $0x5e0] sm:$0xff]  }
  0xc8   : > { %v1093_v43 = vcombine.low %v833_v37, %v847_v41  ;;  %v1094_v45 = vcombine.high %v833_v37, %v847_v41  ;;  %v8669_v29 = vld.sshfl [vmem:[#allocation2 + $0x8] sm:$0x5a pattern:$0x76325410]  ;;  %v10709_v37 = vld [vmem:[#allocation5 + $0x568] sm:$0xff]  }
  0xc9   : > { %v1081_v39 = vrot.slane %v1059_v32, %v11512_v36  ;;  %v1088_v40 = vrot.slane %v1060_v34, %v11512_v36  ;;  %v10708_v32 = vld [vmem:[#allocation5 + $0x5a0] sm:$0xff]   ;;  %v886_v34 = vcombine.low %v8668_v25, %v8669_v29  ;;  %v10710_v38 = vld [vmem:[#allocation5 + $0x5e8] sm:$0xff]   ;;  %v10718_v26 = vld [vmem:[#allocation5 + $0x5f8] sm:$0xff]  }
  0xca   : > { %v11634_v49 = vrot.slane %v1093_v43, %v11512_v36  ;;  %v11637_v50 = vrot.slane %v1094_v45, %v11512_v36 }
  0xcb   : > { %v11625_v42 = vcombine.high %v1067_v33, %v1081_v39  ;;  %v11627_v44 = vcombine.high %v1074_v35, %v1088_v40  ;;  %v11629_v46 = vcombine.low %v1067_v33, %v1081_v39  ;;  %v11631_v47 = vcombine.low %v1074_v35, %v1088_v40  ;;  %v8670_v33 = vld.sshfl [vmem:[#allocation2 + $0x10] sm:$0x5a pattern:$0x76325410] }
  0xcc   : > { %v11645_v55 = vcombine.high %v11634_v49, %v11634_v49  ;;  %v11649_v56 = vcombine.high %v11637_v50, %v11637_v50  ;;  %v1572_v57 = vrot.slane %v11634_v49, 2  ;;  %v1578_v58 = vrot.slane %v11637_v50, 2  ;;  %v8671_v39 = vld.sshfl [vmem:[#allocation2 + $0x18] sm:$0x5a pattern:$0x76325410] }
  0xcd   : > { %v1574_v51 = vrot.slane %v11625_v42, 2  ;;  %v1580_v52 = vrot.slane %v11627_v44, 2  ;;  %v1571_v53 = vrot.slane %v11629_v46, 2  ;;  %v1577_v54 = vrot.slane %v11631_v47, 2 }
  0xce   : > { %v1575_v60 = vrot.slane %v11645_v55, 2  ;;  %v1581_v61 = vrot.slane %v11649_v56, 2  ;;  %v887_v35 = vcombine.high %v8668_v25, %v8669_v29  ;;  %v8672_v40 = vld.sshfl [vmem:[#allocation2 + $0x20] sm:$0x5a pattern:$0x76325410]  ;;  %v902_v41 = vcombine.low %v8670_v33, %v8671_v39 }
  0xcf   : > { %v1573_v3 = vsel %vm1558_vm7, %v1571_v53, %v1572_v57  ;;  %v1579_v6 = vsel %vm1558_vm7, %v1577_v54, %v1578_v58  ;;  %v903_v43 = vcombine.high %v8670_v33, %v8671_v39  ;;  %v8673_v53 = vld.sshfl [vmem:[#allocation2 + $0x28] sm:$0x5a pattern:$0x76325410]  ;;  %v10711_v54 = vld [vmem:[#allocation5 + $0x528] sm:$0xff]  }
  0xd0   : > { %v1576_v7 = vsel %vm1558_vm7, %v1574_v51, %v1575_v60  ;;  %v1582_v8 = vsel %vm1558_vm7, %v1580_v52, %v1581_v61  ;;  %v8680_v51 = vrot.slane %v886_v34, 9  ;;  %v977_v52 = vrot.slane %v887_v35, 7  ;;  %v10712_v57 = vld [vmem:[#allocation5 + $0x5a8] sm:$0xff]   ;;  %v10717_v25 = vld [vmem:[#allocation5 + $0x578] sm:$0xff]  }
  0xd1   : > { %2297 = vmatprep.mubr.bf16.mxu0 %v1576_v7  ;;  %2338 = vmatprep.mubr.bf16.mxu1 %v1582_v8  ;;  %v8674_v58 = vld.sshfl [vmem:[#allocation2 + $0x30] sm:$0x5a pattern:$0x76325410]  ;;  %v919_v60 = vcombine.high %v8672_v40, %v8673_v53  ;;  %v8681_v61 = vrot.slane %v902_v41, 9  ;;  %v981_v7 = vrot.slane %v903_v43, 7 }
  0xd2   : > { %2298 = vmatmul.mubr.bf16.vlgmr.msra.gmra.mrb[4].mxu0 %v1573_v3  ;;  %2339 = vmatmul.mubr.bf16.vlgmr.msra.gmra.mrb[4].mxu1 %v1579_v6  ;;  %v8675_v3 = vld.sshfl [vmem:[#allocation2 + $0x38] sm:$0x5a pattern:$0x76325410]  ;;  %v978_v6 = vsel %vm11673_vm6, %v8680_v51, %v977_v52 }
  0xd3   : > { %9714 = vmatpush3.bf16.msra.mxu0 %v10691_v59  ;;  %9736 = vmatpush3.bf16.msra.mxu1 %v10692_v63  ;;  %v918_v59 = vcombine.low %v8672_v40, %v8673_v53  ;;  %v10713_v63 = vld [vmem:[#allocation5 + $0x570] sm:$0xff]   ;;  %v935_v10 = vcombine.high %v8674_v58, %v8675_v3  ;;  %v10719_v40 = vld [vmem:[#allocation5 + $0x538] sm:$0xff]  }
  0xd4   : > { %9715 = vmatprep.subr.bf16.mxu0 %v10693_v2  ;;  %9737 = vmatprep.subr.bf16.mxu1 %v10694_v9  ;;  %v10714_v2 = vld [vmem:[#allocation5 + $0x5f0] sm:$0xff]   ;;  %v934_v9 = vcombine.low %v8674_v58, %v8675_v3  ;;  %v10720_v53 = vld [vmem:[#allocation5 + $0x5b8] sm:$0xff]   ;;  %v10722_v3 = vld [vmem:[#allocation5 + $0xc0] sm:$0xff]  }
  0xd5   : > { %v8676_v8 = vld.sshfl [vmem:[#allocation2 + $0x40] sm:$0x5a pattern:$0x76325410]  ;;  %v989_v29 = vrot.slane %v935_v10, 7 }
  0xd7   : > { %9716 = vmatpush3.bf16.msra.mxu0 %v10695_v11  ;;  %9738 = vmatpush3.bf16.msra.mxu1 %v10696_v12  ;;  %v8682_v11 = vrot.slane %v918_v59, 9  ;;  %v985_v12 = vrot.slane %v919_v60, 7  ;;  %v10721_v60 = vld [vmem:[#allocation5 + $0x40] sm:$0xff]  }
  0xd8   : > { %9717 = vmatprep.subr.bf16.mxu0 %v10697_v15  ;;  %9739 = vmatprep.subr.bf16.mxu1 %v10698_v17  ;;  %v8677_v15 = vld.sshfl [vmem:[#allocation2 + $0x48] sm:$0x5a pattern:$0x76325410]  ;;  %v982_v17 = vsel %vm11673_vm6, %v8681_v61, %v981_v7 }
  0xdb   : > { %9718 = vmatpush3.bf16.msra.mxu0 %v10699_v18  ;;  %9740 = vmatpush3.bf16.msra.mxu1 %v10700_v19  ;;  %v10715_v18 = vld [vmem:[#allocation5 + $0x530] sm:$0xff]  }
  0xdc   : > { %9719 = vmatprep.subr.bf16.mxu0 %v10701_v21  ;;  %9741 = vmatprep.subr.bf16.mxu1 %v10702_v22  ;;  %v10716_v19 = vld [vmem:[#allocation5 + $0x5b0] sm:$0xff]   ;;  %v8678_v21 = vld.sshfl [vmem:[#allocation2 + $0x50] sm:$0x5a pattern:$0x76325410]  ;;  %v950_v22 = vcombine.low %v8676_v8, %v8677_v15 }
  0xde   : > { %v8684_v35 = vrot.slane %v950_v22, 9 }
  0xdf   : > { %9720 = vmatpush3.bf16.msra.mxu0 %v10703_v23  ;;  %9742 = vmatpush3.bf16.msra.mxu1 %v10704_v24  ;;  %v951_v23 = vcombine.high %v8676_v8, %v8677_v15  ;;  %v8683_v24 = vrot.slane %v934_v9, 9 }
  0xe0   : > { %9721 = vmatprep.subr.bf16.mxu0 %v10705_v27  ;;  %9743 = vmatprep.subr.bf16.mxu1 %v10706_v28  ;;  %v8679_v27 = vld.sshfl [vmem:[#allocation2 + $0x58] sm:$0x5a pattern:$0x76325410]  ;;  %v986_v28 = vsel %vm11673_vm6, %v8682_v11, %v985_v12 }
  0xe1   : > { %v966_v33 = vcombine.low %v8678_v21, %v8679_v27  ;;  %v967_v34 = vcombine.high %v8678_v21, %v8679_v27  ;;  %v10724_v27 = vld [vmem:[#allocation5 + $0x80] sm:$0xff]  }
  0xe3   : > { %9722 = vmatpush3.bf16.msra.mxu0 %v10707_v31  ;;  %9744 = vmatpush3.bf16.msra.mxu1 %v10708_v32  ;;  %v1115_v31 = vcombine.low %v978_v6, %v982_v17  ;;  %v1116_v32 = vcombine.high %v978_v6, %v982_v17  ;;  %v8685_v43 = vrot.slane %v966_v33, 9  ;;  %v997_v51 = vrot.slane %v967_v34, 7  ;;  %v10726_v34 = vld [vmem:[#allocation5 + $0xc8] sm:$0xff]  }
  0xe4   : > { %9723 = vmatprep.subr.bf16.mxu0 %v10709_v37  ;;  %9745 = vmatprep.subr.bf16.mxu1 %v10710_v38  ;;  %v993_v37 = vrot.slane %v951_v23, 7  ;;  %v990_v38 = vsel %vm11673_vm6, %v8683_v24, %v989_v29  ;;  %v10723_v24 = vld [vmem:[#allocation5] sm:$0xff]  }
  0xe5   : > { %v1125_v39 = vrot.slane %v1115_v31, %v11512_v36  ;;  %v1117_v52 = vcombine.low %v986_v28, %v990_v38  ;;  %v998_v58 = vsel %vm11673_vm6, %v8685_v43, %v997_v51  ;;  %v10733_v43 = vld [vmem:[#allocation5 + $0x58] sm:$0xff]  }
  0xe6   : > { %v994_v41 = vsel %vm11673_vm6, %v8684_v35, %v993_v37  ;;  %v10727_v35 = vld [vmem:[#allocation5 + $0x8] sm:$0xff]   ;;  %v10734_v51 = vld [vmem:[#allocation5 + $0xd8] sm:$0xff]  }
  0xe7   : > { %9724 = vmatpush3.bf16.msra.mxu0 %v10711_v54  ;;  %9746 = vmatpush3.bf16.msra.mxu1 %v10712_v57  ;;  %v1118_v54 = vcombine.high %v986_v28, %v990_v38  ;;  %v1132_v57 = vrot.slane %v1116_v32, %v11512_v36  ;;  %v1139_v59 = vrot.slane %v1117_v52, %v11512_v36  ;;  %v10725_v28 = vld [vmem:[#allocation5 + $0x48] sm:$0xff]   ;;  %v10729_v38 = vld [vmem:[#allocation5 + $0x50] sm:$0xff]   ;;  %v10735_v52 = vld [vmem:[#allocation5 + $0x18] sm:$0xff]  }
  0xe8   : > { %9725 = vmatprep.subr.bf16.mxu0 %v10713_v63  ;;  %9747 = vmatprep.subr.bf16.mxu1 %v10714_v2  ;;  %v1151_v61 = vcombine.low %v994_v41, %v998_v58  ;;  %v1152_v2 = vcombine.high %v994_v41, %v998_v58  ;;  %v10728_v37 = vld [vmem:[#allocation5 + $0x88] sm:$0xff]   ;;  %v10732_v41 = vld [vmem:[#allocation5 + $0x90] sm:$0xff]   ;;  %v10739_v58 = vld [vmem:[#allocation5 + $0x20] sm:$0xff]  }
  0xe9   : > { %v1146_v63 = vrot.slane %v1118_v54, %v11512_v36  ;;  %v11693_v6 = vcombine.high %v1125_v39, %v1139_v59  ;;  %v11695_v7 = vcombine.low %v1125_v39, %v1139_v59  ;;  %v10730_v39 = vld [vmem:[#allocation5 + $0xd0] sm:$0xff]   ;;  %v10737_v54 = vld [vmem:[#allocation5 + $0x60] sm:$0xff]  }
  0xea   : > { %v11698_v8 = vrot.slane %v1151_v61, %v11512_v36  ;;  %v11703_v10 = vrot.slane %v1152_v2, %v11512_v36  ;;  %v10740_v59 = vld [vmem:[#allocation5 + $0xa0] sm:$0xff]   ;;  %v10742_v61 = vld [vmem:[#allocation5 + $0xe8] sm:$0xff]  }
  0xeb   : > { %9726 = vmatpush3.bf16.msra.mxu0 %v10715_v18  ;;  %9748 = vmatpush3.bf16.msra.mxu1 %v10716_v19  ;;  %v11700_v9 = vcombine.high %v1132_v57, %v1146_v63  ;;  %v11705_v11 = vcombine.low %v1132_v57, %v1146_v63  ;;  %v1586_v12 = vrot.slane %v11693_v6, 2  ;;  %v1583_v15 = vrot.slane %v11695_v7, 2  ;;  %v10738_v57 = vld [vmem:[#allocation5 + $0xe0] sm:$0xff]   ;;  %v10743_v63 = vld [vmem:[#allocation5 + $0x28] sm:$0xff]  }
  0xec   : > { %9727 = vmatprep.subr.bf16.mxu0 %v10717_v25  ;;  %9749 = vmatprep.subr.bf16.mxu1 %v10718_v26  ;;  %v11711_v17 = vcombine.high %v11698_v8, %v11698_v8  ;;  %v11715_v18 = vcombine.high %v11703_v10, %v11703_v10  ;;  %v1584_v21 = vrot.slane %v11698_v8, 2  ;;  %v1590_v23 = vrot.slane %v11703_v10, 2  ;;  %v10744_v2 = vld [vmem:[#allocation5 + $0xa8] sm:$0xff]  }
  0xed   : > { %v1592_v19 = vrot.slane %v11700_v9, 2  ;;  %v1589_v22 = vrot.slane %v11705_v11, 2 }
  0xee   : > { %v1587_v25 = vrot.slane %v11711_v17, 2  ;;  %v1593_v26 = vrot.slane %v11715_v18, 2  ;;  %v1585_v29 = vsel %vm1558_vm7, %v1583_v15, %v1584_v21  ;;  %v10747_v15 = vld [vmem:[#allocation5 + $0x30] sm:$0xff]   ;;  %v10749_v21 = vld [vmem:[#allocation5 + $0x78] sm:$0xff]  }
  0xef   : > { %9728 = vmatpush3.bf16.msra.mxu0 %v10719_v40  ;;  %9750 = vmatpush3.bf16.msra.mxu1 %v10720_v53  ;;  %v1591_v31 = vsel %vm1558_vm7, %v1589_v22, %v1590_v23  ;;  %v10731_v40 = vld [vmem:[#allocation5 + $0x10] sm:$0xff]   ;;  %v10736_v53 = vld [vmem:[#allocation5 + $0x98] sm:$0xff]  }
  0xf0   : > { %9757 = vmatprep.subr.bf16.mxu0 %v10721_v60  ;;  %9779 = vmatprep.subr.bf16.mxu1 %v10722_v3  ;;  %v1588_v32 = vsel %vm1558_vm7, %v1586_v12, %v1587_v25  ;;  %v1594_v33 = vsel %vm1558_vm7, %v1592_v19, %v1593_v26  ;;  %v10741_v60 = vld [vmem:[#allocation5 + $0x68] sm:$0xff]   ;;  %v10745_v3 = vld [vmem:[#allocation5 + $0x70] sm:$0xff]   ;;  %v10750_v22 = vld [vmem:[#allocation5 + $0xf8] sm:$0xff]  }
  0xf1   : > { %2379 = vmatprep.mubr.bf16.mxu0 %v1588_v32  ;;  %2420 = vmatprep.mubr.bf16.mxu1 %v1594_v33  ;;  %v10746_v12 = vld [vmem:[#allocation5 + $0xf0] sm:$0xff]   ;;  %v10751_v23 = vld [vmem:[#allocation5 + $0x38] sm:$0xff]   ;;  %v10753_v25 = vld [vmem:[#allocation5 + $0x140] sm:$0xff]  }
  0xf2   : > { %2380 = vmatmul.mubr.bf16.vlgmr.msra.gmra.mrb[8].mxu0 %v1585_v29  ;;  %2421 = vmatmul.mubr.bf16.vlgmr.msra.gmra.mrb[8].mxu1 %v1591_v31  ;;  %v10748_v19 = vld [vmem:[#allocation5 + $0xb0] sm:$0xff]   ;;  %v10754_v26 = vld [vmem:[#allocation5 + $0x1c0] sm:$0xff]   ;;  %v10757_v29 = vld [vmem:[#allocation5 + $0x148] sm:$0xff]  }
  0xf3   : > { %9758 = vmatpush3.bf16.msra.mxu0 %v10723_v24  ;;  %9780 = vmatpush3.bf16.msra.mxu1 %v10724_v27  ;;  %v10752_v24 = vld [vmem:[#allocation5 + $0xb8] sm:$0xff]   ;;  %v10755_v27 = vld [vmem:[#allocation5 + $0x100] sm:$0xff]   ;;  %v10758_v31 = vld [vmem:[#allocation5 + $0x1c8] sm:$0xff]  }
  0xf4   : > { %9759 = vmatprep.subr.bf16.mxu0 %v10725_v28  ;;  %9781 = vmatprep.subr.bf16.mxu1 %v10726_v34  ;;  %v10756_v28 = vld [vmem:[#allocation5 + $0x180] sm:$0xff]   ;;  %v10759_v32 = vld [vmem:[#allocation5 + $0x108] sm:$0xff]   ;;  %v10761_v34 = vld [vmem:[#allocation5 + $0x150] sm:$0xff]  }
  0xf5   : > { %3037 = vmatprep.mubr.bf16.mxu0 %v11556_v1  ;;  %3078 = vmatprep.mubr.bf16.mxu1 %v11570_v13  ;;  %v10760_v33 = vld [vmem:[#allocation5 + $0x188] sm:$0xff]  }
  0xf7   : > { %9760 = vmatpush3.bf16.msra.mxu0 %v10727_v35  ;;  %9782 = vmatpush3.bf16.msra.mxu1 %v10728_v37  ;;  %v10762_v35 = vld [vmem:[#allocation5 + $0x1d0] sm:$0xff]  }
  0xf8   : > { %9761 = vmatprep.subr.bf16.mxu0 %v10729_v38  ;;  %9783 = vmatprep.subr.bf16.mxu1 %v10730_v39  ;;  %v10763_v37 = vld [vmem:[#allocation5 + $0x110] sm:$0xff]   ;;  %v10765_v39 = vld [vmem:[#allocation5 + $0x158] sm:$0xff]  }
  0xf9   : > { %v10764_v38 = vld [vmem:[#allocation5 + $0x190] sm:$0xff]  }
  0xfb   : > { %9762 = vmatpush3.bf16.msra.mxu0 %v10731_v40  ;;  %9784 = vmatpush3.bf16.msra.mxu1 %v10732_v41  ;;  %v10766_v40 = vld [vmem:[#allocation5 + $0x1d8] sm:$0xff]  }
  0xfc   : > { %9763 = vmatprep.subr.bf16.mxu0 %v10733_v43  ;;  %9785 = vmatprep.subr.bf16.mxu1 %v10734_v51  ;;  %v10767_v41 = vld [vmem:[#allocation5 + $0x118] sm:$0xff]   ;;  %v10769_v51 = vld [vmem:[#allocation5 + $0x160] sm:$0xff]  }
  0xfd   : > { %v10768_v43 = vld [vmem:[#allocation5 + $0x198] sm:$0xff]  }
  0xff   : > { %9764 = vmatpush3.bf16.msra.mxu0 %v10735_v52  ;;  %9786 = vmatpush3.bf16.msra.mxu1 %v10736_v53  ;;  %v10770_v52 = vld [vmem:[#allocation5 + $0x1e0] sm:$0xff]  }
 0x100   : > { %9765 = vmatprep.subr.bf16.mxu0 %v10737_v54  ;;  %9787 = vmatprep.subr.bf16.mxu1 %v10738_v57  ;;  %v10771_v53 = vld [vmem:[#allocation5 + $0x120] sm:$0xff]   ;;  %v10773_v57 = vld [vmem:[#allocation5 + $0x168] sm:$0xff]  }
 0x101   : > { %v10772_v54 = vld [vmem:[#allocation5 + $0x1a0] sm:$0xff]  }
 0x103   : > { %9766 = vmatpush3.bf16.msra.mxu0 %v10739_v58  ;;  %9788 = vmatpush3.bf16.msra.mxu1 %v10740_v59  ;;  %v10774_v58 = vld [vmem:[#allocation5 + $0x1e8] sm:$0xff]  }
 0x104   : > { %9767 = vmatprep.subr.bf16.mxu0 %v10741_v60  ;;  %9789 = vmatprep.subr.bf16.mxu1 %v10742_v61  ;;  %v10775_v59 = vld [vmem:[#allocation5 + $0x128] sm:$0xff]   ;;  %v10777_v61 = vld [vmem:[#allocation5 + $0x170] sm:$0xff]  }
 0x105   : > { %v10776_v60 = vld [vmem:[#allocation5 + $0x1a8] sm:$0xff]  }
 0x107   : > { %9768 = vmatpush3.bf16.msra.mxu0 %v10743_v63  ;;  %9790 = vmatpush3.bf16.msra.mxu1 %v10744_v2  ;;  %v10778_v63 = vld [vmem:[#allocation5 + $0x1f0] sm:$0xff]  }
 0x108   : > { %9769 = vmatprep.subr.bf16.mxu0 %v10745_v3  ;;  %9791 = vmatprep.subr.bf16.mxu1 %v10746_v12  ;;  %v10779_v2 = vld [vmem:[#allocation5 + $0x130] sm:$0xff]   ;;  %v10781_v12 = vld [vmem:[#allocation5 + $0x178] sm:$0xff]  }
 0x109   : > { %v10780_v3 = vld [vmem:[#allocation5 + $0x1b0] sm:$0xff]  }
 0x10b   : > { %9770 = vmatpush3.bf16.msra.mxu0 %v10747_v15  ;;  %9792 = vmatpush3.bf16.msra.mxu1 %v10748_v19  ;;  %v10782_v15 = vld [vmem:[#allocation5 + $0x1f8] sm:$0xff]  }
 0x10c   : > { %9771 = vmatprep.subr.bf16.mxu0 %v10749_v21  ;;  %9793 = vmatprep.subr.bf16.mxu1 %v10750_v22  ;;  %v10783_v19 = vld [vmem:[#allocation5 + $0x138] sm:$0xff]   ;;  %v10785_v22 = vld [vmem:[#allocation5 + $0x240] sm:$0xff]  }
 0x10d   : > { %v10784_v21 = vld [vmem:[#allocation5 + $0x1b8] sm:$0xff]  }
 0x10f   : > { %9772 = vmatpush3.bf16.msra.mxu0 %v10751_v23  ;;  %9794 = vmatpush3.bf16.msra.mxu1 %v10752_v24  ;;  %v10786_v23 = vld [vmem:[#allocation5 + $0x2c0] sm:$0xff]  }
 0x110   : > { %9801 = vmatprep.subr.bf16.mxu0 %v10753_v25  ;;  %9823 = vmatprep.subr.bf16.mxu1 %v10754_v26  ;;  %v10787_v24 = vld [vmem:[#allocation5 + $0x200] sm:$0xff]   ;;  %v10789_v26 = vld [vmem:[#allocation5 + $0x248] sm:$0xff]  }
 0x111   : > { %v10788_v25 = vld [vmem:[#allocation5 + $0x280] sm:$0xff]  }
 0x112   : > { %3038 = vmatmul.mubr.bf16.vlgmr.msra.gmra.mrb[12].mxu0 %v11559_v4  ;;  %3079 = vmatmul.mubr.bf16.vlgmr.msra.gmra.mrb[12].mxu1 %v11576_v16 }
 0x113   : > { %9802 = vmatpush3.bf16.msra.mxu0 %v10755_v27  ;;  %9824 = vmatpush3.bf16.msra.mxu1 %v10756_v28  ;;  %v10790_v27 = vld [vmem:[#allocation5 + $0x2c8] sm:$0xff]  }
 0x114   : > { %9803 = vmatprep.subr.bf16.mxu0 %v10757_v29  ;;  %9825 = vmatprep.subr.bf16.mxu1 %v10758_v31  ;;  %v10791_v28 = vld [vmem:[#allocation5 + $0x208] sm:$0xff]   ;;  %v10793_v31 = vld [vmem:[#allocation5 + $0x250] sm:$0xff]  }
 0x115   : > { %3119 = vmatprep.mubr.bf16.mxu0 %v11625_v42  ;;  %3160 = vmatprep.mubr.bf16.mxu1 %v11627_v44  ;;  %v10792_v29 = vld [vmem:[#allocation5 + $0x288] sm:$0xff]  }
 0x117   : > { %9804 = vmatpush3.bf16.msra.mxu0 %v10759_v32  ;;  %9826 = vmatpush3.bf16.msra.mxu1 %v10760_v33  ;;  %v10794_v32 = vld [vmem:[#allocation5 + $0x2d0] sm:$0xff]  }
 0x118   : > { %9805 = vmatprep.subr.bf16.mxu0 %v10761_v34  ;;  %9827 = vmatprep.subr.bf16.mxu1 %v10762_v35  ;;  %v10795_v33 = vld [vmem:[#allocation5 + $0x210] sm:$0xff]   ;;  %v10797_v35 = vld [vmem:[#allocation5 + $0x258] sm:$0xff]  }
 0x119   : > { %v10796_v34 = vld [vmem:[#allocation5 + $0x290] sm:$0xff]  }
 0x11b   : > { %9806 = vmatpush3.bf16.msra.mxu0 %v10763_v37  ;;  %9828 = vmatpush3.bf16.msra.mxu1 %v10764_v38  ;;  %v10798_v37 = vld [vmem:[#allocation5 + $0x2d8] sm:$0xff]  }
 0x11c   : > { %9807 = vmatprep.subr.bf16.mxu0 %v10765_v39  ;;  %9829 = vmatprep.subr.bf16.mxu1 %v10766_v40  ;;  %v10799_v38 = vld [vmem:[#allocation5 + $0x218] sm:$0xff]   ;;  %v10801_v40 = vld [vmem:[#allocation5 + $0x260] sm:$0xff]  }
 0x11d   : > { %v10800_v39 = vld [vmem:[#allocation5 + $0x298] sm:$0xff]  }
 0x11f   : > { %9808 = vmatpush3.bf16.msra.mxu0 %v10767_v41  ;;  %9830 = vmatpush3.bf16.msra.mxu1 %v10768_v43  ;;  %v10802_v41 = vld [vmem:[#allocation5 + $0x2e0] sm:$0xff]  }
 0x120   : > { %9809 = vmatprep.subr.bf16.mxu0 %v10769_v51  ;;  %9831 = vmatprep.subr.bf16.mxu1 %v10770_v52  ;;  %v10803_v43 = vld [vmem:[#allocation5 + $0x220] sm:$0xff]   ;;  %v10805_v52 = vld [vmem:[#allocation5 + $0x268] sm:$0xff]  }
 0x121   : > { %v10804_v51 = vld [vmem:[#allocation5 + $0x2a0] sm:$0xff]  }
 0x123   : > { %9810 = vmatpush3.bf16.msra.mxu0 %v10771_v53  ;;  %9832 = vmatpush3.bf16.msra.mxu1 %v10772_v54  ;;  %v10806_v53 = vld [vmem:[#allocation5 + $0x2e8] sm:$0xff]  }
 0x124   : > { %9811 = vmatprep.subr.bf16.mxu0 %v10773_v57  ;;  %9833 = vmatprep.subr.bf16.mxu1 %v10774_v58  ;;  %v10807_v54 = vld [vmem:[#allocation5 + $0x228] sm:$0xff]   ;;  %v10809_v58 = vld [vmem:[#allocation5 + $0x270] sm:$0xff]  }
 0x125   : > { %v10808_v57 = vld [vmem:[#allocation5 + $0x2a8] sm:$0xff]  }
 0x127   : > { %9812 = vmatpush3.bf16.msra.mxu0 %v10775_v59  ;;  %9834 = vmatpush3.bf16.msra.mxu1 %v10776_v60  ;;  %v10810_v59 = vld [vmem:[#allocation5 + $0x2f0] sm:$0xff]  }
 0x128   : > { %9813 = vmatprep.subr.bf16.mxu0 %v10777_v61  ;;  %9835 = vmatprep.subr.bf16.mxu1 %v10778_v63  ;;  %v10811_v60 = vld [vmem:[#allocation5 + $0x230] sm:$0xff]   ;;  %v10813_v63 = vld [vmem:[#allocation5 + $0x278] sm:$0xff]  }
 0x129   : > { %v10812_v61 = vld [vmem:[#allocation5 + $0x2b0] sm:$0xff]  }
 0x12b   : > { %9814 = vmatpush3.bf16.msra.mxu0 %v10779_v2  ;;  %9836 = vmatpush3.bf16.msra.mxu1 %v10780_v3  ;;  %v10814_v2 = vld [vmem:[#allocation5 + $0x2f8] sm:$0xff]  }
 0x12c   : > { %9815 = vmatprep.subr.bf16.mxu0 %v10781_v12  ;;  %9837 = vmatprep.subr.bf16.mxu1 %v10782_v15  ;;  %v10815_v3 = vld [vmem:[#allocation5 + $0x238] sm:$0xff]   ;;  %v10817_v15 = vld [vmem:[#allocation5 + $0x640] sm:$0xff]  }
 0x12d   : > { %v10816_v12 = vld [vmem:[#allocation5 + $0x2b8] sm:$0xff]  }
 0x12f   : > { %9816 = vmatpush3.bf16.msra.mxu0 %v10783_v19  ;;  %9838 = vmatpush3.bf16.msra.mxu1 %v10784_v21  ;;  %v10818_v19 = vld [vmem:[#allocation5 + $0x6c0] sm:$0xff]  }
 0x130   : > { %9845 = vmatprep.subr.bf16.mxu0 %v10785_v22  ;;  %9867 = vmatprep.subr.bf16.mxu1 %v10786_v23  ;;  %v10819_v21 = vld [vmem:[#allocation5 + $0x600] sm:$0xff]   ;;  %v3448_v22 = vrot.slane %v11556_v1, 4 }
 0x131   : > { %v10820_v23 = vld [vmem:[#allocation5 + $0x680] sm:$0xff]  }
 0x132   : > { %3120 = vmatmul.mubr.bf16.vlgmr.msra.gmra.mrb[16].mxu0 %v11629_v46  ;;  %3161 = vmatmul.mubr.bf16.vlgmr.msra.gmra.mrb[16].mxu1 %v11631_v47 }
 0x133   : > { %9846 = vmatpush3.bf16.msra.mxu0 %v10787_v24  ;;  %9868 = vmatpush3.bf16.msra.mxu1 %v10788_v25  ;;  %v3454_v24 = vrot.slane %v11570_v13, 4  ;;  %v10821_v25 = vld [vmem:[#allocation5 + $0x648] sm:$0xff]   ;;  %v10825_v13 = vld [vmem:[#allocation5 + $0x650] sm:$0xff]  }
 0x134   : > { %9847 = vmatprep.subr.bf16.mxu0 %v10789_v26  ;;  %9869 = vmatprep.subr.bf16.mxu1 %v10790_v27  ;;  %v10822_v26 = vld [vmem:[#allocation5 + $0x6c8] sm:$0xff]  }
 0x135   : > { %3201 = vmatprep.mubr.bf16.mxu0 %v11693_v6  ;;  %3242 = vmatprep.mubr.bf16.mxu1 %v11700_v9  ;;  %v10823_v27 = vld [vmem:[#allocation5 + $0x608] sm:$0xff]   ;;  %v3456_v1 = vsel %vm3444_vm8, %v3454_v24, %v11581_v20  ;;  %v10833_v20 = vld [vmem:[#allocation5 + $0x660] sm:$0xff]  }
 0x137   : > { %9848 = vmatpush3.bf16.msra.mxu0 %v10791_v28  ;;  %9870 = vmatpush3.bf16.msra.mxu1 %v10792_v29  ;;  %v10824_v28 = vld [vmem:[#allocation5 + $0x688] sm:$0xff]   ;;  %v3450_v29 = vsel %vm3444_vm8, %v3448_v22, %v11563_v5  ;;  %v10831_v5 = vld [vmem:[#allocation5 + $0x618] sm:$0xff]   ;;  %v10850_v22 = vld [vmem:[#allocation5 + $0x7c0] sm:$0xff]  }
 0x138   : > { %9849 = vmatprep.subr.bf16.mxu0 %v10793_v31  ;;  %9871 = vmatprep.subr.bf16.mxu1 %v10794_v32  ;;  %v10826_v31 = vld [vmem:[#allocation5 + $0x6d0] sm:$0xff]  }
 0x139   : > { %v10827_v32 = vld [vmem:[#allocation5 + $0x610] sm:$0xff]  }
 0x13b   : > { %9850 = vmatpush3.bf16.msra.mxu0 %v10795_v33  ;;  %9872 = vmatpush3.bf16.msra.mxu1 %v10796_v34  ;;  %v10828_v33 = vld [vmem:[#allocation5 + $0x690] sm:$0xff]   ;;  %v10829_v34 = vld [vmem:[#allocation5 + $0x658] sm:$0xff]  }
 0x13c   : > { %9851 = vmatprep.subr.bf16.mxu0 %v10797_v35  ;;  %9873 = vmatprep.subr.bf16.mxu1 %v10798_v37  ;;  %v10830_v35 = vld [vmem:[#allocation5 + $0x6d8] sm:$0xff]  }
 0x13d   : > { %v10832_v37 = vld [vmem:[#allocation5 + $0x698] sm:$0xff]  }
 0x13f   : > { %9852 = vmatpush3.bf16.msra.mxu0 %v10799_v38  ;;  %9874 = vmatpush3.bf16.msra.mxu1 %v10800_v39  ;;  %v10834_v38 = vld [vmem:[#allocation5 + $0x6e0] sm:$0xff]  }
 0x140   : > { %9853 = vmatprep.subr.bf16.mxu0 %v10801_v40  ;;  %9875 = vmatprep.subr.bf16.mxu1 %v10802_v41  ;;  %v10835_v39 = vld [vmem:[#allocation5 + $0x620] sm:$0xff]   ;;  %v10837_v41 = vld [vmem:[#allocation5 + $0x668] sm:$0xff]  }
 0x141   : > { %v10836_v40 = vld [vmem:[#allocation5 + $0x6a0] sm:$0xff]  }
 0x143   : > { %9854 = vmatpush3.bf16.msra.mxu0 %v10803_v43  ;;  %9876 = vmatpush3.bf16.msra.mxu1 %v10804_v51  ;;  %v10838_v43 = vld [vmem:[#allocation5 + $0x6e8] sm:$0xff]  }
 0x144   : > { %9855 = vmatprep.subr.bf16.mxu0 %v10805_v52  ;;  %9877 = vmatprep.subr.bf16.mxu1 %v10806_v53  ;;  %v10839_v51 = vld [vmem:[#allocation5 + $0x628] sm:$0xff]   ;;  %v10841_v53 = vld [vmem:[#allocation5 + $0x670] sm:$0xff]  }
 0x145   : > { %v10840_v52 = vld [vmem:[#allocation5 + $0x6a8] sm:$0xff]  }
 0x147   : > { %9856 = vmatpush3.bf16.msra.mxu0 %v10807_v54  ;;  %9878 = vmatpush3.bf16.msra.mxu1 %v10808_v57  ;;  %v10842_v54 = vld [vmem:[#allocation5 + $0x6f0] sm:$0xff]  }
 0x148   : > { %9857 = vmatprep.subr.bf16.mxu0 %v10809_v58  ;;  %9879 = vmatprep.subr.bf16.mxu1 %v10810_v59  ;;  %v10843_v57 = vld [vmem:[#allocation5 + $0x630] sm:$0xff]   ;;  %v3445_v58 = vrot.slane %v11559_v4, 4  ;;  %v10849_v4 = vld [vmem:[#allocation5 + $0x740] sm:$0xff]  }
 0x149   : > { %v10844_v59 = vld [vmem:[#allocation5 + $0x6b0] sm:$0xff]  }
 0x14b   : > { %9858 = vmatpush3.bf16.msra.mxu0 %v10811_v60  ;;  %9880 = vmatpush3.bf16.msra.mxu1 %v10812_v61  ;;  %v3446_v60 = vrot.slane %v11554_v62, 4  ;;  %v10845_v61 = vld [vmem:[#allocation5 + $0x678] sm:$0xff]  }
 0x14c   : > { %9859 = vmatprep.subr.bf16.mxu0 %v10813_v63  ;;  %9881 = vmatprep.subr.bf16.mxu1 %v10814_v2  ;;  %v3451_v63 = vrot.slane %v11576_v16, 4  ;;  %v10846_v2 = vld [vmem:[#allocation5 + $0x6f8] sm:$0xff]   ;;  %v10851_v16 = vld [vmem:[#allocation5 + $0x700] sm:$0xff]  }
 0x14f   : > { %9860 = vmatpush3.bf16.msra.mxu0 %v10815_v3  ;;  %9882 = vmatpush3.bf16.msra.mxu1 %v10816_v12  ;;  %v3452_v3 = vrot.slane %v11573_v14, 4  ;;  %v10847_v12 = vld [vmem:[#allocation5 + $0x638] sm:$0xff]   ;;  %v3447_v14 = vsel %vm3444_vm8, %v3445_v58, %v3446_v60  ;;  %v10867_v58 = vld [vmem:[#allocation5 + $0x720] sm:$0xff]   ;;  %v10869_v60 = vld [vmem:[#allocation5 + $0x768] sm:$0xff]  }
 0x150   : > { %9889 = vmatprep.subr.bf16.mxu0 %v10817_v15  ;;  %9911 = vmatprep.subr.bf16.mxu1 %v10818_v19  ;;  %v3460_v15 = vrot.slane %v11625_v42, 4  ;;  %v10848_v19 = vld [vmem:[#allocation5 + $0x6b8] sm:$0xff]  }
 0x151   : > { %v3453_v42 = vsel %vm3444_vm8, %v3451_v63, %v3452_v3  ;;  %v10871_v63 = vld [vmem:[#allocation5 + $0x728] sm:$0xff]   ;;  %v10873_v3 = vld [vmem:[#allocation5 + $0x770] sm:$0xff]  }
 0x152   : > { %3202 = vmatmul.mubr.bf16.vlgmr.msra.gmra.mrb[20].mxu0 %v11695_v7  ;;  %3243 = vmatmul.mubr.bf16.vlgmr.msra.gmra.mrb[20].mxu1 %v11705_v11 }
 0x153   : > { %9890 = vmatpush3.bf16.msra.mxu0 %v10819_v21  ;;  %9912 = vmatpush3.bf16.msra.mxu1 %v10820_v23  ;;  %v3466_v21 = vrot.slane %v11627_v44, 4  ;;  %v10853_v44 = vld [vmem:[#allocation5 + $0x748] sm:$0xff]  }
 0x154   : > { %9891 = vmatprep.subr.bf16.mxu0 %v10821_v25  ;;  %9913 = vmatprep.subr.bf16.mxu1 %v10822_v26  ;;  %v10852_v26 = vld [vmem:[#allocation5 + $0x780] sm:$0xff]  }
 0x155   : > { %4101 = vmatprep.mubr.bf16.mxu0 %v3450_v29  ;;  %4142 = vmatprep.mubr.bf16.mxu1 %v3456_v1  ;;  %v10854_v29 = vld [vmem:[#allocation5 + $0x7c8] sm:$0xff]  }
 0x157   : > { %9892 = vmatpush3.bf16.msra.mxu0 %v10823_v27  ;;  %9914 = vmatpush3.bf16.msra.mxu1 %v10824_v28 }
 0x158   : > { %9893 = vmatprep.subr.bf16.mxu0 %v10825_v13  ;;  %9915 = vmatprep.subr.bf16.mxu1 %v10826_v31  ;;  %v10855_v13 = vld [vmem:[#allocation5 + $0x708] sm:$0xff]  }
 0x15b   : > { %9894 = vmatpush3.bf16.msra.mxu0 %v10827_v32  ;;  %9916 = vmatpush3.bf16.msra.mxu1 %v10828_v33  ;;  %v10856_v32 = vld [vmem:[#allocation5 + $0x788] sm:$0xff]  }
 0x15c   : > { %9895 = vmatprep.subr.bf16.mxu0 %v10829_v34  ;;  %9917 = vmatprep.subr.bf16.mxu1 %v10830_v35  ;;  %v3462_v35 = vsel %vm3444_vm8, %v3460_v15, %v11645_v55  ;;  %v10861_v55 = vld [vmem:[#allocation5 + $0x758] sm:$0xff]   ;;  %v10875_v15 = vld [vmem:[#allocation5 + $0x730] sm:$0xff]  }
 0x15f   : > { %9896 = vmatpush3.bf16.msra.mxu0 %v10831_v5  ;;  %9918 = vmatpush3.bf16.msra.mxu1 %v10832_v37  ;;  %v3468_v5 = vsel %vm3444_vm8, %v3466_v21, %v11649_v56  ;;  %v10857_v37 = vld [vmem:[#allocation5 + $0x750] sm:$0xff]   ;;  %v10862_v56 = vld [vmem:[#allocation5 + $0x7d8] sm:$0xff]  }
 0x160   : > { %9897 = vmatprep.subr.bf16.mxu0 %v10833_v20  ;;  %9919 = vmatprep.subr.bf16.mxu1 %v10834_v38  ;;  %v10858_v38 = vld [vmem:[#allocation5 + $0x7d0] sm:$0xff]   ;;  %v10877_v21 = vld [vmem:[#allocation5 + $0x778] sm:$0xff]  }
 0x163   : > { %9898 = vmatpush3.bf16.msra.mxu0 %v10835_v39  ;;  %9920 = vmatpush3.bf16.msra.mxu1 %v10836_v40 }
 0x164   : > { %9899 = vmatprep.subr.bf16.mxu0 %v10837_v41  ;;  %9921 = vmatprep.subr.bf16.mxu1 %v10838_v43  ;;  %v10859_v41 = vld [vmem:[#allocation5 + $0x710] sm:$0xff]  }
 0x165   : > { %v10860_v43 = vld [vmem:[#allocation5 + $0x790] sm:$0xff]  }
 0x167   : > { %9900 = vmatpush3.bf16.msra.mxu0 %v10839_v51  ;;  %9922 = vmatpush3.bf16.msra.mxu1 %v10840_v52  ;;  %v10863_v52 = vld [vmem:[#allocation5 + $0x718] sm:$0xff]  }
 0x168   : > { %9901 = vmatprep.subr.bf16.mxu0 %v10841_v53  ;;  %9923 = vmatprep.subr.bf16.mxu1 %v10842_v54  ;;  %v10864_v53 = vld [vmem:[#allocation5 + $0x798] sm:$0xff]   ;;  %v10865_v54 = vld [vmem:[#allocation5 + $0x760] sm:$0xff]  }
 0x16b   : > { %9902 = vmatpush3.bf16.msra.mxu0 %v10843_v57  ;;  %9924 = vmatpush3.bf16.msra.mxu1 %v10844_v59  ;;  %v10866_v57 = vld [vmem:[#allocation5 + $0x7e0] sm:$0xff]  }
 0x16c   : > { %9903 = vmatprep.subr.bf16.mxu0 %v10845_v61  ;;  %9925 = vmatprep.subr.bf16.mxu1 %v10846_v2  ;;  %v10868_v59 = vld [vmem:[#allocation5 + $0x7a0] sm:$0xff]   ;;  %v10870_v61 = vld [vmem:[#allocation5 + $0x7e8] sm:$0xff]  }
 0x16d   : > { %v10872_v2 = vld [vmem:[#allocation5 + $0x7a8] sm:$0xff]  }
 0x16f   : > { %9904 = vmatpush3.bf16.msra.mxu0 %v10847_v12  ;;  %9926 = vmatpush3.bf16.msra.mxu1 %v10848_v19  ;;  %v10874_v12 = vld [vmem:[#allocation5 + $0x7f0] sm:$0xff]  }
 0x170   : > { %9933 = vmatprep.subr.bf16.mxu0 %v10849_v4  ;;  %9955 = vmatprep.subr.bf16.mxu1 %v10850_v22  ;;  %v10876_v19 = vld [vmem:[#allocation5 + $0x7b0] sm:$0xff]   ;;  %v10878_v4 = vld [vmem:[#allocation5 + $0x7f8] sm:$0xff]  }
 0x171   : > { %v10879_v22 = vld [vmem:[#allocation5 + $0x738] sm:$0xff]  }
 0x172   : > { %4102 = vmatmul.mubr.bf16.vlgmr.msra.gmra.mrb[24].mxu0 %v3447_v14  ;;  %4143 = vmatmul.mubr.bf16.vlgmr.msra.gmra.mrb[24].mxu1 %v3453_v42  ;;  %v10883_v14 = vld [vmem:[#allocation5 + $0x800] sm:$0xff]   ;;  %v3472_v42 = vrot.slane %v11693_v6, 4 }
 0x173   : > { %9934 = vmatpush3.bf16.msra.mxu0 %v10851_v16  ;;  %9956 = vmatpush3.bf16.msra.mxu1 %v10852_v26  ;;  %v10880_v16 = vld [vmem:[#allocation5 + $0x7b8] sm:$0xff]   ;;  %v10881_v26 = vld [vmem:[#allocation5 + $0x840] sm:$0xff]  }
 0x174   : > { %9935 = vmatprep.subr.bf16.mxu0 %v10853_v44  ;;  %9957 = vmatprep.subr.bf16.mxu1 %v10854_v29  ;;  %v10884_v44 = vld [vmem:[#allocation5 + $0x880] sm:$0xff]   ;;  %v10887_v29 = vld [vmem:[#allocation5 + $0x808] sm:$0xff]   ;;  %v3474_v6 = vsel %vm3444_vm8, %v3472_v42, %v11711_v17  ;;  %v10895_v17 = vld [vmem:[#allocation5 + $0x818] sm:$0xff]  }
 0x175   : > { %4183 = vmatprep.mubr.bf16.mxu0 %v3462_v35  ;;  %4224 = vmatprep.mubr.bf16.mxu1 %v3468_v5  ;;  %v10894_v35 = vld [vmem:[#allocation5 + $0x8d8] sm:$0xff]  }
 0x176   : > { %v10896_v5 = vld [vmem:[#allocation5 + $0x898] sm:$0xff]  }
 0x177   : > { %v9641_v62 = vpop.f32.mrb[0].mxu0  ;;  %9936 = vmatpush3.bf16.msra.mxu0 %v10855_v13  ;;  %9958 = vmatpush3.bf16.msra.mxu1 %v10856_v32  ;;  %v10889_v13 = vld [vmem:[#allocation5 + $0x850] sm:$0xff]  }
 0x178   : > { %v9642_v23 = vpop.f32.mrb[1].mxu0  ;;  %9937 = vmatprep.subr.bf16.mxu0 %v10857_v37  ;;  %9959 = vmatprep.subr.bf16.mxu1 %v10858_v38  ;;  %v10891_v32 = vld [vmem:[#allocation5 + $0x810] sm:$0xff]   ;;  %v10898_v37 = vld [vmem:[#allocation5 + $0x8e0] sm:$0xff]   ;;  %v3469_v38 = vrot.slane %v11695_v7, 4 }
 0x179   : > { %v9643_v24 = vadd.f32 %v9642_v23, %v9641_v62  ;;  %v9644_v25 = vpop.f32.mrb[2].mxu0  ;;  %v3457_v62 = vrot.slane %v11629_v46, 4  ;;  %v3458_v23 = vrot.slane %v11634_v49, 4  ;;  %v3478_v46 = vrot.slane %v11700_v9, 4  ;;  %v10905_v7 = vld [vmem:[#allocation5 + $0x870] sm:$0xff]  }
 0x17a   : > { %v9645_v27 = vpop.f32.mrb[3].mxu0 }
 0x17b   : > { %v9646_v28 = vadd.f32 %v9645_v27, %v9644_v25  ;;  %9938 = vmatpush3.bf16.msra.mxu0 %v10859_v41  ;;  %9960 = vmatpush3.bf16.msra.mxu1 %v10860_v43  ;;  %v3464_v25 = vrot.slane %v11637_v50, 4  ;;  %v10882_v27 = vld [vmem:[#allocation5 + $0x8c0] sm:$0xff]   ;;  %v3459_v49 = vsel %vm3444_vm8, %v3457_v62, %v3458_v23  ;;  %v10886_v50 = vld [vmem:[#allocation5 + $0x8c8] sm:$0xff]   ;;  %v3480_v9 = vsel %vm3444_vm8, %v3478_v46, %v11715_v18  ;;  %v10909_v62 = vld [vmem:[#allocation5 + $0x878] sm:$0xff]  }
 0x17c   : > { %v9663_v1 = vpop.f32.mrb[0].mxu1  ;;  %9939 = vmatprep.subr.bf16.mxu0 %v10861_v55  ;;  %9961 = vmatprep.subr.bf16.mxu1 %v10862_v56  ;;  %v10897_v18 = vld [vmem:[#allocation5 + $0x860] sm:$0xff]   ;;  %v3470_v41 = vrot.slane %v11698_v8, 4  ;;  %v10901_v43 = vld [vmem:[#allocation5 + $0x868] sm:$0xff]   ;;  %v3475_v55 = vrot.slane %v11705_v11, 4 }
 0x17d   : > { %v9664_v31 = vpop.f32.mrb[1].mxu1  ;;  %v10902_v56 = vld [vmem:[#allocation5 + $0x8e8] sm:$0xff]  }
 0x17e   : > { %v9665_v33 = vadd.f32 %v9664_v31, %v9663_v1  ;;  %v9666_v34 = vpop.f32.mrb[2].mxu1  ;;  %v10888_v1 = vld [vmem:[#allocation5 + $0x888] sm:$0xff]   ;;  %v10890_v31 = vld [vmem:[#allocation5 + $0x8d0] sm:$0xff]  }
 0x17f   : > { %v9667_v20 = vpop.f32.mrb[3].mxu1  ;;  %9940 = vmatpush3.bf16.msra.mxu0 %v10863_v52  ;;  %9962 = vmatpush3.bf16.msra.mxu1 %v10864_v53  ;;  %v3476_v52 = vrot.slane %v11703_v10, 4 }
 0x180   : > { %v11757_v39 = vadd.f32 %v9665_v33, %v9643_v24  ;;  %v9668_v40 = vadd.f32 %v9667_v20, %v9666_v34  ;;  %9941 = vmatprep.subr.bf16.mxu0 %v10865_v54  ;;  %9963 = vmatprep.subr.bf16.mxu1 %v10866_v57  ;;  %v3463_v24 = vrot.slane %v11631_v47, 4  ;;  %v10892_v33 = vld [vmem:[#allocation5 + $0x890] sm:$0xff]   ;;  %v10893_v34 = vld [vmem:[#allocation5 + $0x858] sm:$0xff]   ;;  %v10899_v20 = vld [vmem:[#allocation5 + $0x820] sm:$0xff]  }
 0x181   : > { %v10903_v57 = vld [vmem:[#allocation5 + $0x828] sm:$0xff]  }
 0x182   : > { %v11759_v51 = vadd.f32 %v9668_v40, %v9646_v28  ;;  %v3465_v47 = vsel %vm3444_vm8, %v3463_v24, %v3464_v25  ;;  %v10885_v28 = vld [vmem:[#allocation5 + $0x848] sm:$0xff]   ;;  %v10900_v40 = vld [vmem:[#allocation5 + $0x8a0] sm:$0xff]   ;;  %v10911_v25 = vld [vmem:[#allocation5 + $0x838] sm:$0xff]  }
 0x183   : > { %9942 = vmatpush3.bf16.msra.mxu0 %v10867_v58  ;;  %9964 = vmatpush3.bf16.msra.mxu1 %v10868_v59  ;;  %v10904_v58 = vld [vmem:[#allocation5 + $0x8a8] sm:$0xff]  }
 0x184   : > { %9943 = vmatprep.subr.bf16.mxu0 %v10869_v60  ;;  %9965 = vmatprep.subr.bf16.mxu1 %v10870_v61  ;;  %v10906_v61 = vld [vmem:[#allocation5 + $0x8f0] sm:$0xff]  }
 0x187   : > { %9944 = vmatpush3.bf16.msra.mxu0 %v10871_v63  ;;  %9966 = vmatpush3.bf16.msra.mxu1 %v10872_v2 }
 0x188   : > { %9945 = vmatprep.subr.bf16.mxu0 %v10873_v3  ;;  %9967 = vmatprep.subr.bf16.mxu1 %v10874_v12 }
 0x18b   : > { %9946 = vmatpush3.bf16.msra.mxu0 %v10875_v15  ;;  %9968 = vmatpush3.bf16.msra.mxu1 %v10876_v19 }
 0x18c   : > { %9947 = vmatprep.subr.bf16.mxu0 %v10877_v21  ;;  %9969 = vmatprep.subr.bf16.mxu1 %v10878_v4  ;;  %v10907_v21 = vld [vmem:[#allocation5 + $0x830] sm:$0xff]  }
 0x18d   : > { %v10908_v4 = vld [vmem:[#allocation5 + $0x8b0] sm:$0xff]  }
 0x18f   : > { %9948 = vmatpush3.bf16.msra.mxu0 %v10879_v22  ;;  %9970 = vmatpush3.bf16.msra.mxu1 %v10880_v16  ;;  %v10910_v22 = vld [vmem:[#allocation5 + $0x8f8] sm:$0xff]  }
 0x190   : > { %9977 = vmatprep.subr.bf16.mxu0 %v10881_v26  ;;  %9999 = vmatprep.subr.bf16.mxu1 %v10882_v27  ;;  %v10912_v26 = vld [vmem:[#allocation5 + $0x8b8] sm:$0xff]   ;;  %v3477_v27 = vsel %vm3444_vm8, %v3475_v55, %v3476_v52 }
 0x192   : > { %4184 = vmatmul.mubr.bf16.vlgmr.msra.gmra.mrb[28].mxu0 %v3459_v49  ;;  %4225 = vmatmul.mubr.bf16.vlgmr.msra.gmra.mrb[28].mxu1 %v3465_v47 }
 0x193   : > { %9978 = vmatpush3.bf16.msra.mxu0 %v10883_v14  ;;  %10000 = vmatpush3.bf16.msra.mxu1 %v10884_v44 }
 0x194   : > { %9979 = vmatprep.subr.bf16.mxu0 %v10885_v28  ;;  %10001 = vmatprep.subr.bf16.mxu1 %v10886_v50 }
 0x195   : > { %4265 = vmatprep.mubr.bf16.mxu0 %v3474_v6  ;;  %4306 = vmatprep.mubr.bf16.mxu1 %v3480_v9 }
 0x197   : > { %9980 = vmatpush3.bf16.msra.mxu0 %v10887_v29  ;;  %10002 = vmatpush3.bf16.msra.mxu1 %v10888_v1 }
 0x198   : > { %9981 = vmatprep.subr.bf16.mxu0 %v10889_v13  ;;  %10003 = vmatprep.subr.bf16.mxu1 %v10890_v31 }
 0x19b   : > { %9982 = vmatpush3.bf16.msra.mxu0 %v10891_v32  ;;  %10004 = vmatpush3.bf16.msra.mxu1 %v10892_v33 }
 0x19c   : > { %9983 = vmatprep.subr.bf16.mxu0 %v10893_v34  ;;  %10005 = vmatprep.subr.bf16.mxu1 %v10894_v35 }
 0x19f   : > { %9984 = vmatpush3.bf16.msra.mxu0 %v10895_v17  ;;  %10006 = vmatpush3.bf16.msra.mxu1 %v10896_v5 }
 0x1a0   : > { %9985 = vmatprep.subr.bf16.mxu0 %v10897_v18  ;;  %10007 = vmatprep.subr.bf16.mxu1 %v10898_v37 }
 0x1a3   : > { %9986 = vmatpush3.bf16.msra.mxu0 %v10899_v20  ;;  %10008 = vmatpush3.bf16.msra.mxu1 %v10900_v40 }
 0x1a4   : > { %9987 = vmatprep.subr.bf16.mxu0 %v10901_v43  ;;  %10009 = vmatprep.subr.bf16.mxu1 %v10902_v56 }
 0x1a5   : > { %v9685_v53 = vpop.f32.mrb[4].mxu0  ;;  %v9707_v54 = vpop.f32.mrb[4].mxu1 }
 0x1a6   : > { %v9686_v59 = vpop.f32.mrb[5].mxu0  ;;  %v9708_v60 = vpop.f32.mrb[5].mxu1 }
 0x1a7   : > { %v9687_v8 = vadd.f32 %v9686_v59, %v9685_v53  ;;  %v9709_v63 = vadd.f32 %v9708_v60, %v9707_v54  ;;  %v9688_v2 = vpop.f32.mrb[6].mxu0  ;;  %v9710_v3 = vpop.f32.mrb[6].mxu1  ;;  %9988 = vmatpush3.bf16.msra.mxu0 %v10903_v57  ;;  %10010 = vmatpush3.bf16.msra.mxu1 %v10904_v58 }
 0x1a8   : > { %v9689_v11 = vpop.f32.mrb[7].mxu0  ;;  %v9711_v12 = vpop.f32.mrb[7].mxu1  ;;  %9989 = vmatprep.subr.bf16.mxu0 %v10905_v7  ;;  %10011 = vmatprep.subr.bf16.mxu1 %v10906_v61 }
 0x1a9   : > { %v2300_v10 = vadd.f32 %v9687_v8, %v11757_v39  ;;  %v9690_v15 = vadd.f32 %v9689_v11, %v9688_v2  ;;  %v9712_v19 = vadd.f32 %v9711_v12, %v9710_v3  ;;  %v3471_v39 = vsel %vm3444_vm8, %v3469_v38, %v3470_v41 }
 0x1ab   : > { %v2341_v23 = vadd.f32 %v9709_v63, %v2300_v10  ;;  %v2303_v16 = vadd.f32 %v9690_v15, %v11759_v51  ;;  %9990 = vmatpush3.bf16.msra.mxu0 %v10907_v21  ;;  %10012 = vmatpush3.bf16.msra.mxu1 %v10908_v4  ;;  %v10913_v21 = vld [vmem:[%s12913_s3 + $0x140] sm:$0xff]   ;;  %v11291_v4 = vmov 0.0  }
 0x1ac   : > { %9991 = vmatprep.subr.bf16.mxu0 %v10909_v62  ;;  %10013 = vmatprep.subr.bf16.mxu1 %v10910_v22  ;;  %v10914_v62 = vld [vmem:[%s12913_s3 + $0x100] sm:$0xff]   ;;  %v10915_v22 = vld [vmem:[%s12913_s3 + $0x148] sm:$0xff]  }
 0x1ad   : > { %v2344_v24 = vadd.f32 %v9712_v19, %v2303_v16  ;;  %v10917_v16 = vld [vmem:[%s12913_s3 + $0x108] sm:$0xff]  }
 0x1af   : > { %9992 = vmatpush3.bf16.msra.mxu0 %v10911_v25  ;;  %10014 = vmatpush3.bf16.msra.mxu1 %v10912_v26  ;;  %v10919_v25 = vld [vmem:[%s12913_s3 + $0xc8] sm:$0xff]   ;;  %v10920_v26 = vld [vmem:[%s12913_s3 + $0x110] sm:$0xff]  }
 0x1b0   : > { %10318 = vmatprep.subr.bf16.mxu1 %v11291_v4  ;;  %10021 = vmatprep.subr.bf16.mxu0 %v10914_v62 }
 0x1b2   : > { %4266 = vmatmul.mubr.bf16.vlgmr.msra.gmra.mrb[32].mxu0 %v3471_v39  ;;  %4307 = vmatmul.mubr.bf16.vlgmr.msra.gmra.mrb[32].mxu1 %v3477_v27  ;;  %v10921_v39 = vld [vmem:[%s12913_s3 + $0x158] sm:$0xff]   ;;  %v10922_v27 = vld [vmem:[%s12913_s3 + $0xd0] sm:$0xff]  }
 0x1b3   : > { %10319 = vmatpush3.bf16.msra.mxu1 %v10913_v21  ;;  %10334 = vmatprep.mubr.msk.bf16.mxu1 %vm11292_vm9, %v11291_v4 }
 0x1b4   : > { %10320 = vmatprep.subr.bf16.mxu1 %v11291_v4 }
 0x1b7   : > { %10321 = vmatpush3.bf16.msra.mxu1 %v10915_v22 }
 0x1b8   : > { %10322 = vmatprep.subr.bf16.mxu1 %v11291_v4 }
 0x1c5   : > { %v9729_v14 = vpop.f32.mrb[8].mxu0  ;;  %v9751_v42 = vpop.f32.mrb[8].mxu1 }
 0x1c6   : > { %v9730_v51 = vpop.f32.mrb[9].mxu0  ;;  %v9752_v44 = vpop.f32.mrb[9].mxu1 }
 0x1c7   : > { %v9731_v46 = vadd.f32 %v9730_v51, %v9729_v14  ;;  %v9753_v49 = vadd.f32 %v9752_v44, %v9751_v42  ;;  %v9732_v47 = vpop.f32.mrb[10].mxu0  ;;  %v9754_v28 = vpop.f32.mrb[10].mxu1  ;;  %v10923_v14 = vld [vmem:[%s12913_s3 + $0x118] sm:$0xff]   ;;  %v10924_v42 = vld [vmem:[%s12913_s3 + $0x160] sm:$0xff]  }
 0x1c8   : > { %v9733_v50 = vpop.f32.mrb[11].mxu0  ;;  %v9755_v29 = vpop.f32.mrb[11].mxu1  ;;  %v10925_v51 = vld [vmem:[%s12913_s3 + $0xd8] sm:$0xff]   ;;  %v10926_v44 = vld [vmem:[%s12913_s3 + $0x120] sm:$0xff]  }
 0x1c9   : > { %v2382_v1 = vadd.f32 %v9731_v46, %v2341_v23  ;;  %v9734_v6 = vadd.f32 %v9733_v50, %v9732_v47  ;;  %v9756_v9 = vadd.f32 %v9755_v29, %v9754_v28  ;;  %v10916_v23 = vld [vmem:[%s12913_s3 + $0xc0] sm:$0xff]   ;;  %v10927_v47 = vld [vmem:[%s12913_s3 + $0x168] sm:$0xff]  }
 0x1ca   : > { %10022 = vmatpush3.bf16.msra.mxu0 %v10916_v23  ;;  %v10928_v28 = vld [vmem:[%s12913_s3 + $0xe0] sm:$0xff]  }
 0x1cb   : > { %v2423_v13 = vadd.f32 %v9753_v49, %v2382_v1  ;;  %v2385_v31 = vadd.f32 %v9734_v6, %v2344_v24  ;;  %v10918_v24 = vld [vmem:[%s12913_s3 + $0x150] sm:$0xff]   ;;  %10023 = vmatprep.subr.bf16.mxu0 %v10917_v16 }
 0x1cc   : > { %10323 = vmatpush3.bf16.msra.mxu1 %v10918_v24 }
 0x1cd   : > { %v2426_v32 = vadd.f32 %v9756_v9, %v2385_v31  ;;  %10324 = vmatprep.subr.bf16.mxu1 %v11291_v4  ;;  %v10929_v31 = vld [vmem:[%s12913_s3 + $0x128] sm:$0xff]  }
 0x1ce   : > { %10024 = vmatpush3.bf16.msra.mxu0 %v10919_v25 }
 0x1cf   : > { %10025 = vmatprep.subr.bf16.mxu0 %v10920_v26 }
 0x1d0   : > { %10325 = vmatpush3.bf16.msra.mxu1 %v10921_v39 }
 0x1d1   : > { %10326 = vmatprep.subr.bf16.mxu1 %v11291_v4 }
 0x1d2   : > { %10026 = vmatpush3.bf16.msra.mxu0 %v10922_v27 }
 0x1d3   : > { %10027 = vmatprep.subr.bf16.mxu0 %v10923_v14 }
 0x1d4   : > { %10327 = vmatpush3.bf16.msra.mxu1 %v10924_v42 }
 0x1d5   : > { %10328 = vmatprep.subr.bf16.mxu1 %v11291_v4 }
 0x1d6   : > { %10028 = vmatpush3.bf16.msra.mxu0 %v10925_v51 }
 0x1d7   : > { %10029 = vmatprep.subr.bf16.mxu0 %v10926_v44 }
 0x1d8   : > { %10329 = vmatpush3.bf16.msra.mxu1 %v10927_v47 }
 0x1d9   : > { %10330 = vmatprep.subr.bf16.mxu1 %v11291_v4 }
 0x1da   : > { %10030 = vmatpush3.bf16.msra.mxu0 %v10928_v28 }
 0x1db   : > { %10031 = vmatprep.subr.bf16.mxu0 %v10929_v31 }
 0x1e5   : > { %v9773_v33 = vpop.f32.mrb[12].mxu0  ;;  %v9795_v34 = vpop.f32.mrb[12].mxu1 }
 0x1e6   : > { %v9774_v35 = vpop.f32.mrb[13].mxu0  ;;  %v9796_v17 = vpop.f32.mrb[13].mxu1 }
 0x1e7   : > { %v9775_v5 = vadd.f32 %v9774_v35, %v9773_v33  ;;  %v9797_v18 = vadd.f32 %v9796_v17, %v9795_v34  ;;  %v9776_v37 = vpop.f32.mrb[14].mxu0  ;;  %v9798_v20 = vpop.f32.mrb[14].mxu1 }
 0x1e8   : > { %v9777_v38 = vpop.f32.mrb[15].mxu0  ;;  %v9799_v40 = vpop.f32.mrb[15].mxu1 }
 0x1e9   : > { %v3040_v41 = vadd.f32 %v9775_v5, %v2423_v13  ;;  %v9778_v43 = vadd.f32 %v9777_v38, %v9776_v37  ;;  %v9800_v55 = vadd.f32 %v9799_v40, %v9798_v20  ;;  %v10930_v5 = vld [vmem:[%s12913_s3 + $0x170] sm:$0xff]   ;;  %v10933_v40 = vld [vmem:[%s12913_s3 + $0x178] sm:$0xff]  }
 0x1ea   : > { %v10932_v38 = vld [vmem:[%s12913_s3 + $0x130] sm:$0xff]   ;;  %10331 = vmatpush3.bf16.msra.mxu1 %v10930_v5 }
 0x1eb   : > { %v3081_v56 = vadd.f32 %v9797_v18, %v3040_v41  ;;  %v3043_v52 = vadd.f32 %v9778_v43, %v2426_v32  ;;  %v10931_v18 = vld [vmem:[%s12913_s3 + $0xe8] sm:$0xff]   ;;  %v10934_v41 = vld [vmem:[%s12913_s3 + $0xf0] sm:$0xff]   ;;  %10332 = vmatprep.subr.bf16.mxu1 %v11291_v4 }
 0x1ec   : > { %10032 = vmatpush3.bf16.msra.mxu0 %v10931_v18 }
 0x1ed   : > { %v3084_v53 = vadd.f32 %v9800_v55, %v3043_v52  ;;  %v10935_v55 = vld [vmem:[%s12913_s3 + $0x138] sm:$0xff]   ;;  %10033 = vmatprep.subr.bf16.mxu0 %v10932_v38  ;;  %v10938_v52 = vld [vmem:[%s12913_s3 + $0x40] sm:$0xff]  }
 0x1ee   : > { %10333 = vmatpush3.bf16.msra.mxu1 %v10933_v40 }
 0x1ef   : > { %10338 = vmatprep.subr.bf16.mxu1 %v11291_v4 }
 0x1f0   : > { %10034 = vmatpush3.bf16.msra.mxu0 %v10934_v41 }
 0x1f1   : > { %10035 = vmatprep.subr.bf16.mxu0 %v10935_v55 }
 0x205   : > { %v9817_v54 = vpop.f32.mrb[16].mxu0  ;;  %v9839_v57 = vpop.f32.mrb[16].mxu1 }
 0x206   : > { %v9818_v58 = vpop.f32.mrb[17].mxu0  ;;  %v9840_v59 = vpop.f32.mrb[17].mxu1 }
 0x207   : > { %v9819_v60 = vadd.f32 %v9818_v58, %v9817_v54  ;;  %v9841_v7 = vadd.f32 %v9840_v59, %v9839_v57  ;;  %v9820_v61 = vpop.f32.mrb[18].mxu0  ;;  %v9842_v8 = vpop.f32.mrb[18].mxu1 }
 0x208   : > { %v9821_v63 = vpop.f32.mrb[19].mxu0  ;;  %v9843_v2 = vpop.f32.mrb[19].mxu1 }
 0x209   : > { %v3122_v3 = vadd.f32 %v9819_v60, %v3081_v56  ;;  %v9822_v11 = vadd.f32 %v9821_v63, %v9820_v61  ;;  %v9844_v12 = vadd.f32 %v9843_v2, %v9842_v8  ;;  %v10937_v56 = vld [vmem:[%s12913_s3 + $0xf8] sm:$0xff]  }
 0x20a   : > { %10036 = vmatpush3.bf16.msra.mxu0 %v10937_v56 }
 0x20b   : > { %v3163_v10 = vadd.f32 %v9841_v7, %v3122_v3  ;;  %v3125_v15 = vadd.f32 %v9822_v11, %v3084_v53  ;;  %10052 = vmatprep.subr.bf16.mxu0 %v10938_v52  ;;  %v8985_v52 = vld.sshfl [vmem:[#allocation3] sm:$0x13 pattern:$0x76325410] }
 0x20d   : > { %v3166_v19 = vadd.f32 %v9844_v12, %v3125_v15 }
 0x225   : > { %v9861_v46 = vpop.f32.mrb[20].mxu0  ;;  %v9883_v49 = vpop.f32.mrb[20].mxu1 }
 0x226   : > { %v9862_v50 = vpop.f32.mrb[21].mxu0  ;;  %v9884_v29 = vpop.f32.mrb[21].mxu1 }
 0x227   : > { %v9863_v1 = vadd.f32 %v9862_v50, %v9861_v46  ;;  %v9885_v6 = vadd.f32 %v9884_v29, %v9883_v49  ;;  %v9864_v9 = vpop.f32.mrb[22].mxu0  ;;  %v9886_v13 = vpop.f32.mrb[22].mxu1 }
 0x228   : > { %v9865_v32 = vpop.f32.mrb[23].mxu0  ;;  %v9887_v33 = vpop.f32.mrb[23].mxu1 }
 0x229   : > { %v3204_v34 = vadd.f32 %v9863_v1, %v3163_v10  ;;  %v9866_v35 = vadd.f32 %v9865_v32, %v9864_v9  ;;  %v9888_v17 = vadd.f32 %v9887_v33, %v9886_v13 }
 0x22b   : > { %v11847_v37 = vadd.f32 %v9885_v6, %v3204_v34  ;;  %v3207_v20 = vadd.f32 %v9866_v35, %v3166_v19  ;;  %v8980_v35 = vld [vmem:[#allocation7] ss:$0 sm:$0xff] }
 0x22d   : > { %v11858_v43 = vadd.f32 %v9888_v17, %v3207_v20 }
 0x245   : > { %v9905_v53 = vpop.f32.mrb[24].mxu0  ;;  %v9927_v54 = vpop.f32.mrb[24].mxu1 }
 0x246   : > { %v9906_v57 = vpop.f32.mrb[25].mxu0  ;;  %v9928_v58 = vpop.f32.mrb[25].mxu1 }
 0x247   : > { %v9907_v59 = vadd.f32 %v9906_v57, %v9905_v53  ;;  %v9929_v60 = vadd.f32 %v9928_v58, %v9927_v54  ;;  %v9908_v7 = vpop.f32.mrb[26].mxu0  ;;  %v9930_v61 = vpop.f32.mrb[26].mxu1  ;;  %v8990_v58 = vld.sshfl [vmem:[#allocation3 + $0x14] sm:$0x13 pattern:$0x76325410] }
 0x248   : > { %v9909_v8 = vpop.f32.mrb[27].mxu0  ;;  %v9931_v63 = vpop.f32.mrb[27].mxu1 }
 0x249   : > { %v4145_v2 = vadd.f32 %v9929_v60, %v9907_v59  ;;  %v9910_v3 = vadd.f32 %v9909_v8, %v9908_v7  ;;  %v9932_v11 = vadd.f32 %v9931_v63, %v9930_v61  ;;  %v4462_v60 = vshrl.u32 %v8985_v52, 16 }
 0x24a   : > { %v4465_v7 = vshll.u32 %v8985_v52, 16 }
 0x24b   : > { %v4148_v12 = vadd.f32 %v9932_v11, %v9910_v3  ;;  %v8996_v11 = vld.sshfl [vmem:[#allocation3 + $0x14] sm:$0x12 pattern:$0x76325410] }
 0x265   : > { %v9949_v10 = vpop.f32.mrb[28].mxu0  ;;  %v9971_v15 = vpop.f32.mrb[28].mxu1 }
 0x266   : > { %v9950_v19 = vpop.f32.mrb[29].mxu0  ;;  %v9972_v21 = vpop.f32.mrb[29].mxu1 }
 0x267   : > { %v9951_v62 = vadd.f32 %v9950_v19, %v9949_v10  ;;  %v9973_v22 = vadd.f32 %v9972_v21, %v9971_v15  ;;  %v9952_v23 = vpop.f32.mrb[30].mxu0  ;;  %v9974_v16 = vpop.f32.mrb[30].mxu1  ;;  %v4532_v10 = vshrl.u32 %v8990_v58, 16  ;;  %v4535_v15 = vshll.u32 %v8990_v58, 16 }
 0x268   : > { %v9953_v24 = vpop.f32.mrb[31].mxu0  ;;  %v9975_v25 = vpop.f32.mrb[31].mxu1 }
 0x269   : > { %v4186_v26 = vadd.f32 %v9951_v62, %v4145_v2  ;;  %v9954_v39 = vadd.f32 %v9953_v24, %v9952_v23  ;;  %v9976_v27 = vadd.f32 %v9975_v25, %v9974_v16  ;;  %v4383_v2 = vld [vmem:[#allocation3 + $0x4] sm:$0x7]  ;;  %v4386_v23 = vld [vmem:[#allocation3 + $0x8] sm:$0x7]  ;;  %v4464_v25 = vrot.slane %v4462_v60, 6 }
 0x26b   : > { %v4227_v14 = vadd.f32 %v9973_v22, %v4186_v26  ;;  %v4189_v42 = vadd.f32 %v9954_v39, %v4148_v12  ;;  %v4420_v12 = vcombine.high %v8985_v52, %v8985_v52  ;;  %v4467_v26 = vrot.slane %v4465_v7, 7 }
 0x26d   : > { %v4230_v51 = vadd.f32 %v9976_v27, %v4189_v42 }
 0x285   : > { %v9993_v44 = vpop.f32.mrb[32].mxu0  ;;  %v10015_v46 = vpop.f32.mrb[32].mxu1 }
 0x286   : > { %v9994_v49 = vpop.f32.mrb[33].mxu0  ;;  %v10016_v47 = vpop.f32.mrb[33].mxu1 }
 0x287   : > { %v9995_v28 = vadd.f32 %v9994_v49, %v9993_v44  ;;  %v10017_v50 = vadd.f32 %v10016_v47, %v10015_v46  ;;  %v9996_v29 = vpop.f32.mrb[34].mxu0  ;;  %v10018_v1 = vpop.f32.mrb[34].mxu1  ;;  %v4392_v46 = vld [vmem:[#allocation3 + $0x10] sm:$0x7]  ;;  %v4460_v49 = vcombine.high %v8990_v58, %v8990_v58  ;;  %v4534_v47 = vrot.slane %v4532_v10, 6 }
 0x288   : > { %v9997_v6 = vpop.f32.mrb[35].mxu0  ;;  %v10019_v9 = vpop.f32.mrb[35].mxu1 }
 0x289   : > { %v4268_v13 = vadd.f32 %v9995_v28, %v4227_v14  ;;  %v9998_v31 = vadd.f32 %v9997_v6, %v9996_v29  ;;  %v10020_v32 = vadd.f32 %v10019_v9, %v10018_v1  ;;  %v4537_v28 = vrot.slane %v4535_v15, 7 }
 0x28a   : > { %v4604_v6 = vcombine.high %v8996_v11, %v8996_v11 }
 0x28b   : > { %v4309_v33 = vadd.f32 %v10017_v50, %v4268_v13  ;;  %v4271_v34 = vadd.f32 %v9998_v31, %v4230_v51  ;;  %v4389_v51 = vld [vmem:[#allocation3 + $0xc] sm:$0x7]  ;;  %v4468_v13 = vor.u32 %v4467_v26, %v4464_v25  ;;  %v4471_v31 = vshll.u32 %v4420_v12, 16 }
 0x28d   : > { %v4315_v17 = vadd.f32 %v4309_v33, %v11847_v37  ;;  %v4312_v5 = vadd.f32 %v10020_v32, %v4271_v34  ;;  %v4538_v33 = vor.u32 %v4537_v28, %v4534_v47  ;;  %v11881_v34 = vshll.u32 %v4460_v49, 16 }
 0x28f   : > { %v4324_v18 = vadd.f32 %v8980_v35, %v4315_v17  ;;  %v4316_v20 = vadd.f32 %v4312_v5, %v11858_v43  ;;  %v8991_v43 = vld.sshfl [vmem:[#allocation3] sm:$0x12 pattern:$0x76325410]  ;;  %v9002_v5 = vrot.slane %v8996_v11, 9  ;;  %v4543_v52 = vrot.slane %v11881_v34, 7 }
 0x290   : > { %v4564_v1 = vcombine.high %v8991_v43, %v8991_v43 }
 0x291   : > { %v4326_v38 = vmax.f32 %v4324_v18, 0.0  ;;  %v4325_v40 = vadd.f32 %v8980_v35, %v4316_v20  ;;  %v8997_v35 = vrot.slane %v8991_v43, 9  ;;  %v4627_v18 = vrot.slane %v4604_v6, 7 }
 0x292   : > { %v4607_v17 = vrot.slane %v4564_v1, 7  ;;  %v4469_v20 = vrot.slane %v4468_v13, 2 }
 0x293   : > { %v4330_v41 = vcombine.high %v4326_v38, %v4326_v38  ;;  %v9606_v55 = vpack.c.bf16 %v4326_v38, %v4326_v38  ;;  %v4327_v56 = vmax.f32 %v4325_v40, 0.0  ;;  %v4473_v38 = vrot.slane %v4471_v31, 7 }
 0x295   : > { %v9607_v53 = vpack.c.bf16 %v4330_v41, %v4330_v41  ;;  %v4351_v54 = vshrl.u32 %v9606_v55, 16  ;;  %v4331_v57 = vcombine.high %v4327_v56, %v4327_v56  ;;  %v9608_v59 = vpack.c.bf16 %v4327_v56, %v4327_v56 }
 0x296   : > { %v4354_v8 = vshll.u32 %v9606_v55, 16  ;;  %v11883_v56 = vrot.slane %v4538_v33, 2  ;;  %v11892_v43 = vsel %vm11605_vm14, %v4469_v20, %v4473_v38 }
 0x297   : > { %v4353_v61 = vrot.slane %v4351_v54, 7  ;;  %v4358_v37 = vshrl.u32 %v9607_v53, 16  ;;  %v9609_v63 = vpack.c.bf16 %v4331_v57, %v4331_v57  ;;  %v4365_v3 = vshrl.u32 %v9608_v59, 16 }
 0x298   : > { %v4361_v62 = vshll.u32 %v9607_v53, 16  ;;  %v4368_v24 = vshll.u32 %v9608_v59, 16  ;;  %v4608_v54 = vsel %vm11673_vm6, %v8997_v35, %v4607_v17  ;;  %v4628_v57 = vsel %vm11673_vm6, %v9002_v5, %v4627_v18 }
 0x299   : > { %v4356_v19 = vor.u32 %v4354_v8, %v4353_v61  ;;  %v4360_v21 = vrot.slane %v4358_v37, 7  ;;  %v4372_v22 = vshrl.u32 %v9609_v63, 16  ;;  %v4367_v16 = vrot.slane %v4365_v3, 7 }
 0x29a   : > { %v4375_v42 = vshll.u32 %v9609_v63, 16 }
 0x29b   : > { %v4363_v39 = vor.u32 %v4361_v62, %v4360_v21  ;;  %v4384_v27 = vsel %vm11519_vm4, %v4356_v19, %v4383_v2  ;;  %v4374_v14 = vrot.slane %v4372_v22, 7  ;;  %v4370_v44 = vor.u32 %v4368_v24, %v4367_v16 }
 0x29c   : > { %4385 = vst [vmem:[#allocation3 + $0x4] sm:$0x7] %v4384_v27 }
 0x29d   : > { %v4387_v50 = vsel %vm11519_vm4, %v4363_v39, %v4386_v23  ;;  %v4377_v29 = vor.u32 %v4375_v42, %v4374_v14  ;;  %v4390_v9 = vsel %vm11519_vm4, %v4370_v44, %v4389_v51 }
 0x29e   : > { %4388 = vst [vmem:[#allocation3 + $0x8] sm:$0x7] %v4387_v50  ;;  %4391 = vst [vmem:[#allocation3 + $0xc] sm:$0x7] %v4390_v9 }
 0x29f   : > { %v4393_v32 = vsel %vm11519_vm4, %v4377_v29, %v4392_v46 }
 0x2a0   : > { %4394 = vst [vmem:[#allocation3 + $0x10] sm:$0x7] %v4393_v32 }
 0x2a3   : > { %v8992_v40 = vld.sshfl [vmem:[#allocation3 + $0x4] sm:$0x12 pattern:$0x76325410] }
 0x2a4   : > { %v4572_v41 = vcombine.high %v8992_v40, %v8992_v40  ;;  %v8986_v55 = vld.sshfl [vmem:[#allocation3 + $0x4] sm:$0x13 pattern:$0x76325410]  ;;  %v8998_v61 = vrot.slane %v8992_v40, 9 }
 0x2a5   : > { %v8993_v53 = vld.sshfl [vmem:[#allocation3 + $0x8] sm:$0x12 pattern:$0x76325410]  ;;  %v4476_v58 = vshrl.u32 %v8986_v55, 16  ;;  %v4479_v59 = vshll.u32 %v8986_v55, 16  ;;  %v4428_v37 = vcombine.high %v8986_v55, %v8986_v55 }
 0x2a6   : > { %v8994_v60 = vld.sshfl [vmem:[#allocation3 + $0xc] sm:$0x12 pattern:$0x76325410]  ;;  %v4580_v7 = vcombine.high %v8993_v53, %v8993_v53  ;;  %v4611_v8 = vrot.slane %v4572_v41, 7  ;;  %v8999_v3 = vrot.slane %v8993_v53, 9 }
 0x2a7   : > { %v8995_v63 = vld.sshfl [vmem:[#allocation3 + $0x10] sm:$0x12 pattern:$0x76325410]  ;;  %v4588_v2 = vcombine.high %v8994_v60, %v8994_v60  ;;  %v4478_v11 = vrot.slane %v4476_v58, 6  ;;  %v9000_v19 = vrot.slane %v8994_v60, 9 }
 0x2a8   : > { %v4596_v12 = vcombine.high %v8995_v63, %v8995_v63  ;;  %v4612_v10 = vsel %vm11673_vm6, %v8998_v61, %v4611_v8  ;;  %v4615_v15 = vrot.slane %v4580_v7, 7  ;;  %v8987_v21 = vld.sshfl [vmem:[#allocation3 + $0x8] sm:$0x13 pattern:$0x76325410]  ;;  %v4481_v24 = vrot.slane %v4479_v59, 7 }
 0x2a9   : > { %v4619_v62 = vrot.slane %v4588_v2, 7  ;;  %v4687_v22 = vcombine.low %v4608_v54, %v4612_v10  ;;  %v8988_v23 = vld.sshfl [vmem:[#allocation3 + $0xc] sm:$0x13 pattern:$0x76325410]  ;;  %v4436_v16 = vcombine.high %v8987_v21, %v8987_v21  ;;  %v9001_v26 = vrot.slane %v8995_v63, 9 }
 0x2aa   : > { %v4616_v25 = vsel %vm11673_vm6, %v8999_v3, %v4615_v15  ;;  %v4623_v39 = vrot.slane %v4596_v12, 7  ;;  %v4485_v27 = vshll.u32 %v4428_v37, 16  ;;  %v4444_v51 = vcombine.high %v8988_v23, %v8988_v23  ;;  %v8989_v47 = vld.sshfl [vmem:[#allocation3 + $0x10] sm:$0x13 pattern:$0x76325410] }
 0x2ab   : > { %v4620_v14 = vsel %vm11673_vm6, %v9000_v19, %v4619_v62  ;;  %v4695_v42 = vrot.slane %v4687_v22, %v11512_v36  ;;  %v4482_v44 = vor.u32 %v4481_v24, %v4478_v11  ;;  %v4490_v50 = vshrl.u32 %v8987_v21, 16  ;;  %v11148_v55 = vld.sshfl [vmem:[#allocation3] sm:$0xf pattern:$0x76325410] }
 0x2ac   : > { %v4624_v46 = vsel %vm11673_vm6, %v9001_v26, %v4623_v39  ;;  %v4688_v49 = vcombine.low %v4616_v25, %v4620_v14  ;;  %v4487_v28 = vrot.slane %v4485_v27, 7  ;;  %v4493_v6 = vshll.u32 %v8987_v21, 16  ;;  %v11149_v59 = vld.sshfl [vmem:[#allocation3 + $0x8] sm:$0xf pattern:$0x76325410] }
 0x2ad   : > { %v4704_v29 = vcombine.low %v4624_v46, %v4628_v57  ;;  %v4483_v1 = vrot.slane %v4482_v44, 2  ;;  %v4499_v9 = vshll.u32 %v4436_v16, 16  ;;  %v4492_v31 = vrot.slane %v4490_v50, 6  ;;  %v10936_v7 = vld [vmem:[%s12913_s3 + $0x80] sm:$0xff]   ;;  %v10945_v46 = vld [vmem:[%s12913_s3 + $0x90] sm:$0xff]  }
 0x2ae   : > { %v4702_v13 = vrot.slane %v4688_v49, %v11512_v36  ;;  %v4504_v32 = vshrl.u32 %v8988_v23, 16  ;;  %v4507_v33 = vshll.u32 %v8988_v23, 16  ;;  %v4452_v17 = vcombine.high %v8989_v47, %v8989_v47  ;;  %v11150_v63 = vld.sshfl [vmem:[#allocation3 + $0x10] sm:$0xf pattern:$0x76325410] }
 0x2af   : > { %v4711_v35 = vrot.slane %v4704_v29, %v11512_v36  ;;  %v4488_v5 = vsel %vm11605_vm14, %v4483_v1, %v4487_v28  ;;  %v4495_v18 = vrot.slane %v4493_v6, 7  ;;  %v4513_v41 = vshll.u32 %v4444_v51, 16 }
 0x2b0   : > { %v11907_v20 = vcombine.low %v4695_v42, %v4702_v13  ;;  %v4506_v38 = vrot.slane %v4504_v32, 6  ;;  %v4509_v40 = vrot.slane %v4507_v33, 7  ;;  %v4518_v57 = vshrl.u32 %v8989_v47, 16  ;;  %v10943_v13 = vld [vmem:[%s12913_s3] sm:$0xff]   ;;  %v10944_v32 = vld [vmem:[%s12913_s3 + $0x48] sm:$0xff]  }
 0x2b1   : > { %v4817_v53 = vrot.slane %v4711_v35, 2  ;;  %v4496_v54 = vor.u32 %v4495_v18, %v4492_v31  ;;  %v4521_v58 = vshll.u32 %v8989_v47, 16  ;;  %v4501_v61 = vrot.slane %v4499_v9, 7  ;;  %v10948_v9 = vld [vmem:[%s12913_s3 + $0x98] sm:$0xff]   ;;  %v10954_v18 = vld [vmem:[%s12913_s3 + $0xa8] sm:$0xff]  }
 0x2b2   : > { %v4816_v60 = vrot.slane %v11907_v20, 2  ;;  %v4510_v8 = vor.u32 %v4509_v40, %v4506_v38  ;;  %v4544_v37 = vsel %vm11605_vm14, %v11883_v56, %v4543_v52  ;;  %v4520_v3 = vrot.slane %v4518_v57, 6  ;;  %v10939_v52 = vld [vmem:[%s12913_s3 + $0x88] sm:$0xff]   ;;  %v10949_v38 = vld [vmem:[%s12913_s3 + $0x10] sm:$0xff]   ;;  %v10950_v40 = vld [vmem:[%s12913_s3 + $0x58] sm:$0xff]  }
 0x2b3   : > { %v4497_v2 = vrot.slane %v4496_v54, 2  ;;  %v4523_v11 = vrot.slane %v4521_v58, 7  ;;  %v4527_v12 = vshll.u32 %v4452_v17, 16  ;;  %v4515_v19 = vrot.slane %v4513_v41, 7  ;;  %v10946_v17 = vld [vmem:[%s12913_s3 + $0x8] sm:$0xff]   ;;  %v10957_v41 = vld [vmem:[%s12913_s3 + $0xb0] sm:$0xff]  }
 0x2b4   : > { %v4818_v10 = vsel %vm1558_vm7, %v4816_v60, %v4817_v53  ;;  %v4511_v15 = vrot.slane %v4510_v8, 2  ;;  %v4661_v21 = vcombine.low %v11892_v43, %v4488_v5  ;;  %v5329_v22 = vrot.slane %v11907_v20, 4  ;;  %v10947_v5 = vld [vmem:[%s12913_s3 + $0x50] sm:$0xff]   ;;  %v10953_v53 = vld [vmem:[%s12913_s3 + $0x60] sm:$0xff]   ;;  %v10960_v54 = vld [vmem:[%s12913_s3 + $0xb8] sm:$0xff]  }
 0x2b5   : > { %10335 = vmatmul.mubr.bf16.vlgmr.msra.gmra.mrb[36].mxu1 %v4818_v10  ;;  %v4502_v62 = vsel %vm11605_vm14, %v4497_v2, %v4501_v61  ;;  %v4524_v34 = vor.u32 %v4523_v11, %v4520_v3  ;;  %v5330_v23 = vrot.slane %v4711_v35, 4  ;;  %v4529_v16 = vrot.slane %v4527_v12, 7  ;;  %v10951_v35 = vld [vmem:[%s12913_s3 + $0xa0] sm:$0xff]   ;;  %v10956_v58 = vld [vmem:[%s12913_s3 + $0x68] sm:$0xff]   ;;  %v10961_v8 = vld [vmem:[%s12913_s3 + $0x30] sm:$0xff]  }
 0x2b6   : > { %10339 = vmatpush3.bf16.msra.mxu1 %v10936_v7  ;;  %v4516_v56 = vsel %vm11605_vm14, %v4511_v15, %v4515_v19  ;;  %10354 = vmatprep.mubr.msk.bf16.mxu1 %vm11292_vm9, %v11291_v4  ;;  %v11931_v25 = vcombine.low %v11148_v55, %v11149_v59  ;;  %v5324_v39 = vrot.slane %v11150_v63, 4  ;;  %v4669_v14 = vrot.slane %v4661_v21, %v11512_v36  ;;  %v10952_v55 = vld [vmem:[%s12913_s3 + $0x18] sm:$0xff]   ;;  %v10955_v57 = vld [vmem:[%s12913_s3 + $0x20] sm:$0xff]   ;;  %v10958_v60 = vld [vmem:[%s12913_s3 + $0x28] sm:$0xff]  }
 0x2b7   : > { %10340 = vmatprep.subr.bf16.mxu1 %v11291_v4  ;;  %v4525_v43 = vrot.slane %v4524_v34, 2  ;;  %v4662_v24 = vcombine.low %v4502_v62, %v4516_v56  ;;  %v11934_v26 = vsel %vm3444_vm8, %v5329_v22, %v5330_v23  ;;  %v4811_v1 = vrot.slane %v11150_v63, 2  ;;  %v10963_v59 = vld [vmem:[%s12913_s3 + $0x200] sm:$0xff]   ;;  %v10959_v7 = vld [vmem:[%s12913_s3 + $0x70] sm:$0xff]   ;;  %v10966_v61 = vld [vmem:[%s12913_s3 + $0x208] sm:$0xff]  }
 0x2b8   : > { %v5323_v51 = vrot.slane %v11931_v25, 4  ;;  %v4810_v29 = vrot.slane %v11931_v25, 2  ;;  %v10964_v63 = vld [vmem:[%s12913_s3 + $0x38] sm:$0xff]   ;;  %v10965_v2 = vld [vmem:[%s12913_s3 + $0x1c0] sm:$0xff]   ;;  %v10968_v15 = vld [vmem:[%s12913_s3 + $0x1c8] sm:$0xff]  }
 0x2b9   : > { %v4530_v27 = vsel %vm11605_vm14, %v4525_v43, %v4529_v16  ;;  %v4676_v42 = vrot.slane %v4662_v24, %v11512_v36  ;;  %v10972_v12 = vld [vmem:[%s12913_s3 + $0x218] sm:$0xff]   ;;  %v10967_v10 = vld [vmem:[%s12913_s3 + $0x180] sm:$0xff]   ;;  %v10970_v62 = vld [vmem:[%s12913_s3 + $0x188] sm:$0xff]  }
 0x2ba   : > { %v4678_v44 = vcombine.low %v4530_v27, %v4544_v37  ;;  %10341 = vmatpush3.bf16.msra.mxu1 %v10939_v52  ;;  %v11948_v47 = vsel %vm3444_vm8, %v5323_v51, %v5324_v39  ;;  %v4812_v33 = vsel %vm1558_vm7, %v4810_v29, %v4811_v1  ;;  %v10969_v37 = vld [vmem:[%s12913_s3 + $0x210] sm:$0xff]   ;;  %v10975_v21 = vld [vmem:[%s12913_s3 + $0x220] sm:$0xff]   ;;  %v10978_v56 = vld [vmem:[%s12913_s3 + $0x228] sm:$0xff]  }
 0x2bb   : > { %v11944_v49 = vcombine.low %v4669_v14, %v4676_v42  ;;  %10342 = vmatprep.subr.bf16.mxu1 %v11291_v4  ;;  %v10971_v34 = vld [vmem:[%s12913_s3 + $0x1d0] sm:$0xff]   ;;  %v10974_v22 = vld [vmem:[%s12913_s3 + $0x1d8] sm:$0xff]   ;;  %v10977_v16 = vld [vmem:[%s12913_s3 + $0x1e0] sm:$0xff]  }
 0x2bc   : > { %v11951_v28 = vrot.slane %v4678_v44, %v11512_v36  ;;  %v10973_v52 = vld [vmem:[%s12913_s3 + $0x190] sm:$0xff]   ;;  %v10976_v43 = vld [vmem:[%s12913_s3 + $0x198] sm:$0xff]   ;;  %v10980_v39 = vld [vmem:[%s12913_s3 + $0x1e8] sm:$0xff]  }
 0x2bd   : > { %v4813_v50 = vrot.slane %v11944_v49, 2  ;;  %v5326_v3 = vrot.slane %v11944_v49, 4  ;;  %v10981_v23 = vld [vmem:[%s12913_s3 + $0x230] sm:$0xff]   ;;  %v10984_v24 = vld [vmem:[%s12913_s3 + $0x238] sm:$0xff]   ;;  %v10982_v27 = vld [vmem:[%s12913_s3 + $0x1a8] sm:$0xff]  }
 0x2be   : > { %v4814_v6 = vrot.slane %v11951_v28, 2  ;;  %10343 = vmatpush3.bf16.msra.mxu1 %v10945_v46  ;;  %v5327_v11 = vrot.slane %v11951_v28, 4  ;;  %v10983_v14 = vld [vmem:[%s12913_s3 + $0x1f0] sm:$0xff]   ;;  %v10986_v51 = vld [vmem:[%s12913_s3 + $0x1f8] sm:$0xff]   ;;  %v10989_v46 = vld [vmem:[%s12915_s5 + $0x100] sm:$0xff]  }
 0x2bf   : > { %10344 = vmatprep.subr.bf16.mxu1 %v11291_v4  ;;  %v10985_v42 = vld [vmem:[%s12913_s3 + $0x1b0] sm:$0xff]   ;;  %v10987_v44 = vld [vmem:[%s12913_s3 + $0x1b8] sm:$0xff]   ;;  %v10991_v28 = vld [vmem:[%s12915_s5 + $0xc0] sm:$0xff]  }
 0x2c0   : > { %v4815_v31 = vsel %vm1558_vm7, %v4813_v50, %v4814_v6  ;;  %v5328_v19 = vsel %vm3444_vm8, %v5326_v3, %v5327_v11  ;;  %v10993_v50 = vld [vmem:[%s12915_s5 + $0x150] sm:$0xff]   ;;  %v10994_v29 = vld [vmem:[%s12915_s5 + $0xc8] sm:$0xff]   ;;  %v10996_v6 = vld [vmem:[%s12915_s5 + $0x158] sm:$0xff]  }
 0x2c1   : > { %4998 = vmatprep.mubr.bf16.mxu0 %v4815_v31  ;;  %v10995_v1 = vld [vmem:[%s12915_s5 + $0x110] sm:$0xff]   ;;  %v10999_v31 = vld [vmem:[%s12915_s5 + $0x160] sm:$0xff]  }
 0x2c2   : > { %4999 = vmatmul.mubr.bf16.vlgmr.msra.gmra.mrb[36].mxu0 %v4812_v33  ;;  %10345 = vmatpush3.bf16.msra.mxu1 %v10948_v9  ;;  %v10997_v9 = vld [vmem:[%s12915_s5 + $0xd0] sm:$0xff]   ;;  %v11001_v33 = vld [vmem:[%s12915_s5 + $0x120] sm:$0xff]  }
 0x2c3   : > { %10053 = vmatpush3.bf16.msra.mxu0 %v10943_v13  ;;  %5224 = vmatprep.mubr.bf16.mxu0 %v11944_v49  ;;  %v10990_v49 = vld [vmem:[%s12915_s5 + $0x148] sm:$0xff]   ;;  %v10998_v13 = vld [vmem:[%s12915_s5 + $0x118] sm:$0xff]  }
 0x2c4   : > { %10054 = vmatprep.subr.bf16.mxu0 %v10944_v32  ;;  %10346 = vmatprep.subr.bf16.mxu1 %v11291_v4  ;;  %v11000_v32 = vld [vmem:[%s12915_s5 + $0xd8] sm:$0xff]  }
 0x2c6   : > { %10347 = vmatpush3.bf16.msra.mxu1 %v10951_v35  ;;  %v11002_v35 = vld [vmem:[%s12915_s5 + $0x168] sm:$0xff]  }
 0x2c7   : > { %10055 = vmatpush3.bf16.msra.mxu0 %v10946_v17  ;;  %10348 = vmatprep.subr.bf16.mxu1 %v11291_v4  ;;  %v11003_v17 = vld [vmem:[%s12915_s5 + $0xe0] sm:$0xff]  }
 0x2c8   : > { %10056 = vmatprep.subr.bf16.mxu0 %v10947_v5  ;;  %v11004_v5 = vld [vmem:[%s12915_s5 + $0x128] sm:$0xff]  }
 0x2ca   : > { %10349 = vmatpush3.bf16.msra.mxu1 %v10954_v18  ;;  %v11005_v18 = vld [vmem:[%s12915_s5 + $0x170] sm:$0xff]  }
 0x2cb   : > { %10057 = vmatpush3.bf16.msra.mxu0 %v10949_v38  ;;  %10350 = vmatprep.subr.bf16.mxu1 %v11291_v4  ;;  %v11006_v38 = vld [vmem:[%s12915_s5 + $0xe8] sm:$0xff]  }
 0x2cc   : > { %10058 = vmatprep.subr.bf16.mxu0 %v10950_v40  ;;  %v11007_v40 = vld [vmem:[%s12915_s5 + $0x130] sm:$0xff]  }
 0x2ce   : > { %10351 = vmatpush3.bf16.msra.mxu1 %v10957_v41  ;;  %v11008_v41 = vld [vmem:[%s12915_s5 + $0x178] sm:$0xff]  }
 0x2cf   : > { %10059 = vmatpush3.bf16.msra.mxu0 %v10952_v55  ;;  %10352 = vmatprep.subr.bf16.mxu1 %v11291_v4  ;;  %v11009_v55 = vld [vmem:[%s12915_s5 + $0xf0] sm:$0xff]  }
 0x2d0   : > { %10060 = vmatprep.subr.bf16.mxu0 %v10953_v53  ;;  %v11010_v53 = vld [vmem:[%s12915_s5 + $0x138] sm:$0xff]  }
 0x2d2   : > { %10353 = vmatpush3.bf16.msra.mxu1 %v10960_v54  ;;  %v11012_v54 = vld [vmem:[%s12915_s5 + $0xf8] sm:$0xff]  }
 0x2d3   : > { %10061 = vmatpush3.bf16.msra.mxu0 %v10955_v57  ;;  %10358 = vmatprep.subr.bf16.mxu1 %v11291_v4 }
 0x2d4   : > { %10062 = vmatprep.subr.bf16.mxu0 %v10956_v58 }
 0x2d5   : > { %10355 = vmatmul.mubr.bf16.vlgmr.msra.gmra.mrb[40].mxu1 %v11907_v20  ;;  %v10962_v20 = vld [vmem:[%s12913_s3 + $0x78] sm:$0xff]  }
 0x2d6   : > { %10359 = vmatpush3.bf16.msra.mxu1 %v10963_v59  ;;  %10374 = vmatprep.mubr.msk.bf16.mxu1 %vm11292_vm9, %v11291_v4 }
 0x2d7   : > { %10063 = vmatpush3.bf16.msra.mxu0 %v10958_v60  ;;  %10360 = vmatprep.subr.bf16.mxu1 %v11291_v4 }
 0x2d8   : > { %10064 = vmatprep.subr.bf16.mxu0 %v10959_v7  ;;  %v11013_v7 = vld [vmem:[%s12915_s5 + $0x40] sm:$0xff]  }
 0x2da   : > { %10361 = vmatpush3.bf16.msra.mxu1 %v10966_v61 }
 0x2db   : > { %10065 = vmatpush3.bf16.msra.mxu0 %v10961_v8  ;;  %10362 = vmatprep.subr.bf16.mxu1 %v11291_v4 }
 0x2dc   : > { %10066 = vmatprep.subr.bf16.mxu0 %v10962_v20 }
 0x2de   : > { %10363 = vmatpush3.bf16.msra.mxu1 %v10969_v37 }
 0x2df   : > { %10067 = vmatpush3.bf16.msra.mxu0 %v10964_v63  ;;  %10364 = vmatprep.subr.bf16.mxu1 %v11291_v4 }
 0x2e0   : > { %10083 = vmatprep.subr.bf16.mxu0 %v10965_v2 }
 0x2e2   : > { %5225 = vmatmul.mubr.bf16.vlgmr.msra.gmra.mrb[40].mxu0 %v11931_v25  ;;  %10365 = vmatpush3.bf16.msra.mxu1 %v10972_v12  ;;  %v10979_v25 = vld [vmem:[%s12913_s3 + $0x1a0] sm:$0xff]  }
 0x2e3   : > { %10084 = vmatpush3.bf16.msra.mxu0 %v10967_v10  ;;  %5511 = vmatprep.mubr.bf16.mxu0 %v5328_v19 }
 0x2e4   : > { %10085 = vmatprep.subr.bf16.mxu0 %v10968_v15  ;;  %10366 = vmatprep.subr.bf16.mxu1 %v11291_v4 }
 0x2e6   : > { %10367 = vmatpush3.bf16.msra.mxu1 %v10975_v21 }
 0x2e7   : > { %10086 = vmatpush3.bf16.msra.mxu0 %v10970_v62  ;;  %10368 = vmatprep.subr.bf16.mxu1 %v11291_v4 }
 0x2e8   : > { %10087 = vmatprep.subr.bf16.mxu0 %v10971_v34 }
 0x2ea   : > { %10369 = vmatpush3.bf16.msra.mxu1 %v10978_v56 }
 0x2eb   : > { %10088 = vmatpush3.bf16.msra.mxu0 %v10973_v52  ;;  %10370 = vmatprep.subr.bf16.mxu1 %v11291_v4 }
 0x2ec   : > { %10089 = vmatprep.subr.bf16.mxu0 %v10974_v22 }
 0x2ee   : > { %10371 = vmatpush3.bf16.msra.mxu1 %v10981_v23 }
 0x2ef   : > { %10090 = vmatpush3.bf16.msra.mxu0 %v10976_v43  ;;  %10372 = vmatprep.subr.bf16.mxu1 %v11291_v4 }
 0x2f0   : > { %10091 = vmatprep.subr.bf16.mxu0 %v10977_v16 }
 0x2f2   : > { %10373 = vmatpush3.bf16.msra.mxu1 %v10984_v24 }
 0x2f3   : > { %10092 = vmatpush3.bf16.msra.mxu0 %v10979_v25  ;;  %10378 = vmatprep.subr.bf16.mxu1 %v11291_v4 }
 0x2f4   : > { %10093 = vmatprep.subr.bf16.mxu0 %v10980_v39 }
 0x2f5   : > { %10375 = vmatmul.mubr.bf16.vlgmr.msra.gmra.mrb[44].mxu1 %v11934_v26  ;;  %v10988_v26 = vld [vmem:[%s12915_s5 + $0x140] sm:$0xff]  }
 0x2f6   : > { %10394 = vmatprep.mubr.msk.bf16.mxu1 %vm11292_vm9, %v11291_v4  ;;  %10379 = vmatpush3.bf16.msra.mxu1 %v10988_v26 }
 0x2f7   : > { %10094 = vmatpush3.bf16.msra.mxu0 %v10982_v27  ;;  %10380 = vmatprep.subr.bf16.mxu1 %v11291_v4 }
 0x2f8   : > { %10095 = vmatprep.subr.bf16.mxu0 %v10983_v14 }
 0x2fa   : > { %10381 = vmatpush3.bf16.msra.mxu1 %v10990_v49 }
 0x2fb   : > { %10096 = vmatpush3.bf16.msra.mxu0 %v10985_v42  ;;  %10382 = vmatprep.subr.bf16.mxu1 %v11291_v4  ;;  %v5651_v42 = vld [vmem:[#allocation4] sm:$0x7] }
 0x2fc   : > { %10097 = vmatprep.subr.bf16.mxu0 %v10986_v51 }
 0x2fe   : > { %10383 = vmatpush3.bf16.msra.mxu1 %v10993_v50 }
 0x2ff   : > { %10098 = vmatpush3.bf16.msra.mxu0 %v10987_v44  ;;  %10384 = vmatprep.subr.bf16.mxu1 %v11291_v4  ;;  %v5656_v44 = vld [vmem:[#allocation4 + $0x14] sm:$0x7] }
 0x300   : > { %10114 = vmatprep.subr.bf16.mxu0 %v10989_v46  ;;  %v5657_v46 = vmax.bf16 %v11289_v0, %v5651_v42  ;;  %v5662_v50 = vmax.bf16 %v11289_v0, %v5656_v44 }
 0x302   : > { %5512 = vmatmul.mubr.bf16.vlgmr.msra.gmra.mrb[44].mxu0 %v11948_v47  ;;  %v10992_v47 = vld [vmem:[%s12915_s5 + $0x108] sm:$0xff]   ;;  %10385 = vmatpush3.bf16.msra.mxu1 %v10996_v6  ;;  %v5801_v6 = vld [vmem:[#allocation4] sm:$0x6] }
 0x303   : > { %10115 = vmatpush3.bf16.msra.mxu0 %v10991_v28  ;;  %10386 = vmatprep.subr.bf16.mxu1 %v11291_v4 }
 0x304   : > { %10116 = vmatprep.subr.bf16.mxu0 %v10992_v47 }
 0x306   : > { %10387 = vmatpush3.bf16.msra.mxu1 %v10999_v31  ;;  %v5675_v31 = vrot.slane %v5657_v46, %v11512_v36 }
 0x307   : > { %10117 = vmatpush3.bf16.msra.mxu0 %v10994_v29  ;;  %10388 = vmatprep.subr.bf16.mxu1 %v11291_v4 }
 0x308   : > { %10118 = vmatprep.subr.bf16.mxu0 %v10995_v1 }
 0x30a   : > { %10389 = vmatpush3.bf16.msra.mxu1 %v11002_v35  ;;  %v5807_v35 = vmax.bf16 %v11289_v0, %v5801_v6 }
 0x30b   : > { %10119 = vmatpush3.bf16.msra.mxu0 %v10997_v9  ;;  %10390 = vmatprep.subr.bf16.mxu1 %v11291_v4  ;;  %v9171_v9 = vld [vmem:[#allocation9] ss:$0 sm:$0xff] }
 0x30c   : > { %10120 = vmatprep.subr.bf16.mxu0 %v10998_v13  ;;  %v5806_v13 = vld [vmem:[#allocation4 + $0x14] sm:$0x6] }
 0x30e   : > { %10391 = vmatpush3.bf16.msra.mxu1 %v11005_v18 }
 0x30f   : > { %10121 = vmatpush3.bf16.msra.mxu0 %v11000_v32  ;;  %10392 = vmatprep.subr.bf16.mxu1 %v11291_v4 }
 0x310   : > { %10122 = vmatprep.subr.bf16.mxu0 %v11001_v33 }
 0x312   : > { %10393 = vmatpush3.bf16.msra.mxu1 %v11008_v41  ;;  %v5721_v41 = vshll.u32 %v5675_v31, 16 }
 0x313   : > { %10123 = vmatpush3.bf16.msra.mxu0 %v11003_v17  ;;  %10398 = vmatprep.subr.bf16.mxu1 %v11291_v4  ;;  %v5715_v17 = vrot.slane %v5662_v50, %v11512_v36 }
 0x314   : > { %10124 = vmatprep.subr.bf16.mxu0 %v11004_v5 }
 0x317   : > { %10125 = vmatpush3.bf16.msra.mxu0 %v11006_v38  ;;  %v5812_v38 = vmax.bf16 %v11289_v0, %v5806_v13 }
 0x318   : > { %10126 = vmatprep.subr.bf16.mxu0 %v11007_v40  ;;  %v5718_v40 = vshrl.u32 %v5675_v31, 16 }
 0x31b   : > { %10127 = vmatpush3.bf16.msra.mxu0 %v11009_v55 }
 0x31c   : > { %10128 = vmatprep.subr.bf16.mxu0 %v11010_v53 }
 0x31f   : > { %10129 = vmatpush3.bf16.msra.mxu0 %v11012_v54 }
 0x320   : > { %10145 = vmatprep.subr.bf16.mxu0 %v11013_v7 }
 0x388   : > { %v5041_v57 = vpop.f32.mrb[36].mxu1 }
 0x389   : > { %v10336_v58 = vpop.f32.mrb[37].mxu1 }
 0x38a   : > { %v5044_v59 = vpop.f32.mrb[38].mxu1  ;;  %v5788_v58 = vshrl.u32 %v5715_v17, 16 }
 0x38b   : > { %v10337_v60 = vpop.f32.mrb[39].mxu1 }
 0x395   : > { %v10037_v61 = vpop.f32.mrb[36].mxu0 }
 0x396   : > { %v10038_v8 = vpop.f32.mrb[37].mxu0 }
 0x397   : > { %v10039_v20 = vadd.f32 %v10038_v8, %v10037_v61  ;;  %v10040_v37 = vpop.f32.mrb[38].mxu0  ;;  %v5865_v8 = vrot.slane %v5812_v38, %v11512_v36  ;;  %v5639_v38 = vld [vmem:[#allocation4] sm:$0x3] }
 0x398   : > { %v10041_v63 = vpop.f32.mrb[39].mxu0 }
 0x399   : > { %v5042_v2 = vadd.f32 %v10039_v20, %v5041_v57  ;;  %v10042_v3 = vadd.f32 %v10041_v63, %v10040_v37  ;;  %v12206_v57 = vrot.slane %v5807_v35, %v11512_v36  ;;  %v5676_v37 = vcombine.high %v5675_v31, %v5675_v31 }
 0x39a   : > { %v5720_v63 = vrot.slane %v5718_v40, 6  ;;  %v5866_v46 = vcombine.high %v5865_v8, %v5865_v8  ;;  %v5644_v40 = vld [vmem:[#allocation4 + $0x14] sm:$0x3] }
 0x39b   : > { %v5045_v11 = vadd.f32 %v10042_v3, %v5044_v59  ;;  %v5791_v59 = vshll.u32 %v5715_v17, 16  ;;  %v9176_v13 = vrot.slane %v12206_v57, 9 }
 0x3a8   : > { %v5267_v12 = vpop.f32.mrb[40].mxu1 }
 0x3a9   : > { %v10356_v10 = vpop.f32.mrb[41].mxu1 }
 0x3aa   : > { %v5270_v15 = vpop.f32.mrb[42].mxu1 }
 0x3ab   : > { %v10357_v19 = vpop.f32.mrb[43].mxu1 }
 0x3b5   : > { %v10068_v21 = vpop.f32.mrb[40].mxu0 }
 0x3b6   : > { %v10069_v62 = vpop.f32.mrb[41].mxu0 }
 0x3b7   : > { %v10070_v34 = vadd.f32 %v10069_v62, %v10068_v21  ;;  %v10071_v56 = vpop.f32.mrb[42].mxu0  ;;  %v5716_v21 = vcombine.high %v5715_v17, %v5715_v17  ;;  %v5790_v62 = vrot.slane %v5788_v58, 6 }
 0x3b8   : > { %v10072_v52 = vpop.f32.mrb[43].mxu0 }
 0x3b9   : > { %v5227_v22 = vadd.f32 %v10070_v34, %v5042_v2  ;;  %v10073_v23 = vadd.f32 %v10072_v52, %v10071_v56  ;;  %v5723_v2 = vrot.slane %v5721_v41, 7  ;;  %v5793_v34 = vrot.slane %v5791_v59, 7 }
 0x3bb   : > { %v5268_v43 = vadd.f32 %v5267_v12, %v5227_v22  ;;  %v5230_v16 = vadd.f32 %v10073_v23, %v5045_v11 }
 0x3bd   : > { %v5271_v24 = vadd.f32 %v5270_v15, %v5230_v16  ;;  %v5627_v15 = vld [vmem:[#allocation4 + $0x4] sm:$0x7] }
 0x3c8   : > { %v5554_v25 = vpop.f32.mrb[44].mxu1 }
 0x3c9   : > { %v10376_v39 = vpop.f32.mrb[45].mxu1 }
 0x3ca   : > { %v5557_v27 = vpop.f32.mrb[46].mxu1 }
 0x3cb   : > { %v10377_v14 = vpop.f32.mrb[47].mxu1 }
 0x3d5   : > { %v10099_v51 = vpop.f32.mrb[44].mxu0 }
 0x3d6   : > { %v10100_v26 = vpop.f32.mrb[45].mxu0 }
 0x3d7   : > { %v10101_v49 = vadd.f32 %v10100_v26, %v10099_v51  ;;  %v10102_v28 = vpop.f32.mrb[46].mxu0  ;;  %v5633_v51 = vld [vmem:[#allocation4 + $0xc] sm:$0x7]  ;;  %v5636_v26 = vld [vmem:[#allocation4 + $0x10] sm:$0x7] }
 0x3d8   : > { %v10103_v47 = vpop.f32.mrb[47].mxu0 }
 0x3d9   : > { %v5555_v29 = vadd.f32 %v10101_v49, %v5554_v25  ;;  %v10104_v1 = vadd.f32 %v10103_v47, %v10102_v28  ;;  %v5826_v25 = vcombine.high %v12206_v57, %v12206_v57  ;;  %v5724_v49 = vor.u32 %v5723_v2, %v5720_v63 }
 0x3da   : > { %v5727_v28 = vshll.u32 %v5676_v37, 16  ;;  %v12225_v57 = vmax.bf16 %v11289_v0, %v5639_v38  ;;  %v12240_v63 = vmax.bf16 %v11289_v0, %v5644_v40 }
 0x3db   : > { %v5561_v32 = vadd.f32 %v5555_v29, %v5268_v43  ;;  %v5558_v33 = vadd.f32 %v10104_v1, %v5557_v27  ;;  %v5630_v43 = vld [vmem:[#allocation4 + $0x8] sm:$0x7]  ;;  %v5794_v29 = vor.u32 %v5793_v34, %v5790_v62  ;;  %v5797_v1 = vshll.u32 %v5716_v21, 16 }
 0x3dc   : > { %v5869_v31 = vrot.slane %v5826_v25, 7  ;;  %v5725_v35 = vrot.slane %v5724_v49, 2  ;;  %v5729_v17 = vrot.slane %v5727_v28, 7 }
 0x3dd   : > { %v5570_v5 = vadd.f32 %v9171_v9, %v5561_v32  ;;  %v5562_v18 = vadd.f32 %v5558_v33, %v5271_v24  ;;  %v9181_v32 = vrot.slane %v5865_v8, 9  ;;  %v5889_v33 = vrot.slane %v5866_v46, 7 }
 0x3de   : > { %v12233_v8 = vsel %vm11605_vm14, %v5725_v35, %v5729_v17 }
 0x3df   : > { %v5574_v55 = vcombine.high %v5570_v5, %v5570_v5  ;;  %v9610_v53 = vpack.c.bf16 %v5570_v5, %v5570_v5  ;;  %v5571_v54 = vadd.f32 %v9171_v9, %v5562_v18  ;;  %v5795_v5 = vrot.slane %v5794_v29, 2 }
 0x3e0   : > { %v5799_v18 = vrot.slane %v5797_v1, 7 }
 0x3e1   : > { %v9611_v60 = vpack.c.bf16 %v5574_v55, %v5574_v55  ;;  %v5595_v7 = vshrl.u32 %v9610_v53, 16  ;;  %v5575_v61 = vcombine.high %v5571_v54, %v5571_v54  ;;  %v9612_v20 = vpack.c.bf16 %v5571_v54, %v5571_v54 }
 0x3e2   : > { %v5598_v11 = vshll.u32 %v9610_v53, 16  ;;  %v5870_v54 = vsel %vm11673_vm6, %v9176_v13, %v5869_v31 }
 0x3e3   : > { %v5597_v3 = vrot.slane %v5595_v7, 7  ;;  %v5602_v12 = vshrl.u32 %v9611_v60, 16  ;;  %v9613_v10 = vpack.c.bf16 %v5575_v61, %v5575_v61  ;;  %v5609_v19 = vshrl.u32 %v9612_v20, 16 }
 0x3e4   : > { %v5605_v22 = vshll.u32 %v9611_v60, 16  ;;  %v5612_v24 = vshll.u32 %v9612_v20, 16  ;;  %v12229_v7 = vsel %vm11673_vm6, %v9181_v32, %v5889_v33  ;;  %v12237_v20 = vsel %vm11605_vm14, %v5795_v5, %v5799_v18 }
 0x3e5   : > { %v5600_v56 = vor.u32 %v5598_v11, %v5597_v3  ;;  %v5604_v52 = vrot.slane %v5602_v12, 7  ;;  %v5616_v23 = vshrl.u32 %v9613_v10, 16  ;;  %v5611_v16 = vrot.slane %v5609_v19, 7 }
 0x3e6   : > { %v5619_v42 = vshll.u32 %v9613_v10, 16 }
 0x3e7   : > { %v5607_v39 = vor.u32 %v5605_v22, %v5604_v52  ;;  %v5628_v27 = vsel %vm11519_vm4, %v5600_v56, %v5627_v15  ;;  %v5618_v14 = vrot.slane %v5616_v23, 7  ;;  %v5614_v44 = vor.u32 %v5612_v24, %v5611_v16 }
 0x3e8   : > { %5629 = vst [vmem:[#allocation4 + $0x4] sm:$0x7] %v5628_v27 }
 0x3e9   : > { %v5631_v47 = vsel %vm11519_vm4, %v5607_v39, %v5630_v43  ;;  %v5621_v50 = vor.u32 %v5619_v42, %v5618_v14  ;;  %v5634_v6 = vsel %vm11519_vm4, %v5614_v44, %v5633_v51 }
 0x3ea   : > { %5632 = vst [vmem:[#allocation4 + $0x8] sm:$0x7] %v5631_v47  ;;  %5635 = vst [vmem:[#allocation4 + $0xc] sm:$0x7] %v5634_v6 }
 0x3eb   : > { %v5637_v9 = vsel %vm11519_vm4, %v5621_v50, %v5636_v26 }
 0x3ec   : > { %5638 = vst [vmem:[#allocation4 + $0x10] sm:$0x7] %v5637_v9 }
 0x3ef   : > { %v5802_v41 = vld [vmem:[#allocation4 + $0x4] sm:$0x6] }
 0x3f0   : > { %v5652_v55 = vld [vmem:[#allocation4 + $0x4] sm:$0x7]  ;;  %v5808_v53 = vmax.bf16 %v11289_v0, %v5802_v41 }
 0x3f1   : > { %v5658_v58 = vmax.bf16 %v11289_v0, %v5652_v55  ;;  %v5640_v59 = vld [vmem:[#allocation4 + $0x4] sm:$0x3]  ;;  %v5803_v60 = vld [vmem:[#allocation4 + $0x8] sm:$0x6]  ;;  %v5804_v2 = vld [vmem:[#allocation4 + $0xc] sm:$0x6] }
 0x3f2   : > { %v5653_v61 = vld [vmem:[#allocation4 + $0x8] sm:$0x7]  ;;  %v5809_v3 = vmax.bf16 %v11289_v0, %v5803_v60  ;;  %v5833_v11 = vrot.slane %v5808_v53, %v11512_v36  ;;  %v5654_v12 = vld [vmem:[#allocation4 + $0xc] sm:$0x7]  ;;  %v5810_v62 = vmax.bf16 %v11289_v0, %v5804_v2  ;;  %v12249_v52 = vmax.bf16 %v11289_v0, %v5640_v59 }
 0x3f3   : > { %v5641_v37 = vld [vmem:[#allocation4 + $0x8] sm:$0x3]  ;;  %v5659_v10 = vmax.bf16 %v11289_v0, %v5653_v61  ;;  %v5683_v15 = vrot.slane %v5658_v58, %v11512_v36  ;;  %v5642_v19 = vld [vmem:[#allocation4 + $0xc] sm:$0x3]  ;;  %v5805_v21 = vld [vmem:[#allocation4 + $0x10] sm:$0x6]  ;;  %v5660_v56 = vmax.bf16 %v11289_v0, %v5654_v12 }
 0x3f4   : > { %v5655_v34 = vld [vmem:[#allocation4 + $0x10] sm:$0x7]  ;;  %v12252_v22 = vmax.bf16 %v11289_v0, %v5641_v37  ;;  %v5811_v23 = vmax.bf16 %v11289_v0, %v5805_v21  ;;  %v5834_v43 = vcombine.high %v5833_v11, %v5833_v11  ;;  %v5841_v16 = vrot.slane %v5809_v3, %v11512_v36 }
 0x3f5   : > { %v12257_v24 = vmax.bf16 %v11289_v0, %v5642_v19  ;;  %v5849_v25 = vrot.slane %v5810_v62, %v11512_v36  ;;  %v9177_v39 = vrot.slane %v5833_v11, 9  ;;  %v5661_v27 = vmax.bf16 %v11289_v0, %v5655_v34 }
 0x3f6   : > { %v5691_v14 = vrot.slane %v5659_v10, %v11512_v36  ;;  %v5842_v42 = vcombine.high %v5841_v16, %v5841_v16  ;;  %v5857_v51 = vrot.slane %v5811_v23, %v11512_v36  ;;  %v5873_v44 = vrot.slane %v5834_v43, 7 }
 0x3f7   : > { %v5684_v26 = vcombine.high %v5683_v15, %v5683_v15  ;;  %v5850_v46 = vcombine.high %v5849_v25, %v5849_v25  ;;  %v9178_v49 = vrot.slane %v5841_v16, 9  ;;  %v9179_v28 = vrot.slane %v5849_v25, 9 }
 0x3f8   : > { %v5699_v47 = vrot.slane %v5660_v56, %v11512_v36  ;;  %v5858_v50 = vcombine.high %v5857_v51, %v5857_v51  ;;  %v5874_v29 = vsel %vm11673_vm6, %v9177_v39, %v5873_v44  ;;  %v5877_v1 = vrot.slane %v5842_v42, 7  ;;  %v5643_v44 = vld [vmem:[#allocation4 + $0x10] sm:$0x3] }
 0x3f9   : > { %v5692_v6 = vcombine.high %v5691_v14, %v5691_v14  ;;  %v5881_v9 = vrot.slane %v5850_v46, 7  ;;  %v9180_v13 = vrot.slane %v5857_v51, 9  ;;  %v5949_v31 = vcombine.low %v5870_v54, %v5874_v29 }
 0x3fa   : > { %v5707_v32 = vrot.slane %v5661_v27, %v11512_v36  ;;  %v5878_v33 = vsel %vm11673_vm6, %v9178_v49, %v5877_v1  ;;  %v5885_v35 = vrot.slane %v5858_v50, 7  ;;  %v5732_v17 = vshrl.u32 %v5683_v15, 16  ;;  %v11011_v27 = vld [vmem:[%s12915_s5 + $0x80] sm:$0xff]  }
 0x3fb   : > { %v5735_v5 = vshll.u32 %v5683_v15, 16  ;;  %v5882_v18 = vsel %vm11673_vm6, %v9179_v28, %v5881_v9  ;;  %v5957_v38 = vrot.slane %v5949_v31, %v11512_v36  ;;  %v5700_v40 = vcombine.high %v5699_v47, %v5699_v47 }
 0x3fc   : > { %v5741_v41 = vshll.u32 %v5684_v26, 16  ;;  %v5886_v55 = vsel %vm11673_vm6, %v9180_v13, %v5885_v35  ;;  %v5950_v53 = vcombine.low %v5878_v33, %v5882_v18  ;;  %v5734_v54 = vrot.slane %v5732_v17, 6  ;;  %v11014_v35 = vld [vmem:[%s12915_s5 + $0x88] sm:$0xff]  }
 0x3fd   : > { %v5737_v58 = vrot.slane %v5735_v5, 7  ;;  %v5966_v59 = vcombine.low %v5886_v55, %v12229_v7  ;;  %v5708_v60 = vcombine.high %v5707_v32, %v5707_v32  ;;  %v5746_v61 = vshrl.u32 %v5691_v14, 16 }
 0x3fe   : > { %v5749_v37 = vshll.u32 %v5691_v14, 16  ;;  %v5964_v2 = vrot.slane %v5950_v53, %v11512_v36  ;;  %v5755_v11 = vshll.u32 %v5692_v6, 16  ;;  %v5760_v12 = vshrl.u32 %v5699_v47, 16 }
 0x3ff   : > { %v5738_v3 = vor.u32 %v5737_v58, %v5734_v54  ;;  %v5973_v10 = vrot.slane %v5966_v59, %v11512_v36  ;;  %v5748_v15 = vrot.slane %v5746_v61, 6  ;;  %v5763_v21 = vshll.u32 %v5699_v47, 16  ;;  %v11017_v59 = vld [vmem:[%s12915_s5 + $0x90] sm:$0xff]  }
 0x400   : > { %v5751_v19 = vrot.slane %v5749_v37, 7  ;;  %v12277_v62 = vcombine.low %v5957_v38, %v5964_v2  ;;  %v5743_v56 = vrot.slane %v5741_v41, 7  ;;  %v5762_v23 = vrot.slane %v5760_v12, 6 }
 0x401   : > { %v5739_v34 = vrot.slane %v5738_v3, 2  ;;  %v6079_v43 = vrot.slane %v5973_v10, 2  ;;  %v5765_v16 = vrot.slane %v5763_v21, 7  ;;  %v5769_v25 = vshll.u32 %v5700_v40, 16  ;;  %v11015_v21 = vld [vmem:[%s12915_s5] sm:$0xff]  }
 0x402   : > { %v5752_v7 = vor.u32 %v5751_v19, %v5748_v15  ;;  %v6078_v39 = vrot.slane %v12277_v62, 2  ;;  %v5774_v42 = vshrl.u32 %v5707_v32, 16  ;;  %v5777_v51 = vshll.u32 %v5707_v32, 16 }
 0x403   : > { %v5744_v14 = vsel %vm11605_vm14, %v5739_v34, %v5743_v56  ;;  %v5757_v46 = vrot.slane %v5755_v11, 7  ;;  %v5766_v49 = vor.u32 %v5765_v16, %v5762_v23  ;;  %v5783_v28 = vshll.u32 %v5708_v60, 16  ;;  %v11016_v56 = vld [vmem:[%s12915_s5 + $0x48] sm:$0xff]   ;;  %v11019_v16 = vld [vmem:[%s12915_s5 + $0x50] sm:$0xff]  }
 0x404   : > { %v5753_v26 = vrot.slane %v5752_v7, 2  ;;  %v6080_v47 = vsel %vm1558_vm7, %v6078_v39, %v6079_v43  ;;  %v5771_v50 = vrot.slane %v5769_v25, 7  ;;  %v5776_v29 = vrot.slane %v5774_v42, 6  ;;  %v11023_v43 = vld [vmem:[%s12915_s5 + $0xa0] sm:$0xff]   ;;  %v11018_v7 = vld [vmem:[%s12915_s5 + $0x8] sm:$0xff]   ;;  %v11021_v39 = vld [vmem:[%s12915_s5 + $0x10] sm:$0xff]  }
 0x405   : > { %v5779_v1 = vrot.slane %v5777_v51, 7  ;;  %10395 = vmatmul.mubr.bf16.vlgmr.msra.gmra.mrb[48].mxu1 %v6080_v47  ;;  %v5767_v9 = vrot.slane %v5766_v49, 2  ;;  %v5923_v13 = vcombine.low %v12233_v8, %v5744_v14  ;;  %v5649_v31 = vmax.bf16 %v11289_v0, %v5643_v44  ;;  %v11026_v25 = vld [vmem:[%s12915_s5 + $0xa8] sm:$0xff]   ;;  %v11029_v14 = vld [vmem:[%s12915_s5 + $0xb0] sm:$0xff]   ;;  %v11024_v42 = vld [vmem:[%s12915_s5 + $0x18] sm:$0xff]  }
 0x406   : > { %v5758_v6 = vsel %vm11605_vm14, %v5753_v26, %v5757_v46  ;;  %10399 = vmatpush3.bf16.msra.mxu1 %v11011_v27  ;;  %v5785_v33 = vrot.slane %v5783_v28, 7  ;;  %v5897_v17 = vcombine.low %v12225_v57, %v12249_v52  ;;  %v5898_v5 = vcombine.low %v12252_v22, %v12257_v24  ;;  %10414 = vmatprep.mubr.msk.bf16.mxu1 %vm11292_vm9, %v11291_v4  ;;  %v11022_v27 = vld [vmem:[%s12915_s5 + $0x58] sm:$0xff]   ;;  %v11025_v51 = vld [vmem:[%s12915_s5 + $0x60] sm:$0xff]   ;;  %v11028_v46 = vld [vmem:[%s12915_s5 + $0x68] sm:$0xff]  }
 0x407   : > { %v5780_v32 = vor.u32 %v5779_v1, %v5776_v29  ;;  %10400 = vmatprep.subr.bf16.mxu1 %v11291_v4  ;;  %v5772_v8 = vsel %vm11605_vm14, %v5767_v9, %v5771_v50  ;;  %v5914_v18 = vcombine.low %v5649_v31, %v12240_v63  ;;  %v6591_v38 = vrot.slane %v12277_v62, 4  ;;  %v11032_v44 = vld [vmem:[%s12915_s5 + $0xb8] sm:$0xff]   ;;  %v11027_v26 = vld [vmem:[%s12915_s5 + $0x20] sm:$0xff]   ;;  %v11030_v28 = vld [vmem:[%s12915_s5 + $0x28] sm:$0xff]  }
 0x408   : > { %v6592_v40 = vrot.slane %v5973_v10, 4  ;;  %v5924_v55 = vcombine.low %v5758_v6, %v5772_v8  ;;  %v5905_v57 = vrot.slane %v5897_v17, %v11512_v36  ;;  %v5912_v52 = vrot.slane %v5898_v5, %v11512_v36  ;;  %v11035_v49 = vld [vmem:[%s12915_s5 + $0x200] sm:$0xff]   ;;  %v11031_v47 = vld [vmem:[%s12915_s5 + $0x70] sm:$0xff]   ;;  %v11038_v50 = vld [vmem:[%s12915_s5 + $0x208] sm:$0xff]  }
 0x409   : > { %v5781_v41 = vrot.slane %v5780_v32, 2  ;;  %v5921_v22 = vrot.slane %v5914_v18, %v11512_v36  ;;  %v5931_v53 = vrot.slane %v5923_v13, %v11512_v36  ;;  %v11033_v29 = vld [vmem:[%s12915_s5 + $0x30] sm:$0xff]   ;;  %v11036_v6 = vld [vmem:[%s12915_s5 + $0x38] sm:$0xff]   ;;  %v11037_v9 = vld [vmem:[%s12915_s5 + $0x1c0] sm:$0xff]  }
 0x40a   : > { %v12308_v24 = vsel %vm3444_vm8, %v6591_v38, %v6592_v40  ;;  %v5938_v54 = vrot.slane %v5924_v55, %v11512_v36  ;;  %10401 = vmatpush3.bf16.msra.mxu1 %v11014_v35  ;;  %v12314_v58 = vcombine.low %v5905_v57, %v5912_v52  ;;  %v11041_v1 = vld [vmem:[%s12915_s5 + $0x210] sm:$0xff]   ;;  %v11044_v13 = vld [vmem:[%s12915_s5 + $0x218] sm:$0xff]   ;;  %v11040_v35 = vld [vmem:[%s12915_s5 + $0x1c8] sm:$0xff]  }
 0x40b   : > { %v5786_v63 = vsel %vm11605_vm14, %v5781_v41, %v5785_v33  ;;  %10402 = vmatprep.subr.bf16.mxu1 %v11291_v4  ;;  %v6586_v61 = vrot.slane %v5921_v22, 4  ;;  %v6073_v10 = vrot.slane %v5921_v22, 2  ;;  %v11039_v33 = vld [vmem:[%s12915_s5 + $0x180] sm:$0xff]   ;;  %v11042_v8 = vld [vmem:[%s12915_s5 + $0x188] sm:$0xff]   ;;  %v11043_v18 = vld [vmem:[%s12915_s5 + $0x1d0] sm:$0xff]  }
 0x40c   : > { %v5940_v60 = vcombine.low %v5786_v63, %v12237_v20  ;;  %v12321_v37 = vcombine.low %v5931_v53, %v5938_v54  ;;  %v6585_v2 = vrot.slane %v12314_v58, 4  ;;  %v6072_v12 = vrot.slane %v12314_v58, 2  ;;  %v11020_v20 = vld [vmem:[%s12915_s5 + $0x98] sm:$0xff]   ;;  %v11047_v17 = vld [vmem:[%s12915_s5 + $0x220] sm:$0xff]   ;;  %v11050_v38 = vld [vmem:[%s12915_s5 + $0x228] sm:$0xff]  }
 0x40d   : > { %v11045_v40 = vld [vmem:[%s12915_s5 + $0x190] sm:$0xff]   ;;  %v11046_v41 = vld [vmem:[%s12915_s5 + $0x1d8] sm:$0xff]   ;;  %v11049_v52 = vld [vmem:[%s12915_s5 + $0x1e0] sm:$0xff]  }
 0x40e   : > { %v12325_v3 = vrot.slane %v5940_v60, %v11512_v36  ;;  %v6075_v11 = vrot.slane %v12321_v37, 2  ;;  %10403 = vmatpush3.bf16.msra.mxu1 %v11017_v59  ;;  %v12333_v15 = vsel %vm3444_vm8, %v6585_v2, %v6586_v61  ;;  %v6074_v23 = vsel %vm1558_vm7, %v6072_v12, %v6073_v10  ;;  %v11053_v55 = vld [vmem:[%s12915_s5 + $0x230] sm:$0xff]   ;;  %v11048_v57 = vld [vmem:[%s12915_s5 + $0x198] sm:$0xff]   ;;  %v11051_v63 = vld [vmem:[%s12915_s5 + $0x1a0] sm:$0xff]  }
 0x40f   : > { %10404 = vmatprep.subr.bf16.mxu1 %v11291_v4  ;;  %v6588_v31 = vrot.slane %v12321_v37, 4  ;;  %v11056_v22 = vld [vmem:[%s12915_s5 + $0x238] sm:$0xff]   ;;  %v11052_v53 = vld [vmem:[%s12915_s5 + $0x1e8] sm:$0xff]   ;;  %v11057_v59 = vld [vmem:[%s12915_s5 + $0x1b0] sm:$0xff]  }
 0x410   : > { %v6076_v19 = vrot.slane %v12325_v3, 2  ;;  %v6589_v32 = vrot.slane %v12325_v3, 4  ;;  %v11054_v54 = vld [vmem:[%s12915_s5 + $0x1a8] sm:$0xff]   ;;  %v11058_v60 = vld [vmem:[%s12915_s5 + $0x1f8] sm:$0xff]  }
 0x411   : > { %v11059_v61 = vld [vmem:[%s12915_s5 + $0x1b8] sm:$0xff]   ;;  %v11062_v2 = vld [vmem:[#allocation10 + $0x10] sm:$0xff]   ;;  %v11063_v3 = vld [vmem:[#allocation10 + $0x18] sm:$0xff]  }
 0x412   : > { %v6077_v34 = vsel %vm1558_vm7, %v6075_v11, %v6076_v19  ;;  %10405 = vmatpush3.bf16.msra.mxu1 %v11020_v20  ;;  %v6590_v5 = vsel %vm3444_vm8, %v6588_v31, %v6589_v32  ;;  %v11064_v11 = vld [vmem:[#allocation10 + $0x20] sm:$0xff]   ;;  %v11065_v12 = vld [vmem:[#allocation10 + $0x28] sm:$0xff]   ;;  %v11066_v10 = vld [vmem:[#allocation10 + $0x30] sm:$0xff]  }
 0x413   : > { %6260 = vmatprep.mubr.bf16.mxu0 %v6077_v34  ;;  %10406 = vmatprep.subr.bf16.mxu1 %v11291_v4  ;;  %v11067_v20 = vld [vmem:[#allocation10 + $0x38] sm:$0xff]  }
 0x414   : > { %6261 = vmatmul.mubr.bf16.vlgmr.msra.gmra.mrb[48].mxu0 %v6074_v23 }
 0x415   : > { %10146 = vmatpush3.bf16.msra.mxu0 %v11015_v21  ;;  %6486 = vmatprep.mubr.bf16.mxu0 %v12321_v37  ;;  %v11061_v37 = vld [vmem:[#allocation10 + $0x8] sm:$0xff]  }
 0x416   : > { %10147 = vmatprep.subr.bf16.mxu0 %v11016_v56  ;;  %10407 = vmatpush3.bf16.msra.mxu1 %v11023_v43 }
 0x417   : > { %10408 = vmatprep.subr.bf16.mxu1 %v11291_v4 }
 0x419   : > { %10148 = vmatpush3.bf16.msra.mxu0 %v11018_v7 }
 0x41a   : > { %10149 = vmatprep.subr.bf16.mxu0 %v11019_v16  ;;  %10409 = vmatpush3.bf16.msra.mxu1 %v11026_v25 }
 0x41b   : > { %10410 = vmatprep.subr.bf16.mxu1 %v11291_v4 }
 0x41d   : > { %10150 = vmatpush3.bf16.msra.mxu0 %v11021_v39 }
 0x41e   : > { %10151 = vmatprep.subr.bf16.mxu0 %v11022_v27  ;;  %10411 = vmatpush3.bf16.msra.mxu1 %v11029_v14 }
 0x41f   : > { %10412 = vmatprep.subr.bf16.mxu1 %v11291_v4 }
 0x421   : > { %10152 = vmatpush3.bf16.msra.mxu0 %v11024_v42 }
 0x422   : > { %10153 = vmatprep.subr.bf16.mxu0 %v11025_v51  ;;  %10413 = vmatpush3.bf16.msra.mxu1 %v11032_v44 }
 0x423   : > { %10418 = vmatprep.subr.bf16.mxu1 %v11291_v4 }
 0x425   : > { %10154 = vmatpush3.bf16.msra.mxu0 %v11027_v26  ;;  %10415 = vmatmul.mubr.bf16.vlgmr.msra.gmra.mrb[48].mxu1 %v12277_v62  ;;  %v11034_v62 = vld [vmem:[%s12915_s5 + $0x78] sm:$0xff]  }
 0x426   : > { %10155 = vmatprep.subr.bf16.mxu0 %v11028_v46  ;;  %10419 = vmatpush3.bf16.msra.mxu1 %v11035_v49 }
 0x427   : > { %10434 = vmatprep.mubr.msk.bf16.mxu1 %vm11292_vm9, %v11291_v4  ;;  %10420 = vmatprep.subr.bf16.mxu1 %v11291_v4 }
 0x429   : > { %10156 = vmatpush3.bf16.msra.mxu0 %v11030_v28 }
 0x42a   : > { %10157 = vmatprep.subr.bf16.mxu0 %v11031_v47  ;;  %10421 = vmatpush3.bf16.msra.mxu1 %v11038_v50 }
 0x42b   : > { %10422 = vmatprep.subr.bf16.mxu1 %v11291_v4 }
 0x42d   : > { %10158 = vmatpush3.bf16.msra.mxu0 %v11033_v29 }
 0x42e   : > { %10159 = vmatprep.subr.bf16.mxu0 %v11034_v62  ;;  %10423 = vmatpush3.bf16.msra.mxu1 %v11041_v1 }
 0x42f   : > { %10424 = vmatprep.subr.bf16.mxu1 %v11291_v4 }
 0x431   : > { %10160 = vmatpush3.bf16.msra.mxu0 %v11036_v6 }
 0x432   : > { %10176 = vmatprep.subr.bf16.mxu0 %v11037_v9  ;;  %10425 = vmatpush3.bf16.msra.mxu1 %v11044_v13 }
 0x433   : > { %10426 = vmatprep.subr.bf16.mxu1 %v11291_v4 }
 0x434   : > { %6487 = vmatmul.mubr.bf16.vlgmr.msra.gmra.mrb[52].mxu0 %v12314_v58  ;;  %v11055_v58 = vld [vmem:[%s12915_s5 + $0x1f0] sm:$0xff]  }
 0x435   : > { %10177 = vmatpush3.bf16.msra.mxu0 %v11039_v33  ;;  %6773 = vmatprep.mubr.bf16.mxu0 %v6590_v5  ;;  %v11071_v5 = vld [vmem:[%s12915_s5 + $0x300] sm:$0xff]  }
 0x436   : > { %10178 = vmatprep.subr.bf16.mxu0 %v11040_v35  ;;  %10427 = vmatpush3.bf16.msra.mxu1 %v11047_v17  ;;  %v11068_v35 = vld [vmem:[%s12915_s5 + $0x380] sm:$0xff]  }
 0x437   : > { %10428 = vmatprep.subr.bf16.mxu1 %v11291_v4  ;;  %v11069_v17 = vld [vmem:[%s12915_s5 + $0x340] sm:$0xff]  }
 0x439   : > { %10179 = vmatpush3.bf16.msra.mxu0 %v11042_v8  ;;  %v11072_v8 = vld [vmem:[%s12915_s5 + $0x348] sm:$0xff]  }
 0x43a   : > { %10180 = vmatprep.subr.bf16.mxu0 %v11043_v18  ;;  %10429 = vmatpush3.bf16.msra.mxu1 %v11050_v38  ;;  %v11070_v18 = vld [vmem:[%s12915_s5 + $0x388] sm:$0xff]  }
 0x43b   : > { %10430 = vmatprep.subr.bf16.mxu1 %v11291_v4  ;;  %v11074_v38 = vld [vmem:[%s12915_s5 + $0x308] sm:$0xff]  }
 0x43d   : > { %10181 = vmatpush3.bf16.msra.mxu0 %v11045_v40  ;;  %v11075_v40 = vld [vmem:[%s12915_s5 + $0x350] sm:$0xff]  }
 0x43e   : > { %10182 = vmatprep.subr.bf16.mxu0 %v11046_v41  ;;  %10431 = vmatpush3.bf16.msra.mxu1 %v11053_v55  ;;  %v11073_v41 = vld [vmem:[%s12915_s5 + $0x390] sm:$0xff]  }
 0x43f   : > { %10432 = vmatprep.subr.bf16.mxu1 %v11291_v4  ;;  %v11077_v55 = vld [vmem:[%s12915_s5 + $0x310] sm:$0xff]  }
 0x441   : > { %10183 = vmatpush3.bf16.msra.mxu0 %v11048_v57  ;;  %v11078_v57 = vld [vmem:[%s12915_s5 + $0x358] sm:$0xff]  }
 0x442   : > { %10184 = vmatprep.subr.bf16.mxu0 %v11049_v52  ;;  %10433 = vmatpush3.bf16.msra.mxu1 %v11056_v22  ;;  %v11076_v52 = vld [vmem:[%s12915_s5 + $0x398] sm:$0xff]  }
 0x443   : > { %10216 = vmatprep.subr.bf16.mxu1 %v11069_v17  ;;  %v11080_v22 = vld [vmem:[%s12915_s5 + $0x318] sm:$0xff]  }
 0x445   : > { %10185 = vmatpush3.bf16.msra.mxu0 %v11051_v63  ;;  %10435 = vmatmul.mubr.bf16.vlgmr.msra.gmra.mrb[48].mxu1 %v12308_v24  ;;  %v11060_v24 = vld [vmem:[#allocation10] sm:$0xff]   ;;  %v11081_v63 = vld [vmem:[%s12915_s5 + $0x360] sm:$0xff]  }
 0x446   : > { %10186 = vmatprep.subr.bf16.mxu0 %v11052_v53  ;;  %10217 = vmatpush3.bf16.msra.mxu1 %v11071_v5  ;;  %v11079_v53 = vld [vmem:[%s12915_s5 + $0x3a0] sm:$0xff]  }
 0x447   : > { %10218 = vmatprep.subr.bf16.mxu1 %v11072_v8  ;;  %v7123_v8 = vld [vmem:[#allocation3] sm:$0x7] }
 0x449   : > { %10187 = vmatpush3.bf16.msra.mxu0 %v11054_v54  ;;  %v11083_v54 = vld [vmem:[%s12915_s5 + $0x320] sm:$0xff]  }
 0x44a   : > { %10188 = vmatprep.subr.bf16.mxu0 %v11055_v58  ;;  %10219 = vmatpush3.bf16.msra.mxu1 %v11074_v38  ;;  %v11084_v58 = vld [vmem:[%s12915_s5 + $0x368] sm:$0xff]  }
 0x44b   : > { %10220 = vmatprep.subr.bf16.mxu1 %v11075_v40 }
 0x44d   : > { %10189 = vmatpush3.bf16.msra.mxu0 %v11057_v59  ;;  %v11082_v59 = vld [vmem:[%s12915_s5 + $0x3a8] sm:$0xff]  }
 0x44e   : > { %10190 = vmatprep.subr.bf16.mxu0 %v11058_v60  ;;  %10221 = vmatpush3.bf16.msra.mxu1 %v11077_v55  ;;  %v11086_v60 = vld [vmem:[%s12915_s5 + $0x328] sm:$0xff]   ;;  %v7128_v55 = vld [vmem:[#allocation3 + $0x14] sm:$0x7] }
 0x44f   : > { %10222 = vmatprep.subr.bf16.mxu1 %v11078_v57 }
 0x451   : > { %10191 = vmatpush3.bf16.msra.mxu0 %v11059_v61  ;;  %v11087_v61 = vld [vmem:[%s12915_s5 + $0x370] sm:$0xff]  }
 0x452   : > { %10438 = vmatprep.subr.bf16.mxu0 %v11291_v4  ;;  %10223 = vmatpush3.bf16.msra.mxu1 %v11080_v22 }
 0x453   : > { %10224 = vmatprep.subr.bf16.mxu1 %v11081_v63  ;;  %v7129_v63 = vmax.bf16 %v11289_v0, %v7123_v8 }
 0x454   : > { %6774 = vmatmul.mubr.bf16.vlgmr.msra.gmra.mrb[56].mxu0 %v12333_v15 }
 0x455   : > { %10454 = vmatprep.mubr.msk.bf16.mxu0 %vm11292_vm9, %v11291_v4  ;;  %10439 = vmatpush3.bf16.msra.mxu0 %v11060_v24  ;;  %v11085_v24 = vld [vmem:[%s12915_s5 + $0x3b0] sm:$0xff]  }
 0x456   : > { %10440 = vmatprep.subr.bf16.mxu0 %v11291_v4  ;;  %10225 = vmatpush3.bf16.msra.mxu1 %v11083_v54 }
 0x457   : > { %10226 = vmatprep.subr.bf16.mxu1 %v11084_v58  ;;  %v7134_v58 = vmax.bf16 %v11289_v0, %v7128_v55 }
 0x459   : > { %10441 = vmatpush3.bf16.msra.mxu0 %v11061_v37  ;;  %v11089_v37 = vld [vmem:[%s12915_s5 + $0x330] sm:$0xff]  }
 0x45a   : > { %10442 = vmatprep.subr.bf16.mxu0 %v11291_v4  ;;  %10227 = vmatpush3.bf16.msra.mxu1 %v11086_v60 }
 0x45b   : > { %10228 = vmatprep.subr.bf16.mxu1 %v11087_v61  ;;  %v7273_v61 = vld [vmem:[#allocation3] sm:$0x6] }
 0x45d   : > { %10443 = vmatpush3.bf16.msra.mxu0 %v11062_v2  ;;  %v11090_v2 = vld [vmem:[%s12915_s5 + $0x378] sm:$0xff]  }
 0x45e   : > { %10444 = vmatprep.subr.bf16.mxu0 %v11291_v4  ;;  %10229 = vmatpush3.bf16.msra.mxu1 %v11089_v37  ;;  %v7147_v37 = vrot.slane %v7129_v63, %v11512_v36 }
 0x45f   : > { %10230 = vmatprep.subr.bf16.mxu1 %v11090_v2 }
 0x461   : > { %10445 = vmatpush3.bf16.msra.mxu0 %v11063_v3  ;;  %v11088_v3 = vld [vmem:[%s12915_s5 + $0x3b8] sm:$0xff]  }
 0x462   : > { %10446 = vmatprep.subr.bf16.mxu0 %v11291_v4 }
 0x465   : > { %10447 = vmatpush3.bf16.msra.mxu0 %v11064_v11  ;;  %v11092_v11 = vld [vmem:[%s12915_s5 + $0x338] sm:$0xff]  }
 0x466   : > { %10448 = vmatprep.subr.bf16.mxu0 %v11291_v4  ;;  %10231 = vmatpush3.bf16.msra.mxu1 %v11092_v11 }
 0x469   : > { %10449 = vmatpush3.bf16.msra.mxu0 %v11065_v12  ;;  %v11093_v12 = vld [vmem:[%s12915_s5 + $0x280] sm:$0xff]  }
 0x46a   : > { %10450 = vmatprep.subr.bf16.mxu0 %v11291_v4  ;;  %10247 = vmatprep.subr.bf16.mxu1 %v11093_v12  ;;  %v7279_v12 = vmax.bf16 %v11289_v0, %v7273_v61 }
 0x46d   : > { %10451 = vmatpush3.bf16.msra.mxu0 %v11066_v10  ;;  %v9351_v10 = vld.sshfl [vmem:[#allocation4 + $0x8] sm:$0x13 pattern:$0x76325410] }
 0x46e   : > { %10452 = vmatprep.subr.bf16.mxu0 %v11291_v4 }
 0x471   : > { %10453 = vmatpush3.bf16.msra.mxu0 %v11067_v20  ;;  %v9350_v20 = vld.sshfl [vmem:[#allocation4 + $0x4] sm:$0x13 pattern:$0x76325410] }
 0x472   : > { %10458 = vmatprep.subr.bf16.mxu0 %v11291_v4 }
 0x4e7   : > { %v10130_v15 = vpop.f32.mrb[48].mxu0 }
 0x4e8   : > { %v10131_v19 = vpop.f32.mrb[49].mxu0 }
 0x4e9   : > { %v10132_v21 = vadd.f32 %v10131_v19, %v10130_v15  ;;  %v10133_v34 = vpop.f32.mrb[50].mxu0  ;;  %v9353_v15 = vld.sshfl [vmem:[#allocation4 + $0x10] sm:$0x13 pattern:$0x76325410]  ;;  %v6899_v19 = vshrl.u32 %v9351_v10, 16 }
 0x4ea   : > { %v10134_v56 = vpop.f32.mrb[51].mxu0 }
 0x4eb   : > { %v10135_v23 = vadd.f32 %v10134_v56, %v10133_v34  ;;  %v9352_v34 = vld.sshfl [vmem:[#allocation4 + $0xc] sm:$0x13 pattern:$0x76325410]  ;;  %v6885_v56 = vshrl.u32 %v9350_v20, 16 }
 0x507   : > { %v10161_v43 = vpop.f32.mrb[52].mxu0 }
 0x508   : > { %v10162_v7 = vpop.f32.mrb[53].mxu0 }
 0x509   : > { %v10163_v16 = vadd.f32 %v10162_v7, %v10161_v43  ;;  %v10164_v25 = vpop.f32.mrb[54].mxu0  ;;  %v6927_v43 = vshrl.u32 %v9353_v15, 16  ;;  %v6930_v7 = vshll.u32 %v9353_v15, 16 }
 0x50a   : > { %v10165_v39 = vpop.f32.mrb[55].mxu0 }
 0x50b   : > { %v10538_v27 = vadd.f32 %v10163_v16, %v10132_v21  ;;  %v10166_v14 = vadd.f32 %v10165_v39, %v10164_v25  ;;  %v6902_v21 = vshll.u32 %v9351_v10, 16  ;;  %v6901_v16 = vrot.slane %v6899_v19, 6 }
 0x50c   : > { %v6913_v39 = vshrl.u32 %v9352_v34, 16 }
 0x50d   : > { %v10541_v42 = vadd.f32 %v10166_v14, %v10135_v23  ;;  %v6888_v23 = vshll.u32 %v9350_v20, 16  ;;  %v6904_v25 = vrot.slane %v6902_v21, 7  ;;  %v6867_v14 = vcombine.high %v9351_v10, %v9351_v10 }
 0x50e   : > { %v7187_v10 = vrot.slane %v7134_v58, %v11512_v36 }
 0x518   : > { %v6816_v51 = vpop.f32.mrb[48].mxu1 }
 0x519   : > { %v10436_v44 = vpop.f32.mrb[49].mxu1 }
 0x51a   : > { %v6819_v26 = vpop.f32.mrb[50].mxu1  ;;  %v6929_v44 = vrot.slane %v6927_v43, 6 }
 0x51b   : > { %v10437_v46 = vpop.f32.mrb[51].mxu1 }
 0x51c   : > { %v6859_v46 = vcombine.high %v9350_v20, %v9350_v20 }
 0x527   : > { %v10192_v49 = vpop.f32.mrb[56].mxu0 }
 0x528   : > { %v10193_v28 = vpop.f32.mrb[57].mxu0 }
 0x529   : > { %v10194_v47 = vadd.f32 %v10193_v28, %v10192_v49  ;;  %v10195_v50 = vpop.f32.mrb[58].mxu0  ;;  %v6905_v49 = vor.u32 %v6904_v25, %v6901_v16  ;;  %v6883_v28 = vcombine.high %v9353_v15, %v9353_v15 }
 0x52a   : > { %v10196_v29 = vpop.f32.mrb[59].mxu0 }
 0x52b   : > { %v10539_v62 = vadd.f32 %v10538_v27, %v10194_v47  ;;  %v10197_v1 = vadd.f32 %v10196_v29, %v10195_v50  ;;  %v6916_v27 = vshll.u32 %v9352_v34, 16  ;;  %v6915_v47 = vrot.slane %v6913_v39, 6 }
 0x52c   : > { %v12601_v39 = vrot.slane %v7279_v12, %v11512_v36 }
 0x52d   : > { %v10540_v6 = vadd.f32 %v10539_v62, %v6816_v51  ;;  %v10542_v9 = vadd.f32 %v10541_v42, %v10197_v1  ;;  %v6887_v42 = vrot.slane %v6885_v56, 6  ;;  %v6890_v51 = vrot.slane %v6888_v23, 7 }
 0x52e   : > { %v6918_v50 = vrot.slane %v6916_v27, 7  ;;  %v6908_v62 = vshll.u32 %v6867_v14, 16  ;;  %v6875_v1 = vcombine.high %v9352_v34, %v9352_v34  ;;  %v7190_v56 = vshrl.u32 %v7147_v37, 16 }
 0x52f   : > { %v10543_v13 = vadd.f32 %v10542_v9, %v6819_v26  ;;  %v6825_v31 = vmax.f32 %v10540_v6, 0.0  ;;  %v6932_v26 = vrot.slane %v6930_v7, 7  ;;  %v6891_v29 = vor.u32 %v6890_v51, %v6887_v42 }
 0x530   : > { %v6894_v9 = vshll.u32 %v6859_v46, 16  ;;  %v6922_v17 = vshll.u32 %v6875_v1, 16  ;;  %v7193_v23 = vshll.u32 %v7147_v37, 16  ;;  %v7260_v27 = vshrl.u32 %v7187_v10, 16 }
 0x531   : > { %v6826_v32 = vmax.f32 %v10543_v13, 0.0  ;;  %v6933_v6 = vor.u32 %v6932_v26, %v6929_v44  ;;  %v6906_v13 = vrot.slane %v6905_v49, 2  ;;  %v7263_v14 = vshll.u32 %v7187_v10, 16 }
 0x532   : > { %v7148_v49 = vcombine.high %v7147_v37, %v7147_v37 }
 0x533   : > { %v6827_v33 = vpack.c.bf16 %v6826_v32, %v6825_v31  ;;  %v6919_v31 = vor.u32 %v6918_v50, %v6915_v47  ;;  %v6936_v32 = vshll.u32 %v6883_v28, 16  ;;  %v6934_v5 = vrot.slane %v6933_v6, 2 }
 0x534   : > { %v7192_v28 = vrot.slane %v7190_v56, 6  ;;  %v7195_v47 = vrot.slane %v7193_v23, 7  ;;  %v7111_v56 = vld [vmem:[#allocation3] sm:$0x3]  ;;  %v7116_v23 = vld [vmem:[#allocation3 + $0x14] sm:$0x3] }
 0x535   : > { %10455 = vmatmul.mubr.bf16.vlgmr.msra.gmra.mrb[60].mxu0 %v6827_v33  ;;  %v6892_v33 = vrot.slane %v6891_v29, 2  ;;  %v6920_v40 = vrot.slane %v6919_v31, 2  ;;  %v7265_v31 = vrot.slane %v7263_v14, 7 }
 0x536   : > { %10474 = vmatprep.mubr.msk.bf16.mxu0 %vm11292_vm9, %v11291_v4  ;;  %10459 = vmatpush3.bf16.msra.mxu0 %v11068_v35  ;;  %v6910_v35 = vrot.slane %v6908_v62, 7 }
 0x537   : > { %10460 = vmatprep.subr.bf16.mxu0 %v11291_v4 }
 0x538   : > { %v6911_v38 = vsel %vm11605_vm14, %v6906_v13, %v6910_v35  ;;  %v7262_v13 = vrot.slane %v7260_v27, 6 }
 0x53a   : > { %10461 = vmatpush3.bf16.msra.mxu0 %v11070_v18  ;;  %v6896_v18 = vrot.slane %v6894_v9, 7  ;;  %v7188_v9 = vcombine.high %v7187_v10, %v7187_v10  ;;  %v7266_v61 = vor.u32 %v7265_v31, %v7262_v13 }
 0x53b   : > { %10462 = vmatprep.subr.bf16.mxu0 %v11291_v4 }
 0x53c   : > { %v6897_v57 = vsel %vm11605_vm14, %v6892_v33, %v6896_v18 }
 0x53e   : > { %10463 = vmatpush3.bf16.msra.mxu0 %v11073_v41  ;;  %v6938_v41 = vrot.slane %v6936_v32, 7 }
 0x53f   : > { %10464 = vmatprep.subr.bf16.mxu0 %v11291_v4 }
 0x540   : > { %v6939_v22 = vsel %vm11605_vm14, %v6934_v5, %v6938_v41  ;;  %v7099_v5 = vld [vmem:[#allocation3 + $0x4] sm:$0x7] }
 0x541   : > { %v6947_v60 = vunpack.c.l.bf16 %v6939_v22 }
 0x542   : > { %10465 = vmatpush3.bf16.msra.mxu0 %v11076_v52  ;;  %v6924_v52 = vrot.slane %v6922_v17, 7 }
 0x543   : > { %10466 = vmatprep.subr.bf16.mxu0 %v11291_v4 }
 0x544   : > { %v6925_v54 = vsel %vm11605_vm14, %v6920_v40, %v6924_v52  ;;  %v7102_v52 = vld [vmem:[#allocation3 + $0x8] sm:$0x7] }
 0x546   : > { %10467 = vmatpush3.bf16.msra.mxu0 %v11079_v53  ;;  %v6945_v53 = vunpack.c.l.bf16 %v6911_v38  ;;  %v7298_v38 = vcombine.high %v12601_v39, %v12601_v39 }
 0x547   : > { %10468 = vmatprep.subr.bf16.mxu0 %v11291_v4 }
 0x548   : > { %v7341_v12 = vrot.slane %v7298_v38, 7 }
 0x54a   : > { %10469 = vmatpush3.bf16.msra.mxu0 %v11082_v59  ;;  %v6944_v59 = vunpack.c.l.bf16 %v6897_v57 }
 0x54b   : > { %10470 = vmatprep.subr.bf16.mxu0 %v11291_v4 }
 0x54c   : > { %v7000_v2 = vcombine.low %v6944_v59, %v6945_v53  ;;  %v7196_v53 = vor.u32 %v7195_v47, %v7192_v28 }
 0x54e   : > { %10471 = vmatpush3.bf16.msra.mxu0 %v11085_v24  ;;  %v7278_v24 = vld [vmem:[#allocation3 + $0x14] sm:$0x6] }
 0x54f   : > { %10472 = vmatprep.subr.bf16.mxu0 %v11291_v4  ;;  %v7284_v21 = vmax.bf16 %v11289_v0, %v7278_v24  ;;  %v7269_v24 = vshll.u32 %v7188_v9, 16 }
 0x551   : > { %v7337_v26 = vrot.slane %v7284_v21, %v11512_v36  ;;  %v7267_v21 = vrot.slane %v7266_v61, 2 }
 0x552   : > { %10473 = vmatpush3.bf16.msra.mxu0 %v11088_v3  ;;  %v6946_v3 = vunpack.c.l.bf16 %v6925_v54  ;;  %v7199_v54 = vshll.u32 %v7148_v49, 16  ;;  %v12635_v49 = vmax.bf16 %v11289_v0, %v7116_v23 }
 0x553   : > { %10478 = vmatprep.subr.bf16.mxu0 %v11291_v4  ;;  %v7338_v63 = vcombine.high %v7337_v26, %v7337_v26  ;;  %v9371_v10 = vrot.slane %v7337_v26, 9 }
 0x554   : > { %v7001_v19 = vcombine.low %v6946_v3, %v6947_v60  ;;  %v7105_v60 = vld [vmem:[#allocation3 + $0xc] sm:$0x7] }
 0x608   : > { %v7038_v11 = vpop.f32.mrb[60].mxu0 }
 0x609   : > { %v7039_v20 = vadd.f32 %v7038_v11, %v7000_v2  ;;  %v10456_v15 = vpop.f32.mrb[61].mxu0  ;;  %v7108_v2 = vld [vmem:[#allocation3 + $0x10] sm:$0x7]  ;;  %v9366_v11 = vrot.slane %v12601_v39, 9 }
 0x60a   : > { %v7041_v34 = vpop.f32.mrb[62].mxu0  ;;  %v7197_v15 = vrot.slane %v7196_v53, 2 }
 0x60b   : > { %v7047_v43 = vcombine.high %v7039_v20, %v7039_v20  ;;  %v9614_v7 = vpack.c.bf16 %v7039_v20, %v7039_v20  ;;  %v7042_v16 = vadd.f32 %v7041_v34, %v7001_v19  ;;  %v10457_v25 = vpop.f32.mrb[63].mxu0  ;;  %v7361_v20 = vrot.slane %v7338_v63, 7 }
 0x60c   : > { %v7201_v19 = vrot.slane %v7199_v54, 7  ;;  %v7271_v34 = vrot.slane %v7269_v24, 7  ;;  %v7342_v48 = vsel %vm11673_vm6, %v9366_v11, %v7341_v12 }
 0x60d   : > { %v9615_v42 = vpack.c.bf16 %v7047_v43, %v7047_v43  ;;  %v7068_v51 = vshrl.u32 %v9614_v7, 16  ;;  %v7048_v44 = vcombine.high %v7042_v16, %v7042_v16  ;;  %v9616_v46 = vpack.c.bf16 %v7042_v16, %v7042_v16 }
 0x60e   : > { %v7071_v29 = vshll.u32 %v9614_v7, 16  ;;  %v12620_v25 = vsel %vm11673_vm6, %v9371_v10, %v7361_v20 }
 0x60f   : > { %v7070_v50 = vrot.slane %v7068_v51, 7  ;;  %v7075_v62 = vshrl.u32 %v9615_v42, 16  ;;  %v9617_v1 = vpack.c.bf16 %v7048_v44, %v7048_v44  ;;  %v7082_v6 = vshrl.u32 %v9616_v46, 16 }
 0x610   : > { %v7078_v35 = vshll.u32 %v9615_v42, 16  ;;  %v7085_v18 = vshll.u32 %v9616_v46, 16  ;;  %v12625_v51 = vsel %vm11605_vm14, %v7197_v15, %v7201_v19  ;;  %v12629_v44 = vsel %vm11605_vm14, %v7267_v21, %v7271_v34 }
 0x611   : > { %v7073_v32 = vor.u32 %v7071_v29, %v7070_v50  ;;  %v7077_v33 = vrot.slane %v7075_v62, 7  ;;  %v7089_v17 = vshrl.u32 %v9617_v1, 16  ;;  %v7084_v8 = vrot.slane %v7082_v6, 7 }
 0x612   : > { %v7092_v57 = vshll.u32 %v9617_v1, 16  ;;  %v12632_v46 = vmax.bf16 %v11289_v0, %v7111_v56 }
 0x613   : > { %v7080_v40 = vor.u32 %v7078_v35, %v7077_v33  ;;  %v7100_v41 = vsel %vm11519_vm4, %v7073_v32, %v7099_v5  ;;  %v7091_v55 = vrot.slane %v7089_v17, 7  ;;  %v7087_v22 = vor.u32 %v7085_v18, %v7084_v8 }
 0x614   : > { %7101 = vst [vmem:[#allocation3 + $0x4] sm:$0x7] %v7100_v41 }
 0x615   : > { %v7103_v58 = vsel %vm11519_vm4, %v7080_v40, %v7102_v52  ;;  %v7094_v59 = vor.u32 %v7092_v57, %v7091_v55  ;;  %v7106_v37 = vsel %vm11519_vm4, %v7087_v22, %v7105_v60 }
 0x616   : > { %7104 = vst [vmem:[#allocation3 + $0x8] sm:$0x7] %v7103_v58  ;;  %7107 = vst [vmem:[#allocation3 + $0xc] sm:$0x7] %v7106_v37 }
 0x617   : > { %v7109_v3 = vsel %vm11519_vm4, %v7094_v59, %v7108_v2 }
 0x618   : > { %7110 = vst [vmem:[#allocation3 + $0x10] sm:$0x7] %v7109_v3 }
 0x61b   : > { %v7274_v43 = vld [vmem:[#allocation3 + $0x4] sm:$0x6] }
 0x61c   : > { %v7124_v7 = vld [vmem:[#allocation3 + $0x4] sm:$0x7]  ;;  %v7280_v16 = vmax.bf16 %v11289_v0, %v7274_v43 }
 0x61d   : > { %v7130_v39 = vmax.bf16 %v11289_v0, %v7124_v7  ;;  %v7112_v27 = vld [vmem:[#allocation3 + $0x4] sm:$0x3]  ;;  %v7275_v14 = vld [vmem:[#allocation3 + $0x8] sm:$0x6]  ;;  %v7276_v28 = vld [vmem:[#allocation3 + $0xc] sm:$0x6] }
 0x61e   : > { %v7125_v42 = vld [vmem:[#allocation3 + $0x8] sm:$0x7]  ;;  %v7281_v47 = vmax.bf16 %v11289_v0, %v7275_v14  ;;  %v7305_v50 = vrot.slane %v7280_v16, %v11512_v36  ;;  %v7126_v29 = vld [vmem:[#allocation3 + $0xc] sm:$0x7]  ;;  %v7282_v13 = vmax.bf16 %v11289_v0, %v7276_v28  ;;  %v12644_v33 = vmax.bf16 %v11289_v0, %v7112_v27 }
 0x61f   : > { %v7113_v26 = vld [vmem:[#allocation3 + $0x8] sm:$0x3]  ;;  %v7131_v62 = vmax.bf16 %v11289_v0, %v7125_v42  ;;  %v7155_v1 = vrot.slane %v7130_v39, %v11512_v36  ;;  %v7114_v6 = vld [vmem:[#allocation3 + $0xc] sm:$0x3]  ;;  %v7277_v9 = vld [vmem:[#allocation3 + $0x10] sm:$0x6]  ;;  %v7132_v32 = vmax.bf16 %v11289_v0, %v7126_v29 }
 0x620   : > { %v7127_v31 = vld [vmem:[#allocation3 + $0x10] sm:$0x7]  ;;  %v12647_v35 = vmax.bf16 %v11289_v0, %v7113_v26  ;;  %v7283_v17 = vmax.bf16 %v11289_v0, %v7277_v9  ;;  %v7306_v5 = vcombine.high %v7305_v50, %v7305_v50  ;;  %v7313_v8 = vrot.slane %v7281_v47, %v11512_v36 }
 0x621   : > { %v12652_v18 = vmax.bf16 %v11289_v0, %v7114_v6  ;;  %v7321_v38 = vrot.slane %v7282_v13, %v11512_v36  ;;  %v9367_v40 = vrot.slane %v7305_v50, 9  ;;  %v7133_v41 = vmax.bf16 %v11289_v0, %v7127_v31 }
 0x622   : > { %v7163_v55 = vrot.slane %v7131_v62, %v11512_v36  ;;  %v7314_v57 = vcombine.high %v7313_v8, %v7313_v8  ;;  %v7329_v52 = vrot.slane %v7283_v17, %v11512_v36  ;;  %v7345_v22 = vrot.slane %v7306_v5, 7 }
 0x623   : > { %v7156_v63 = vcombine.high %v7155_v1, %v7155_v1  ;;  %v7322_v53 = vcombine.high %v7321_v38, %v7321_v38  ;;  %v9368_v54 = vrot.slane %v7313_v8, 9  ;;  %v9369_v58 = vrot.slane %v7321_v38, 9  ;;  %v11091_v38 = vld [vmem:[%s12915_s5 + $0x2c0] sm:$0xff]  }
 0x624   : > { %v7171_v59 = vrot.slane %v7132_v32, %v11512_v36  ;;  %v7330_v60 = vcombine.high %v7329_v52, %v7329_v52  ;;  %v7346_v61 = vsel %vm11673_vm6, %v9367_v40, %v7345_v22  ;;  %v7349_v24 = vrot.slane %v7314_v57, 7  ;;  %v7115_v57 = vld [vmem:[#allocation3 + $0x10] sm:$0x3] }
 0x625   : > { %v7164_v37 = vcombine.high %v7163_v55, %v7163_v55  ;;  %v7353_v2 = vrot.slane %v7322_v53, 7  ;;  %v9370_v3 = vrot.slane %v7329_v52, 9  ;;  %v7421_v11 = vcombine.low %v7342_v48, %v7346_v61 }
 0x626   : > { %v7179_v12 = vrot.slane %v7133_v41, %v11512_v36  ;;  %v7350_v10 = vsel %vm11673_vm6, %v9368_v54, %v7349_v24  ;;  %v7357_v20 = vrot.slane %v7330_v60, 7  ;;  %v7204_v15 = vshrl.u32 %v7155_v1, 16 }
 0x627   : > { %v7207_v19 = vshll.u32 %v7155_v1, 16  ;;  %v7354_v21 = vsel %vm11673_vm6, %v9369_v58, %v7353_v2  ;;  %v7429_v34 = vrot.slane %v7421_v11, %v11512_v36  ;;  %v7172_v56 = vcombine.high %v7171_v59, %v7171_v59 }
 0x628   : > { %v7213_v23 = vshll.u32 %v7156_v63, 16  ;;  %v7358_v43 = vsel %vm11673_vm6, %v9370_v3, %v7357_v20  ;;  %v7422_v7 = vcombine.low %v7350_v10, %v7354_v21  ;;  %v7206_v16 = vrot.slane %v7204_v15, 6 }
 0x629   : > { %v7209_v48 = vrot.slane %v7207_v19, 7  ;;  %v7438_v39 = vcombine.low %v7358_v43, %v12620_v25  ;;  %v7180_v27 = vcombine.high %v7179_v12, %v7179_v12  ;;  %v7218_v14 = vshrl.u32 %v7163_v55, 16 }
 0x62a   : > { %v7221_v42 = vshll.u32 %v7163_v55, 16  ;;  %v7436_v26 = vrot.slane %v7422_v7, %v11512_v36  ;;  %v7227_v47 = vshll.u32 %v7164_v37, 16  ;;  %v7232_v50 = vshrl.u32 %v7171_v59, 16  ;;  %v11097_v7 = vld [vmem:[%s12915_s5 + $0x2d0] sm:$0xff]  }
 0x62b   : > { %v7210_v28 = vor.u32 %v7209_v48, %v7206_v16  ;;  %v7445_v29 = vrot.slane %v7438_v39, %v11512_v36  ;;  %v7220_v62 = vrot.slane %v7218_v14, 6  ;;  %v7235_v6 = vshll.u32 %v7171_v59, 16 }
 0x62c   : > { %v7223_v1 = vrot.slane %v7221_v42, 7  ;;  %v12672_v45 = vcombine.low %v7429_v34, %v7436_v26  ;;  %v7215_v13 = vrot.slane %v7213_v23, 7  ;;  %v7234_v31 = vrot.slane %v7232_v50, 6 }
 0x62d   : > { %v7211_v9 = vrot.slane %v7210_v28, 2  ;;  %v7552_v32 = vrot.slane %v7445_v29, 2  ;;  %v7237_v17 = vrot.slane %v7235_v6, 7  ;;  %v7241_v5 = vshll.u32 %v7172_v56, 16  ;;  %v11103_v6 = vld [vmem:[%s12915_s5 + $0x2e0] sm:$0xff]  }
 0x62e   : > { %v7224_v25 = vor.u32 %v7223_v1, %v7220_v62  ;;  %v7551_v8 = vrot.slane %v12672_v45, 2  ;;  %v7246_v41 = vshrl.u32 %v7179_v12, 16  ;;  %v7249_v55 = vshll.u32 %v7179_v12, 16  ;;  %v11094_v12 = vld [vmem:[%s12915_s5 + $0x2c8] sm:$0xff]  }
 0x62f   : > { %v7216_v40 = vsel %vm11605_vm14, %v7211_v9, %v7215_v13  ;;  %v7229_v22 = vrot.slane %v7227_v47, 7  ;;  %v7238_v63 = vor.u32 %v7237_v17, %v7234_v31  ;;  %v7255_v53 = vshll.u32 %v7180_v27, 16  ;;  %v11096_v62 = vld [vmem:[%s12915_s5 + $0x288] sm:$0xff]   ;;  %v11099_v13 = vld [vmem:[%s12915_s5 + $0x290] sm:$0xff]  }
 0x630   : > { %v7225_v52 = vrot.slane %v7224_v25, 2  ;;  %v7553_v54 = vsel %vm1558_vm7, %v7551_v8, %v7552_v32  ;;  %v7243_v58 = vrot.slane %v7241_v5, 7  ;;  %v7248_v59 = vrot.slane %v7246_v41, 6  ;;  %v11098_v9 = vld [vmem:[%s12915_s5 + $0x248] sm:$0xff]   ;;  %v11101_v32 = vld [vmem:[%s12915_s5 + $0x250] sm:$0xff]   ;;  %v11102_v25 = vld [vmem:[%s12915_s5 + $0x298] sm:$0xff]  }
 0x631   : > { %v7251_v60 = vrot.slane %v7249_v55, 7  ;;  %10475 = vmatmul.mubr.bf16.vlgmr.msra.gmra.mrb[64].mxu0 %v7553_v54  ;;  %v7239_v24 = vrot.slane %v7238_v63, 2  ;;  %v7395_v37 = vcombine.low %v12625_v51, %v7216_v40  ;;  %v7121_v2 = vmax.bf16 %v11289_v0, %v7115_v57  ;;  %v11106_v31 = vld [vmem:[%s12915_s5 + $0x2e8] sm:$0xff]   ;;  %v11109_v17 = vld [vmem:[%s12915_s5 + $0x2f0] sm:$0xff]   ;;  %v11104_v5 = vld [vmem:[%s12915_s5 + $0x258] sm:$0xff]  }
 0x632   : > { %v7230_v61 = vsel %vm11605_vm14, %v7225_v52, %v7229_v22  ;;  %10479 = vmatpush3.bf16.msra.mxu0 %v11091_v38  ;;  %v7257_v11 = vrot.slane %v7255_v53, 7  ;;  %v7369_v10 = vcombine.low %v12632_v46, %v12644_v33  ;;  %v7370_v20 = vcombine.low %v12647_v35, %v12652_v18  ;;  %10494 = vmatprep.mubr.msk.bf16.mxu0 %vm11292_vm9, %v11291_v4  ;;  %v11105_v8 = vld [vmem:[%s12915_s5 + $0x2a0] sm:$0xff]   ;;  %v11112_v38 = vld [vmem:[%s12915_s5 + $0x2f8] sm:$0xff]   ;;  %v11108_v41 = vld [vmem:[%s12915_s5 + $0x2a8] sm:$0xff]  }
 0x633   : > { %v7252_v3 = vor.u32 %v7251_v60, %v7248_v59  ;;  %10480 = vmatprep.subr.bf16.mxu0 %v11291_v4  ;;  %v7244_v51 = vsel %vm11605_vm14, %v7239_v24, %v7243_v58  ;;  %v7386_v0 = vcombine.low %v7121_v2, %v12635_v49  ;;  %v8064_v15 = vrot.slane %v12672_v45, 4  ;;  %v11107_v40 = vld [vmem:[%s12915_s5 + $0x260] sm:$0xff]   ;;  %v11110_v57 = vld [vmem:[%s12915_s5 + $0x268] sm:$0xff]   ;;  %v11111_v52 = vld [vmem:[%s12915_s5 + $0x2b0] sm:$0xff]  }
 0x634   : > { %v8065_v19 = vrot.slane %v7445_v29, 4  ;;  %v7396_v34 = vcombine.low %v7230_v61, %v7244_v51  ;;  %v7377_v46 = vrot.slane %v7369_v10, %v11512_v36  ;;  %v7384_v33 = vrot.slane %v7370_v20, %v11512_v36  ;;  %v11115_v55 = vld [vmem:[%s12915_s5 + $0x440] sm:$0xff]   ;;  %v11118_v22 = vld [vmem:[%s12915_s5 + $0x448] sm:$0xff]   ;;  %v11113_v63 = vld [vmem:[%s12915_s5 + $0x270] sm:$0xff]  }
 0x635   : > { %v7253_v21 = vrot.slane %v7252_v3, 2  ;;  %v7393_v35 = vrot.slane %v7386_v0, %v11512_v36  ;;  %v7403_v56 = vrot.slane %v7395_v37, %v11512_v36  ;;  %v11121_v53 = vld [vmem:[%s12915_s5 + $0x450] sm:$0xff]   ;;  %v11116_v54 = vld [vmem:[%s12915_s5 + $0x278] sm:$0xff]   ;;  %v11117_v58 = vld [vmem:[%s12915_s5 + $0x400] sm:$0xff]  }
 0x636   : > { %v12703_v18 = vsel %vm3444_vm8, %v8064_v15, %v8065_v19  ;;  %v7410_v23 = vrot.slane %v7396_v34, %v11512_v36  ;;  %10481 = vmatpush3.bf16.msra.mxu0 %v11094_v12  ;;  %v12709_v43 = vcombine.low %v7377_v46, %v7384_v33  ;;  %v11124_v59 = vld [vmem:[%s12915_s5 + $0x458] sm:$0xff]   ;;  %v11119_v24 = vld [vmem:[%s12915_s5 + $0x3c0] sm:$0xff]   ;;  %v11120_v37 = vld [vmem:[%s12915_s5 + $0x408] sm:$0xff]  }
 0x637   : > { %v7258_v49 = vsel %vm11605_vm14, %v7253_v21, %v7257_v11  ;;  %10482 = vmatprep.subr.bf16.mxu0 %v11291_v4  ;;  %v8059_v48 = vrot.slane %v7393_v35, 4  ;;  %v7546_v28 = vrot.slane %v7393_v35, 2  ;;  %v11127_v2 = vld [vmem:[%s12915_s5 + $0x460] sm:$0xff]   ;;  %v11122_v11 = vld [vmem:[%s12915_s5 + $0x3c8] sm:$0xff]   ;;  %v11123_v12 = vld [vmem:[%s12915_s5 + $0x410] sm:$0xff]  }
 0x638   : > { %v7412_v16 = vcombine.low %v7258_v49, %v12629_v44  ;;  %v12716_v39 = vcombine.low %v7403_v56, %v7410_v23  ;;  %v8058_v27 = vrot.slane %v12709_v43, 4  ;;  %v7545_v26 = vrot.slane %v12709_v43, 2  ;;  %v11100_v44 = vld [vmem:[%s12915_s5 + $0x2d8] sm:$0xff]   ;;  %v11130_v10 = vld [vmem:[%s12915_s5 + $0x468] sm:$0xff]   ;;  %v11125_v20 = vld [vmem:[%s12915_s5 + $0x3d0] sm:$0xff]  }
 0x639   : > { %v11126_v51 = vld [vmem:[%s12915_s5 + $0x418] sm:$0xff]   ;;  %v11133_v0 = vld [vmem:[%s12915_s5 + $0x470] sm:$0xff]   ;;  %v11129_v19 = vld [vmem:[%s12915_s5 + $0x420] sm:$0xff]  }
 0x63a   : > { %v12720_v14 = vrot.slane %v7412_v16, %v11512_v36  ;;  %v7548_v42 = vrot.slane %v12716_v39, 2  ;;  %10483 = vmatpush3.bf16.msra.mxu0 %v11097_v7  ;;  %v12728_v47 = vsel %vm3444_vm8, %v8058_v27, %v8059_v48  ;;  %v11095_v36 = vld [vmem:[%s12915_s5 + $0x240] sm:$0xff]   ;;  %v7547_v1 = vsel %vm1558_vm7, %v7545_v26, %v7546_v28  ;;  %v11128_v15 = vld [vmem:[%s12915_s5 + $0x3d8] sm:$0xff]   ;;  %v11132_v46 = vld [vmem:[%s12915_s5 + $0x428] sm:$0xff]  }
 0x63b   : > { %10484 = vmatprep.subr.bf16.mxu0 %v11291_v4  ;;  %v8061_v60 = vrot.slane %v12716_v39, 4  ;;  %v11136_v21 = vld [vmem:[%s12915_s5 + $0x478] sm:$0xff]   ;;  %v11131_v34 = vld [vmem:[%s12915_s5 + $0x3e0] sm:$0xff]   ;;  %v11134_v33 = vld [vmem:[%s12915_s5 + $0x3e8] sm:$0xff]  }
 0x63c   : > { %v7549_v50 = vrot.slane %v12720_v14, 2  ;;  %v8062_v61 = vrot.slane %v12720_v14, 4  ;;  %v11135_v35 = vld [vmem:[%s12915_s5 + $0x430] sm:$0xff]   ;;  %v11138_v56 = vld [vmem:[%s12915_s5 + $0x438] sm:$0xff]   ;;  %v11142_v7 = vld [vmem:[#allocation10 + $0x50] sm:$0xff]  }
 0x63d   : > { %v11137_v49 = vld [vmem:[%s12915_s5 + $0x3f0] sm:$0xff]   ;;  %v11139_v23 = vld [vmem:[%s12915_s5 + $0x3f8] sm:$0xff]   ;;  %v11146_v27 = vld [vmem:[#allocation10 + $0x70] sm:$0xff]  }
 0x63e   : > { %v7550_v29 = vsel %vm1558_vm7, %v7548_v42, %v7549_v50  ;;  %10485 = vmatpush3.bf16.msra.mxu0 %v11100_v44  ;;  %v8063_v3 = vsel %vm3444_vm8, %v8061_v60, %v8062_v61  ;;  %v11143_v16 = vld [vmem:[#allocation10 + $0x58] sm:$0xff]   ;;  %v11144_v48 = vld [vmem:[#allocation10 + $0x60] sm:$0xff]  }
 0x63f   : > { %7733 = vmatprep.mubr.bf16.mxu1 %v7550_v29  ;;  %10486 = vmatprep.subr.bf16.mxu0 %v11291_v4  ;;  %v11147_v14 = vld [vmem:[#allocation10 + $0x78] sm:$0xff]  }
 0x640   : > { %7734 = vmatmul.mubr.bf16.vlgmr.msra.gmra.mrb[52].mxu1 %v7547_v1  ;;  %v9591_v60 = vld.sshfl [vmem:[#allocation3 + $0x10] sm:$0x13 pattern:$0x76325410] }
 0x641   : > { %10248 = vmatpush3.bf16.msra.mxu1 %v11095_v36  ;;  %7959 = vmatprep.mubr.bf16.mxu1 %v12716_v39  ;;  %v11145_v39 = vld [vmem:[#allocation10 + $0x68] sm:$0xff]  }
 0x642   : > { %10249 = vmatprep.subr.bf16.mxu1 %v11096_v62  ;;  %10487 = vmatpush3.bf16.msra.mxu0 %v11103_v6 }
 0x643   : > { %10488 = vmatprep.subr.bf16.mxu0 %v11291_v4 }
 0x645   : > { %10250 = vmatpush3.bf16.msra.mxu1 %v11098_v9 }
 0x646   : > { %10251 = vmatprep.subr.bf16.mxu1 %v11099_v13  ;;  %10489 = vmatpush3.bf16.msra.mxu0 %v11106_v31 }
 0x647   : > { %10490 = vmatprep.subr.bf16.mxu0 %v11291_v4 }
 0x649   : > { %10252 = vmatpush3.bf16.msra.mxu1 %v11101_v32 }
 0x64a   : > { %10253 = vmatprep.subr.bf16.mxu1 %v11102_v25  ;;  %10491 = vmatpush3.bf16.msra.mxu0 %v11109_v17 }
 0x64b   : > { %10492 = vmatprep.subr.bf16.mxu0 %v11291_v4 }
 0x64d   : > { %10254 = vmatpush3.bf16.msra.mxu1 %v11104_v5 }
 0x64e   : > { %10255 = vmatprep.subr.bf16.mxu1 %v11105_v8  ;;  %10493 = vmatpush3.bf16.msra.mxu0 %v11112_v38 }
 0x64f   : > { %10498 = vmatprep.subr.bf16.mxu0 %v11291_v4 }
 0x651   : > { %10256 = vmatpush3.bf16.msra.mxu1 %v11107_v40  ;;  %10495 = vmatmul.mubr.bf16.vlgmr.msra.gmra.mrb[64].mxu0 %v12672_v45  ;;  %v11114_v45 = vld [vmem:[%s12915_s5 + $0x2b8] sm:$0xff]  }
 0x652   : > { %10257 = vmatprep.subr.bf16.mxu1 %v11108_v41  ;;  %10499 = vmatpush3.bf16.msra.mxu0 %v11115_v55 }
 0x653   : > { %10514 = vmatprep.mubr.msk.bf16.mxu0 %vm11292_vm9, %v11291_v4  ;;  %10500 = vmatprep.subr.bf16.mxu0 %v11291_v4 }
 0x655   : > { %10258 = vmatpush3.bf16.msra.mxu1 %v11110_v57 }
 0x656   : > { %10259 = vmatprep.subr.bf16.mxu1 %v11111_v52  ;;  %10501 = vmatpush3.bf16.msra.mxu0 %v11118_v22 }
 0x657   : > { %10502 = vmatprep.subr.bf16.mxu0 %v11291_v4 }
 0x659   : > { %10260 = vmatpush3.bf16.msra.mxu1 %v11113_v63 }
 0x65a   : > { %10261 = vmatprep.subr.bf16.mxu1 %v11114_v45  ;;  %10503 = vmatpush3.bf16.msra.mxu0 %v11121_v53 }
 0x65b   : > { %10504 = vmatprep.subr.bf16.mxu0 %v11291_v4 }
 0x65d   : > { %10262 = vmatpush3.bf16.msra.mxu1 %v11116_v54 }
 0x65e   : > { %10278 = vmatprep.subr.bf16.mxu1 %v11117_v58  ;;  %10505 = vmatpush3.bf16.msra.mxu0 %v11124_v59  ;;  %v9589_v58 = vld.sshfl [vmem:[#allocation3 + $0x8] sm:$0x13 pattern:$0x76325410] }
 0x65f   : > { %10506 = vmatprep.subr.bf16.mxu0 %v11291_v4  ;;  %v9588_v59 = vld.sshfl [vmem:[#allocation3 + $0x4] sm:$0x13 pattern:$0x76325410]  ;;  %v8373_v61 = vshrl.u32 %v9589_v58, 16 }
 0x660   : > { %7960 = vmatmul.mubr.bf16.vlgmr.msra.gmra.mrb[56].mxu1 %v12709_v43  ;;  %v11141_v43 = vld [vmem:[#allocation10 + $0x48] sm:$0xff]  }
 0x661   : > { %10279 = vmatpush3.bf16.msra.mxu1 %v11119_v24  ;;  %8246 = vmatprep.mubr.bf16.mxu1 %v8063_v3  ;;  %v8376_v24 = vshll.u32 %v9589_v58, 16  ;;  %v8362_v3 = vshll.u32 %v9588_v59, 16 }
 0x662   : > { %10280 = vmatprep.subr.bf16.mxu1 %v11120_v37  ;;  %10507 = vmatpush3.bf16.msra.mxu0 %v11127_v2  ;;  %v9590_v37 = vld.sshfl [vmem:[#allocation3 + $0xc] sm:$0x13 pattern:$0x76325410]  ;;  %v8359_v2 = vshrl.u32 %v9588_v59, 16 }
 0x663   : > { %10508 = vmatprep.subr.bf16.mxu0 %v11291_v4 }
 0x665   : > { %10281 = vmatpush3.bf16.msra.mxu1 %v11122_v11  ;;  %v8401_v11 = vshrl.u32 %v9591_v60, 16 }
 0x666   : > { %10282 = vmatprep.subr.bf16.mxu1 %v11123_v12  ;;  %10509 = vmatpush3.bf16.msra.mxu0 %v11130_v10  ;;  %v8404_v12 = vshll.u32 %v9591_v60, 16  ;;  %v8375_v10 = vrot.slane %v8373_v61, 6 }
 0x667   : > { %10510 = vmatprep.subr.bf16.mxu0 %v11291_v4 }
 0x669   : > { %10283 = vmatpush3.bf16.msra.mxu1 %v11125_v20  ;;  %v8378_v20 = vrot.slane %v8376_v24, 7 }
 0x66a   : > { %10284 = vmatprep.subr.bf16.mxu1 %v11126_v51  ;;  %10511 = vmatpush3.bf16.msra.mxu0 %v11133_v0  ;;  %v8387_v51 = vshrl.u32 %v9590_v37, 16  ;;  %v8390_v0 = vshll.u32 %v9590_v37, 16 }
 0x66b   : > { %10512 = vmatprep.subr.bf16.mxu0 %v11291_v4 }
 0x66d   : > { %10285 = vmatpush3.bf16.msra.mxu1 %v11128_v15  ;;  %v8341_v15 = vcombine.high %v9589_v58, %v9589_v58 }
 0x66e   : > { %10286 = vmatprep.subr.bf16.mxu1 %v11129_v19  ;;  %10513 = vmatpush3.bf16.msra.mxu0 %v11136_v21  ;;  %v8361_v19 = vrot.slane %v8359_v2, 6  ;;  %v8364_v21 = vrot.slane %v8362_v3, 7 }
 0x671   : > { %10287 = vmatpush3.bf16.msra.mxu1 %v11131_v34  ;;  %10515 = vmatmul.mubr.bf16.vlgmr.msra.gmra.mrb[64].mxu0 %v12703_v18  ;;  %v11140_v18 = vld [vmem:[#allocation10 + $0x40] sm:$0xff]   ;;  %v8403_v34 = vrot.slane %v8401_v11, 6 }
 0x672   : > { %10288 = vmatprep.subr.bf16.mxu1 %v11132_v46  ;;  %v8406_v46 = vrot.slane %v8404_v12, 7 }
 0x675   : > { %10289 = vmatpush3.bf16.msra.mxu1 %v11134_v33  ;;  %v8333_v33 = vcombine.high %v9588_v59, %v9588_v59 }
 0x676   : > { %10290 = vmatprep.subr.bf16.mxu1 %v11135_v35  ;;  %v8379_v35 = vor.u32 %v8378_v20, %v8375_v10 }
 0x679   : > { %10291 = vmatpush3.bf16.msra.mxu1 %v11137_v49  ;;  %v8357_v49 = vcombine.high %v9591_v60, %v9591_v60 }
 0x67a   : > { %10292 = vmatprep.subr.bf16.mxu1 %v11138_v56  ;;  %v8389_v56 = vrot.slane %v8387_v51, 6 }
 0x67d   : > { %10293 = vmatpush3.bf16.msra.mxu1 %v11139_v23  ;;  %v8392_v23 = vrot.slane %v8390_v0, 7 }
 0x67e   : > { %10518 = vmatprep.subr.bf16.mxu1 %v11291_v4 }
 0x680   : > { %8247 = vmatmul.mubr.bf16.vlgmr.msra.gmra.mrb[60].mxu1 %v12728_v47 }
 0x681   : > { %10534 = vmatprep.mubr.msk.bf16.mxu1 %vm11292_vm9, %v11291_v4  ;;  %10519 = vmatpush3.bf16.msra.mxu1 %v11140_v18  ;;  %v8365_v18 = vor.u32 %v8364_v21, %v8361_v19 }
 0x682   : > { %10520 = vmatprep.subr.bf16.mxu1 %v11291_v4 }
 0x685   : > { %10521 = vmatpush3.bf16.msra.mxu1 %v11141_v43  ;;  %v8382_v43 = vshll.u32 %v8341_v15, 16 }
 0x686   : > { %10522 = vmatprep.subr.bf16.mxu1 %v11291_v4 }
 0x689   : > { %10523 = vmatpush3.bf16.msra.mxu1 %v11142_v7  ;;  %v8349_v7 = vcombine.high %v9590_v37, %v9590_v37 }
 0x68a   : > { %10524 = vmatprep.subr.bf16.mxu1 %v11291_v4 }
 0x68d   : > { %10525 = vmatpush3.bf16.msra.mxu1 %v11143_v16  ;;  %v8407_v16 = vor.u32 %v8406_v46, %v8403_v34 }
 0x68e   : > { %10526 = vmatprep.subr.bf16.mxu1 %v11291_v4 }
 0x691   : > { %10527 = vmatpush3.bf16.msra.mxu1 %v11144_v48  ;;  %v8368_v48 = vshll.u32 %v8333_v33, 16 }
 0x692   : > { %10528 = vmatprep.subr.bf16.mxu1 %v11291_v4 }
 0x695   : > { %10529 = vmatpush3.bf16.msra.mxu1 %v11145_v39  ;;  %v8380_v39 = vrot.slane %v8379_v35, 2 }
 0x696   : > { %10530 = vmatprep.subr.bf16.mxu1 %v11291_v4 }
 0x699   : > { %10531 = vmatpush3.bf16.msra.mxu1 %v11146_v27  ;;  %v8393_v27 = vor.u32 %v8392_v23, %v8389_v56 }
 0x69a   : > { %10532 = vmatprep.subr.bf16.mxu1 %v11291_v4 }
 0x69d   : > { %10533 = vmatpush3.bf16.msra.mxu1 %v11147_v14  ;;  %v8410_v14 = vshll.u32 %v8357_v49, 16 }
 0x713   : > { %v10232_v42 = vpop.f32.mrb[52].mxu1 }
 0x714   : > { %v10233_v26 = vpop.f32.mrb[53].mxu1 }
 0x715   : > { %v10234_v28 = vadd.f32 %v10233_v26, %v10232_v42  ;;  %v10235_v44 = vpop.f32.mrb[54].mxu1  ;;  %v8366_v42 = vrot.slane %v8365_v18, 2  ;;  %v8384_v26 = vrot.slane %v8382_v43, 7 }
 0x716   : > { %v10236_v47 = vpop.f32.mrb[55].mxu1 }
 0x717   : > { %v10237_v50 = vadd.f32 %v10236_v47, %v10235_v44  ;;  %v8408_v44 = vrot.slane %v8407_v16, 2  ;;  %v8370_v47 = vrot.slane %v8368_v48, 7 }
 0x733   : > { %v10263_v36 = vpop.f32.mrb[56].mxu1 }
 0x734   : > { %v10264_v29 = vpop.f32.mrb[57].mxu1 }
 0x735   : > { %v10265_v62 = vadd.f32 %v10264_v29, %v10263_v36  ;;  %v10266_v1 = vpop.f32.mrb[58].mxu1  ;;  %v8394_v36 = vrot.slane %v8393_v27, 2  ;;  %v8412_v29 = vrot.slane %v8410_v14, 7 }
 0x736   : > { %v10267_v6 = vpop.f32.mrb[59].mxu1 }
 0x737   : > { %v10544_v9 = vadd.f32 %v10265_v62, %v10234_v28  ;;  %v10268_v13 = vadd.f32 %v10267_v6, %v10266_v1  ;;  %v8396_v28 = vshll.u32 %v8349_v7, 16  ;;  %v8371_v62 = vsel %vm11605_vm14, %v8366_v42, %v8370_v47 }
 0x738   : > { %v8413_v6 = vsel %vm11605_vm14, %v8408_v44, %v8412_v29 }
 0x739   : > { %v10547_v31 = vadd.f32 %v10268_v13, %v10237_v50  ;;  %v8385_v50 = vsel %vm11605_vm14, %v8380_v39, %v8384_v26  ;;  %v8398_v1 = vrot.slane %v8396_v28, 7 }
 0x73b   : > { %v8399_v13 = vsel %vm11605_vm14, %v8394_v36, %v8398_v1 }
 0x744   : > { %v8289_v32 = vpop.f32.mrb[64].mxu0 }
 0x745   : > { %v10516_v25 = vpop.f32.mrb[65].mxu0 }
 0x746   : > { %v8292_v17 = vpop.f32.mrb[66].mxu0 }
 0x747   : > { %v10517_v5 = vpop.f32.mrb[67].mxu0 }
 0x753   : > { %v10294_v4 = vpop.f32.mrb[60].mxu1 }
 0x754   : > { %v10295_v8 = vpop.f32.mrb[61].mxu1 }
 0x755   : > { %v10296_v38 = vadd.f32 %v10295_v8, %v10294_v4  ;;  %v10297_v40 = vpop.f32.mrb[62].mxu1 }
 0x756   : > { %v10298_v41 = vpop.f32.mrb[63].mxu1 }
 0x757   : > { %v10545_v55 = vadd.f32 %v10544_v9, %v10296_v38  ;;  %v10299_v57 = vadd.f32 %v10298_v41, %v10297_v40  ;;  %v8419_v9 = vunpack.c.l.bf16 %v8385_v50 }
 0x759   : > { %v10546_v52 = vadd.f32 %v10545_v55, %v8289_v32  ;;  %v10548_v22 = vadd.f32 %v10547_v31, %v10299_v57  ;;  %v8418_v31 = vunpack.c.l.bf16 %v8371_v62  ;;  %v8421_v32 = vunpack.c.l.bf16 %v8413_v6 }
 0x75b   : > { %v10549_v63 = vadd.f32 %v10548_v22, %v8292_v17  ;;  %v8298_v45 = vmax.f32 %v10546_v52, 0.0  ;;  %v8474_v25 = vcombine.low %v8418_v31, %v8419_v9  ;;  %v8420_v17 = vunpack.c.l.bf16 %v8399_v13 }
 0x75d   : > { %v8299_v53 = vmax.f32 %v10549_v63, 0.0  ;;  %v8475_v38 = vcombine.low %v8420_v17, %v8421_v32 }
 0x75f   : > { %v8300_v54 = vpack.c.bf16 %v8299_v53, %v8298_v45 }
 0x761   : > { %10535 = vmatmul.mubr.bf16.vlgmr.msra.gmra.mrb[64].mxu1 %v8300_v54 }
 0x834   : > { %v8512_v5 = vpop.f32.mrb[64].mxu1 }
 0x835   : > { %v8513_v4 = vadd.f32 %v8512_v5, %v8474_v25  ;;  %v10536_v8 = vpop.f32.mrb[65].mxu1 }
 0x836   : > { %v8515_v40 = vpop.f32.mrb[66].mxu1 }
 0x837   : > { %v8516_v41 = vadd.f32 %v8515_v40, %v8475_v38  ;;  %v10537_v55 = vpop.f32.mrb[67].mxu1  ;;  %v8519_v57 = vmax.f32 %v8513_v4, 0.0 }
 0x839   : > { %v8520_v52 = vmax.f32 %v8516_v41, 0.0 }
 0x83b   : > { %v9623_v30 = vpack.c.bf16 %v8520_v52, %v8519_v57 }
 0x83d   : > { %9624 = vst [vmem:[%s333_s10] sm:$0xff] %v9623_v30  }
 0x83e PF: > { %s20_s24 = sadd.s32 1, %s11281_s24  }
 0x83f   : > { %p17_p6 = scmp.ge.s32.totalorder %s20_s24, 4  }
 0x841   :  { %19 = sbr.rel (!%p17_p6) target bundleno = 3 (0x3), region = 108 }
 0x848   :  { %8552 = vsyncpa [#allocation6], 1 }
 0x849   :  { %8554 = vsyncpa [#allocation6 + $0x1], 1 }
 0x84a   :  { %8555 = vsyncpa [#allocation8], 1 }
 0x84b   :  { %8556 = vsyncpa [#allocation11], 1 }

</bundles_post_ra>
